<compile_context>
chip_gen: v5e
topology: v5e:2x2
jax: 0.10.0
libtpu: 0.0.40
codegen_flags: <defaults>
</compile_context>

<pallas_src>
import numpy as np
import jax
import jax.numpy as jnp
from jax.experimental import pallas as pl
from jax.experimental.pallas import tpu as pltpu

# ---------------- configuration (small, consistent with the module) ----------
FEATURES = ["seqs", "network", "description"]
HIDDEN_DIM = 32          # hidden_dim
SEQ_INPUT_NC = 21        # one_hot() always produces 21 channels
SEQ_IN_NC = 16           # seq_in_nc (conv out channels F)
SEQ_MAX_KERNELS = 33     # kernels = range(8, 33, 8) = [8, 16, 24, 32]
MAX_LENGTH = 64          # seq_length / max_length
NETWORK_DIM = 24         # network_dim
DESCRIPTION_DIM = 768    # fixed default inside BioDataEncoder
LEAKY_SLOPE = 0.01       # nn.LeakyReLU default negative_slope
KERNEL_SIZES = list(range(8, SEQ_MAX_KERNELS, 8))

N_KERNELS = len(KERNEL_SIZES)          # 4
MAX_K = max(KERNEL_SIZES)              # 32 taps
CONV_BLK = N_KERNELS * SEQ_IN_NC       # 64 conv channels (4 kernel sizes x 16)
OUT_DIM = len(FEATURES) * HIDDEN_DIM   # 96

# --- kernel tiling / packing constants ---
TB = 8                                 # batch rows per grid step (M = TB*64 = 512)
CPAD = 32                              # conv channels padded 21 -> 32 (lane-aligned taps)
N_TAPS = 1 << int(np.ceil(np.log2(MAX_K)))   # 32 (power of two for roll-doubling)
COL_DIM = N_TAPS * CPAD                # 1024  im2col width
HEAD_SEQ_OFF = 0                       # conv_max  at lanes [0, 64)
HEAD_NET_OFF = 128                     # network   at lanes [128, 152)
HEAD_DESC_OFF = 256                    # descript. at lanes [256, 1024)
HEAD_IN = HEAD_DESC_OFF + DESCRIPTION_DIM    # 1024
HEAD_OUT = 128                         # 96 useful columns padded to a full lane group

assert MAX_K <= MAX_LENGTH, "conv kernel larger than sequence -> empty valid window"
assert HEAD_NET_OFF >= CONV_BLK
assert HEAD_DESC_OFF >= HEAD_NET_OFF + NETWORK_DIM
assert HEAD_OUT >= OUT_DIM

AALETTER = ['A', 'R', 'N', 'D', 'C', 'Q', 'E', 'G', 'H', 'I',
            'L', 'K', 'M', 'F', 'P', 'S', 'T', 'W', 'Y', 'V']


def one_hot(seq, start=0, max_len=MAX_LENGTH):
    """Same semantics as the DeepGOPlus one_hot (numpy glue)."""
    aaindex = {a: i + 1 for i, a in enumerate(AALETTER)}
    onehot = np.zeros((21, max_len), dtype=np.int32)
    l = min(max_len, len(seq))
    for i in range(start, start + l):
        onehot[aaindex.get(seq[i - start], 0), i] = 1
    onehot[0, 0:start] = 1
    onehot[0, start + l:] = 1
    return onehot


# ---------------------------- fused Pallas kernel -----------------------------
def fused_kernel(x_ref, mask_ref, vec_ref, desc_ref,
                 wconv_ref, whead_ref, bhead_ref, o_ref):
    """TB batch rows per grid step: conv (all kernel sizes) + maxpool + 3 fused heads."""
    NL = TB * MAX_LENGTH

    # ---- convolution: in-kernel im2col via log2(N_TAPS) roll-doubling steps,
    #      then ONE lane-dense MXU matmul (no (L, 2048) intermediate, no serial chain).
    a = x_ref[...]                                               # (NL, 32) f32
    for r in range(N_TAPS.bit_length() - 1):                     # 5 rounds -> 32 tap blocks
        a = jnp.concatenate([a, pltpu.roll(a, shift=NL - (1 << r), axis=0)], axis=1)
    # a[t, dk*CPAD + c] == x[t + dk, c]  (row-wrapped entries are either multiplied
    # by zero weight columns or land on -1e30-masked output rows).
    acc = jnp.dot(a.astype(jnp.bfloat16), wconv_ref[...],
                  preferred_element_type=jnp.float32)            # (NL, 64)

    # Mask invalid (partial-window) time positions per kernel size, per *within-row*
    # time index, then take the per-batch-row global max over time.
    acc = acc + mask_ref[...]
    rows = [jnp.max(acc[b * MAX_LENGTH:(b + 1) * MAX_LENGTH, :], axis=0, keepdims=True)
            for b in range(TB)]
    conv_max = jnp.concatenate(rows, axis=0)                     # (TB, 64)

    # ---- three Linear + LeakyReLU heads fused into ONE block-diagonal matmul.
    # Head input pieces land at 128-aligned lane offsets (0 / 128 / 256).
    h = jnp.concatenate(
        [conv_max,
         jnp.zeros((TB, HEAD_NET_OFF - CONV_BLK), jnp.float32),
         vec_ref[...],
         jnp.zeros((TB, HEAD_DESC_OFF - HEAD_NET_OFF - NETWORK_DIM), jnp.float32),
         desc_ref[...]], axis=1)                                 # (TB, 1024)
    y = jnp.dot(h, whead_ref[...],
                preferred_element_type=jnp.float32) + bhead_ref[...]   # (TB, 128)
    o_ref[...] = jnp.where(y >= 0, y, LEAKY_SLOPE * y)           # one dense store


# ---------------------------- parameters --------------------------------------
def _uniform(key, shape, fan_in):
    bound = 1.0 / np.sqrt(fan_in)
    return jax.random.uniform(key, shape, jnp.float32, -bound, bound)


def init_params(key):
    params = {"convs": []}
    keys = jax.random.split(key, 2 * len(KERNEL_SIZES) + 6)
    ki = 0
    for k in KERNEL_SIZES:
        fan_in = SEQ_INPUT_NC * k
        w = _uniform(keys[ki], (k, SEQ_INPUT_NC, SEQ_IN_NC), fan_in); ki += 1
        b = _uniform(keys[ki], (SEQ_IN_NC,), fan_in); ki += 1
        params["convs"].append((w, b))
    seq_in = len(KERNEL_SIZES) * SEQ_IN_NC
    params["fc_seq"] = (_uniform(keys[ki], (seq_in, HIDDEN_DIM), seq_in),
                        _uniform(keys[ki + 1], (HIDDEN_DIM,), seq_in)); ki += 2
    params["fc_network"] = (_uniform(keys[ki], (NETWORK_DIM, HIDDEN_DIM), NETWORK_DIM),
                            _uniform(keys[ki + 1], (HIDDEN_DIM,), NETWORK_DIM)); ki += 2
    params["fc_description"] = (_uniform(keys[ki], (DESCRIPTION_DIM, HIDDEN_DIM), DESCRIPTION_DIM),
                                _uniform(keys[ki + 1], (HIDDEN_DIM,), DESCRIPTION_DIM)); ki += 2
    return params


def pack_params(params):
    """One-time host-side repack of the PyTorch-style params for the fused kernel."""
    C, F, H = SEQ_INPUT_NC, SEQ_IN_NC, HIDDEN_DIM

    # im2col conv weight: row dk*CPAD + c -> column ki*F + f (zero for padded
    # channels c >= 21 and for taps dk >= K of that kernel size).
    w_conv = np.zeros((COL_DIM, CONV_BLK), np.float32)
    conv_b = np.zeros((CONV_BLK,), np.float32)
    for ki, (w, b) in enumerate(params["convs"]):
        w = np.asarray(w, np.float32)                       # (K, C, F)
        conv_b[ki * F:(ki + 1) * F] = np.asarray(b, np.float32)
        for dk in range(w.shape[0]):
            w_conv[dk * CPAD:dk * CPAD + C, ki * F:(ki + 1) * F] = w[dk]

    w_seq = np.asarray(params["fc_seq"][0], np.float32)
    b_seq = np.asarray(params["fc_seq"][1], np.float32)
    w_net = np.asarray(params["fc_network"][0], np.float32)
    b_net = np.asarray(params["fc_network"][1], np.float32)
    w_dsc = np.asarray(params["fc_description"][0], np.float32)
    b_dsc = np.asarray(params["fc_description"][1], np.float32)

    # Block-diagonal fused head weight (1024 -> 128).
    w_head = np.zeros((HEAD_IN, HEAD_OUT), np.float32)
    w_head[HEAD_SEQ_OFF:HEAD_SEQ_OFF + CONV_BLK, 0:H] = w_seq
    w_head[HEAD_NET_OFF:HEAD_NET_OFF + NETWORK_DIM, H:2 * H] = w_net
    w_head[HEAD_DESC_OFF:HEAD_DESC_OFF + DESCRIPTION_DIM, 2 * H:3 * H] = w_dsc

    # (max(conv) + conv_b) @ Wseq + b_seq == max(conv) @ Wseq + (conv_b @ Wseq + b_seq)
    b_head = np.zeros((1, HEAD_OUT), np.float32)
    b_head[0, 0:H] = b_seq + conv_b @ w_seq
    b_head[0, H:2 * H] = b_net
    b_head[0, 2 * H:3 * H] = b_dsc

    # Additive validity mask per within-row time index (valid t in [0, L-K]).
    mask_row = np.zeros((MAX_LENGTH, CONV_BLK), np.float32)
    for ki, K in enumerate(KERNEL_SIZES):
        mask_row[MAX_LENGTH - K + 1:, ki * F:(ki + 1) * F] = -1e30
    mask = np.tile(mask_row, (TB, 1))                       # (TB*L, 64)

    return {"w_conv": jnp.asarray(w_conv, jnp.bfloat16),
            "w_head": jnp.asarray(w_head),
            "b_head": jnp.asarray(b_head),
            "mask": jnp.asarray(mask)}


# ---------------------------- forward ------------------------------------------
def _forward(packed, x_seq_blc, x_description, x_vector):
    """Equivalent of BioTranslator.forward()'s returned data_encodings.

    x_seq_blc is the one-hot sequence already channels-last, shape (B, L, 21)
    (built that way on the host to avoid an NCL->NLC transpose in XLA).
    """
    B = x_seq_blc.shape[0]
    Bp = ((B + TB - 1) // TB) * TB                          # pad batch to a TB multiple

    x = jnp.pad(x_seq_blc.astype(jnp.float32),
                ((0, Bp - B), (0, 0), (0, CPAD - SEQ_INPUT_NC)))
    x_flat = x.reshape(Bp * MAX_LENGTH, CPAD)               # (Bp*L, 32)
    vec = jnp.pad(x_vector, ((0, Bp - B), (0, 0)))          # (Bp, 24)
    desc = jnp.pad(x_description, ((0, Bp - B), (0, 0)))    # (Bp, 768)

    out = pl.pallas_call(
        fused_kernel,
        out_shape=jax.ShapeDtypeStruct((Bp, HEAD_OUT), jnp.float32),
        grid=(Bp // TB,),
        in_specs=[
            pl.BlockSpec((TB * MAX_LENGTH, CPAD), lambda i: (i, 0)),       # x rows
            pl.BlockSpec((TB * MAX_LENGTH, CONV_BLK), lambda i: (0, 0)),   # valid mask
            pl.BlockSpec((TB, NETWORK_DIM), lambda i: (i, 0)),             # network vec
            pl.BlockSpec((TB, DESCRIPTION_DIM), lambda i: (i, 0)),         # description
            pl.BlockSpec((COL_DIM, CONV_BLK), lambda i: (0, 0)),           # im2col conv W
            pl.BlockSpec((HEAD_IN, HEAD_OUT), lambda i: (0, 0)),           # fused head W
            pl.BlockSpec((1, HEAD_OUT), lambda i: (0, 0)),                 # fused head b
        ],
        out_specs=pl.BlockSpec((TB, HEAD_OUT), lambda i: (i, 0)),
        compiler_params=pltpu.CompilerParams(
            dimension_semantics=("parallel",)),    # v7x: batch tiles split across TCs
    )(x_flat, packed["mask"], vec, desc,
      packed["w_conv"], packed["w_head"], packed["b_head"])

    return out[:B, :OUT_DIM]                                # drop batch/lane padding


biotranslator_forward = jax.jit(_forward)


def reference_forward(params, x_seq_blc, x_description, x_vector):
    """Pure-jnp reference (operates on the original, unpacked params)."""
    x_blc = x_seq_blc.astype(jnp.float32)                   # (B, L, 21)
    parts = []
    for (w, b) in params["convs"]:
        K = w.shape[0]
        Lout = x_blc.shape[1] - K + 1
        acc = 0.0
        for dk in range(K):
            acc = acc + jnp.einsum("blc,cf->blf", x_blc[:, dk:dk + Lout, :], w[dk],
                                   precision=jax.lax.Precision.HIGHEST)
        parts.append(jnp.max(acc, axis=1) + b[None, :])

    def lin(x, w, b):
        y = jnp.dot(x, w, precision=jax.lax.Precision.HIGHEST) + b[None, :]
        return jnp.where(y >= 0, y, LEAKY_SLOPE * y)

    feats = {
        "seqs": lin(jnp.concatenate(parts, axis=1), *params["fc_seq"]),
        "network": lin(x_vector, *params["fc_network"]),
        "description": lin(x_description, *params["fc_description"]),
    }
    return jnp.concatenate([feats[f] for f in FEATURES], axis=1)


# ---------------------------- main ---------------------------------------------
if __name__ == "__main__":
    key = jax.random.PRNGKey(0)
    k_param, k_seq, k_desc, k_vec = jax.random.split(key, 4)

    params = init_params(k_param)
    packed = pack_params(params)

    B = 2
    # deterministic synthetic amino-acid strings
    idx = np.asarray(jax.random.randint(k_seq, (B, MAX_LENGTH), 0, 20))
    seq_lens = [48, MAX_LENGTH]
    seqs = ["".join(AALETTER[j] for j in idx[b, :seq_lens[b]]) for b in range(B)]

    # one_hot -> channels-last (B, L, 21) on the host (no XLA transpose needed)
    x_seq = jnp.asarray(
        np.stack([one_hot(s, max_len=MAX_LENGTH).T for s in seqs]).astype(np.float32))
    x_desc = jax.random.normal(k_desc, (B, DESCRIPTION_DIM), jnp.float32)
    x_vec = jax.random.normal(k_vec, (B, NETWORK_DIM), jnp.float32)

    out = biotranslator_forward(packed, x_seq, x_desc, x_vec)
    out = jax.block_until_ready(out)

    assert out.shape == (B, OUT_DIM), out.shape
    ref = jax.block_until_ready(reference_forward(params, x_seq, x_desc, x_vec))
    np.testing.assert_allclose(np.asarray(out), np.asarray(ref), rtol=1e-2, atol=1e-2)

    print("KERNEL_OK")
</pallas_src>

<mosaic_0001>
module attributes {stable_mosaic.version = 11 : i64} {
  func.func @fused_kernel(%arg0: i32, %arg1: memref<512x32xf32, #tpu.memory_space<vmem>>, %arg2: memref<512x64xf32, #tpu.memory_space<vmem>>, %arg3: memref<8x24xf32, #tpu.memory_space<vmem>>, %arg4: memref<8x768xf32, #tpu.memory_space<vmem>>, %arg5: memref<1024x64xbf16, #tpu.memory_space<vmem>>, %arg6: memref<1024x128xf32, #tpu.memory_space<vmem>>, %arg7: memref<1x128xf32, #tpu.memory_space<vmem>>, %arg8: memref<8x128xf32, #tpu.memory_space<vmem>>) attributes {dimension_semantics = [#tpu.dimension_semantics<parallel>], iteration_bounds = array<i64: 1>, scalar_prefetch = 0 : i64, scratch_operands = 0 : i64, tpu.core_type = #tpu.core_type<tc>, window_params = [{transform_indices = @transform_0, window_bounds = array<i64: 512, 32>}, {pipeline_mode = #tpu.pipeline_mode<synchronous>, transform_indices = @transform_1, window_bounds = array<i64: 512, 64>}, {transform_indices = @transform_2, window_bounds = array<i64: 8, 24>}, {transform_indices = @transform_3, window_bounds = array<i64: 8, 768>}, {pipeline_mode = #tpu.pipeline_mode<synchronous>, transform_indices = @transform_4, window_bounds = array<i64: 1024, 64>}, {pipeline_mode = #tpu.pipeline_mode<synchronous>, transform_indices = @transform_5, window_bounds = array<i64: 1024, 128>}, {pipeline_mode = #tpu.pipeline_mode<synchronous>, transform_indices = @transform_6, window_bounds = array<i64: 1, 128>}, {transform_indices = @transform_7, window_bounds = array<i64: 8, 128>}]} {
    %c0 = arith.constant 0 : index
    %c0_0 = arith.constant 0 : index
    %0 = vector.load %arg1[%c0, %c0_0] : memref<512x32xf32, #tpu.memory_space<vmem>>, vector<512x32xf32>
    %c511_i32 = arith.constant 511 : i32
    %1 = tpu.dynamic_rotate %0 by %c511_i32 dim 0 : vector<512x32xf32>, i32 -> vector<512x32xf32>
    %2 = tpu.concatenate %0, %1 in 1 : vector<512x32xf32>, vector<512x32xf32> -> vector<512x64xf32>
    %c510_i32 = arith.constant 510 : i32
    %3 = tpu.dynamic_rotate %2 by %c510_i32 dim 0 : vector<512x64xf32>, i32 -> vector<512x64xf32>
    %4 = tpu.concatenate %2, %3 in 1 : vector<512x64xf32>, vector<512x64xf32> -> vector<512x128xf32>
    %c508_i32 = arith.constant 508 : i32
    %5 = tpu.dynamic_rotate %4 by %c508_i32 dim 0 : vector<512x128xf32>, i32 -> vector<512x128xf32>
    %6 = tpu.concatenate %4, %5 in 1 : vector<512x128xf32>, vector<512x128xf32> -> vector<512x256xf32>
    %c504_i32 = arith.constant 504 : i32
    %7 = tpu.dynamic_rotate %6 by %c504_i32 dim 0 : vector<512x256xf32>, i32 -> vector<512x256xf32>
    %8 = tpu.concatenate %6, %7 in 1 : vector<512x256xf32>, vector<512x256xf32> -> vector<512x512xf32>
    %c496_i32 = arith.constant 496 : i32
    %9 = tpu.dynamic_rotate %8 by %c496_i32 dim 0 : vector<512x512xf32>, i32 -> vector<512x512xf32>
    %10 = tpu.concatenate %8, %9 in 1 : vector<512x512xf32>, vector<512x512xf32> -> vector<512x1024xf32>
    %11 = arith.truncf %10 : vector<512x1024xf32> to vector<512x1024xbf16>
    %c0_1 = arith.constant 0 : index
    %c0_2 = arith.constant 0 : index
    %12 = vector.load %arg5[%c0_1, %c0_2] : memref<1024x64xbf16, #tpu.memory_space<vmem>>, vector<1024x64xbf16>
    %cst = arith.constant dense<0.000000e+00> : vector<512x64xf32>
    %13 = tpu.matmul %11, %12, %cst {dimension_numbers = #tpu.dot_dimension_numbers<[1], [0], [0], [1], [0, 0, 1, 1], [], []>} : vector<512x1024xbf16>, vector<1024x64xbf16>, vector<512x64xf32> -> vector<512x64xf32>
    %c0_3 = arith.constant 0 : index
    %c0_4 = arith.constant 0 : index
    %14 = vector.load %arg2[%c0_3, %c0_4] : memref<512x64xf32, #tpu.memory_space<vmem>>, vector<512x64xf32>
    %15 = arith.addf %13, %14 : vector<512x64xf32>
    %16 = vector.extract_strided_slice %15 {offsets = [0, 0], sizes = [64, 64], strides = [1, 1]} : vector<512x64xf32> to vector<64x64xf32>
    %cst_5 = arith.constant dense<0xFF800000> : vector<64xf32>
    %17 = vector.multi_reduction <maximumf>, %16, %cst_5 [0] : vector<64x64xf32> to vector<64xf32>
    %18 = vector.shape_cast %17 : vector<64xf32> to vector<1x64xf32>
    %19 = vector.extract_strided_slice %15 {offsets = [64, 0], sizes = [64, 64], strides = [1, 1]} : vector<512x64xf32> to vector<64x64xf32>
    %cst_6 = arith.constant dense<0xFF800000> : vector<64xf32>
    %20 = vector.multi_reduction <maximumf>, %19, %cst_6 [0] : vector<64x64xf32> to vector<64xf32>
    %21 = vector.shape_cast %20 : vector<64xf32> to vector<1x64xf32>
    %22 = vector.extract_strided_slice %15 {offsets = [128, 0], sizes = [64, 64], strides = [1, 1]} : vector<512x64xf32> to vector<64x64xf32>
    %cst_7 = arith.constant dense<0xFF800000> : vector<64xf32>
    %23 = vector.multi_reduction <maximumf>, %22, %cst_7 [0] : vector<64x64xf32> to vector<64xf32>
    %24 = vector.shape_cast %23 : vector<64xf32> to vector<1x64xf32>
    %25 = vector.extract_strided_slice %15 {offsets = [192, 0], sizes = [64, 64], strides = [1, 1]} : vector<512x64xf32> to vector<64x64xf32>
    %cst_8 = arith.constant dense<0xFF800000> : vector<64xf32>
    %26 = vector.multi_reduction <maximumf>, %25, %cst_8 [0] : vector<64x64xf32> to vector<64xf32>
    %27 = vector.shape_cast %26 : vector<64xf32> to vector<1x64xf32>
    %28 = vector.extract_strided_slice %15 {offsets = [256, 0], sizes = [64, 64], strides = [1, 1]} : vector<512x64xf32> to vector<64x64xf32>
    %cst_9 = arith.constant dense<0xFF800000> : vector<64xf32>
    %29 = vector.multi_reduction <maximumf>, %28, %cst_9 [0] : vector<64x64xf32> to vector<64xf32>
    %30 = vector.shape_cast %29 : vector<64xf32> to vector<1x64xf32>
    %31 = vector.extract_strided_slice %15 {offsets = [320, 0], sizes = [64, 64], strides = [1, 1]} : vector<512x64xf32> to vector<64x64xf32>
    %cst_10 = arith.constant dense<0xFF800000> : vector<64xf32>
    %32 = vector.multi_reduction <maximumf>, %31, %cst_10 [0] : vector<64x64xf32> to vector<64xf32>
    %33 = vector.shape_cast %32 : vector<64xf32> to vector<1x64xf32>
    %34 = vector.extract_strided_slice %15 {offsets = [384, 0], sizes = [64, 64], strides = [1, 1]} : vector<512x64xf32> to vector<64x64xf32>
    %cst_11 = arith.constant dense<0xFF800000> : vector<64xf32>
    %35 = vector.multi_reduction <maximumf>, %34, %cst_11 [0] : vector<64x64xf32> to vector<64xf32>
    %36 = vector.shape_cast %35 : vector<64xf32> to vector<1x64xf32>
    %37 = vector.extract_strided_slice %15 {offsets = [448, 0], sizes = [64, 64], strides = [1, 1]} : vector<512x64xf32> to vector<64x64xf32>
    %cst_12 = arith.constant dense<0xFF800000> : vector<64xf32>
    %38 = vector.multi_reduction <maximumf>, %37, %cst_12 [0] : vector<64x64xf32> to vector<64xf32>
    %39 = vector.shape_cast %38 : vector<64xf32> to vector<1x64xf32>
    %40 = tpu.concatenate %18, %21, %24, %27, %30, %33, %36, %39 in 0 : vector<1x64xf32>, vector<1x64xf32>, vector<1x64xf32>, vector<1x64xf32>, vector<1x64xf32>, vector<1x64xf32>, vector<1x64xf32>, vector<1x64xf32> -> vector<8x64xf32>
    %cst_13 = arith.constant 0.000000e+00 : f32
    %41 = vector.broadcast %cst_13 : f32 to vector<8x64xf32>
    %c0_14 = arith.constant 0 : index
    %c0_15 = arith.constant 0 : index
    %42 = vector.load %arg3[%c0_14, %c0_15] : memref<8x24xf32, #tpu.memory_space<vmem>>, vector<8x24xf32>
    %cst_16 = arith.constant 0.000000e+00 : f32
    %43 = vector.broadcast %cst_16 : f32 to vector<8x104xf32>
    %c0_17 = arith.constant 0 : index
    %c0_18 = arith.constant 0 : index
    %44 = vector.load %arg4[%c0_17, %c0_18] : memref<8x768xf32, #tpu.memory_space<vmem>>, vector<8x768xf32>
    %45 = tpu.concatenate %40, %41, %42, %43, %44 in 1 : vector<8x64xf32>, vector<8x64xf32>, vector<8x24xf32>, vector<8x104xf32>, vector<8x768xf32> -> vector<8x1024xf32>
    %c0_19 = arith.constant 0 : index
    %c0_20 = arith.constant 0 : index
    %46 = vector.load %arg6[%c0_19, %c0_20] : memref<1024x128xf32, #tpu.memory_space<vmem>>, vector<1024x128xf32>
    %cst_21 = arith.constant dense<0.000000e+00> : vector<8x128xf32>
    %47 = tpu.matmul %45, %46, %cst_21 {dimension_numbers = #tpu.dot_dimension_numbers<[1], [0], [0], [1], [0, 0, 1, 1], [], []>} : vector<8x1024xf32>, vector<1024x128xf32>, vector<8x128xf32> -> vector<8x128xf32>
    %c0_22 = arith.constant 0 : index
    %c0_23 = arith.constant 0 : index
    %48 = vector.load %arg7[%c0_22, %c0_23] : memref<1x128xf32, #tpu.memory_space<vmem>>, vector<1x128xf32>
    %49 = vector.broadcast %48 : vector<1x128xf32> to vector<8x128xf32>
    %50 = arith.addf %47, %49 : vector<8x128xf32>
    %cst_24 = arith.constant 0.000000e+00 : f32
    %51 = vector.broadcast %cst_24 : f32 to vector<8x128xf32>
    %52 = arith.cmpf oge, %50, %51 : vector<8x128xf32>
    %cst_25 = arith.constant 0.00999999977 : f32
    %53 = vector.broadcast %cst_25 : f32 to vector<8x128xf32>
    %54 = arith.mulf %53, %50 : vector<8x128xf32>
    %55 = arith.select %52, %50, %54 : vector<8x128xi1>, vector<8x128xf32>
    %c0_26 = arith.constant 0 : index
    %c0_27 = arith.constant 0 : index
    %56 = vector.load %arg8[%c0_26, %c0_27] : memref<8x128xf32, #tpu.memory_space<vmem>>, vector<8x128xf32>
    tpu.vector_store %arg8[%c0_26, %c0_27], %55 {strides = array<i32>} : memref<8x128xf32, #tpu.memory_space<vmem>>, vector<8x128xf32>,
    return
  }
  func.func @transform_0(%arg0: i32) -> (i32, i32) {
    %c0_i32 = arith.constant 0 : i32
    %c0_i32_0 = arith.constant 0 : i32
    return %arg0, %c0_i32 : i32, i32
  }
  func.func @transform_1(%arg0: i32) -> (i32, i32) {
    %c0_i32 = arith.constant 0 : i32
    %c0_i32_0 = arith.constant 0 : i32
    %c0_i32_1 = arith.constant 0 : i32
    return %c0_i32, %c0_i32_0 : i32, i32
  }
  func.func @transform_2(%arg0: i32) -> (i32, i32) {
    %c0_i32 = arith.constant 0 : i32
    %c0_i32_0 = arith.constant 0 : i32
    return %arg0, %c0_i32 : i32, i32
  }
  func.func @transform_3(%arg0: i32) -> (i32, i32) {
    %c0_i32 = arith.constant 0 : i32
    %c0_i32_0 = arith.constant 0 : i32
    return %arg0, %c0_i32 : i32, i32
  }
  func.func @transform_4(%arg0: i32) -> (i32, i32) {
    %c0_i32 = arith.constant 0 : i32
    %c0_i32_0 = arith.constant 0 : i32
    %c0_i32_1 = arith.constant 0 : i32
    return %c0_i32, %c0_i32_0 : i32, i32
  }
  func.func @transform_5(%arg0: i32) -> (i32, i32) {
    %c0_i32 = arith.constant 0 : i32
    %c0_i32_0 = arith.constant 0 : i32
    %c0_i32_1 = arith.constant 0 : i32
    return %c0_i32, %c0_i32_0 : i32, i32
  }
  func.func @transform_6(%arg0: i32) -> (i32, i32) {
    %c0_i32 = arith.constant 0 : i32
    %c0_i32_0 = arith.constant 0 : i32
    %c0_i32_1 = arith.constant 0 : i32
    return %c0_i32, %c0_i32_0 : i32, i32
  }
  func.func @transform_7(%arg0: i32) -> (i32, i32) {
    %c0_i32 = arith.constant 0 : i32
    %c0_i32_0 = arith.constant 0 : i32
    return %arg0, %c0_i32 : i32, i32
  }
}

</mosaic_0001>

<bundles_post_ra>
// kernel: _forward.1
= control target key start
LH: loop header
LB: loop body
LE: loop exit
PB: predicated region body
PF: predicated region fallthrough
CT: control target
= control target key end

     0   :  { %v154_v0 = vlaneseq  ;;  %s4309_s21 = smov 32   ;;  %vm477_vm1 = vcmask 261120   ;;  %s4310_s19 = smov 64   ;;  %vm927_vm3 = vcmask 523264   ;;  %vm3345_vm5 = vcmask 1040384   ;;  %s7912_s0 = inlined_call_operand.vmem [shape: f32[512,32], index: 0, kind: input, shape index: {}]   ;;  %s7913_s4 = inlined_call_operand.vmem [shape: bf16[1024,64], index: 4, kind: input, shape index: {}]   ;;  %s7914_s1 = inlined_call_operand.vmem [shape: f32[512,64], index: 1, kind: input, shape index: {}]   ;;  %s7915_s5 = inlined_call_operand.vmem [shape: f32[1024,128], index: 5, kind: input, shape index: {}]   ;;  %s7916_s6 = inlined_call_operand.vmem [shape: f32[1,128], index: 6, kind: input, shape index: {}]   ;;  %s7917_s3 = inlined_call_operand.vmem [shape: f32[8,768], index: 3, kind: input, shape index: {}]   ;;  %s7918_s2 = inlined_call_operand.vmem [shape: f32[8,24], index: 2, kind: input, shape index: {}]   ;;  %s7919_s7 = inlined_call_operand.vmem [shape: f32[8,128], index: 7, kind: output, shape index: {}]  }
   0x1   :  { %v4354_v1 = vld [vmem:[%s7912_s0] sm:$0xff]  ;;  %v4359_v2 = vld [vmem:[%s7912_s0 + $0x8] sm:$0xff]  ;;  %v4364_v3 = vld [vmem:[%s7912_s0 + $0x10] sm:$0xff]  ;;  %vm3347_vm6 = vcmask 1041408   ;;  %vm3349_vm7 = vcmask 1042432   ;;  %vm3351_vm8 = vcmask 1043456  }
   0x2   :  { %v7922_v4 = vrot.slane %v4354_v1, 1  ;;  %v91_v5 = vrot.slane %v4359_v2, 1  ;;  %v4368_v6 = vshrl.u32 %v154_v0, 7  ;;  %v4373_v7 = vld [vmem:[%s7912_s0 + $0x18] sm:$0xff]  ;;  %v92_v8 = vrot.slane %v4364_v3, 1  ;;  %v4379_v9 = vld [vmem:[%s7912_s0 + $0x28] sm:$0xff] }
   0x3   :  { %v93_v10 = vrot.slane %v4373_v7, 1  ;;  %v4385_v11 = vld [vmem:[%s7912_s0 + $0x30] sm:$0xff]  ;;  %v33_v12 = vld [vmem:[%s7912_s0 + $0x38] sm:$0xff]  ;;  %v95_v13 = vrot.slane %v4379_v9, 1  ;;  %v4394_v14 = vld [vmem:[%s7912_s0 + $0x20] sm:$0xff]  ;;  %vm3353_vm9 = vcmask 1044480  }
   0x4   :  { %vm156_vm0 = vcmp.lt.s32.totalorder %v4368_v6, 7  ;;  %v96_v15 = vrot.slane %v4385_v11, 1  ;;  %v97_v16 = vrot.slane %v33_v12, 1  ;;  %v94_v20 = vrot.slane %v4394_v14, 1  ;;  %v4410_v21 = vld [vmem:[%s7912_s0 + $0x48] sm:$0xff]  ;;  %v34_v22 = vld [vmem:[%s7912_s0 + $0x40] sm:$0xff] }
   0x5   :  { %v219_v17 = vsel %vm156_vm0, %v7922_v4, %v91_v5  ;;  %v217_v18 = vsel %vm156_vm0, %v92_v8, %v93_v10  ;;  %v218_v19 = vsel %vm156_vm0, %v91_v5, %v92_v8  ;;  %v4424_v26 = vld [vmem:[%s7912_s0 + $0x50] sm:$0xff]  ;;  %v4429_v27 = vld [vmem:[%s7912_s0 + $0x58] sm:$0xff]  ;;  %v99_v28 = vrot.slane %v4410_v21, 1  ;;  %v4485_v61 = vld [vmem:[%s7912_s0 + $0x80] sm:$0xff] }
   0x6   :  { %285 = vrot.lane.b32.xlu1 %v219_v17, %s4309_s21  ;;  %v3993_v23 = vpack.i.bf16 %v217_v18, %v218_v19  ;;  %v213_v24 = vsel %vm156_vm0, %v96_v15, %v97_v16  ;;  %v214_v25 = vsel %vm156_vm0, %v95_v13, %v96_v15  ;;  %v98_v29 = vrot.slane %v34_v22, 1  ;;  %v4480_v60 = vld [vmem:[%s7912_s0 + $0x78] sm:$0xff]  ;;  %v4511_v15 = vld [vmem:[%s7912_s0 + $0x68] sm:$0xff] }
   0x7   :  { %v215_v30 = vsel %vm156_vm0, %v94_v20, %v95_v13  ;;  %v216_v31 = vsel %vm156_vm0, %v93_v10, %v94_v20  ;;  %v4003_v32 = vpack.i.bf16 %v213_v24, %v214_v25  ;;  %v100_v35 = vrot.slane %v4424_v26, 1  ;;  %v3950_v5 = vld [vmem:[%s7913_s4 + $0xb8] sm:$0xff]  ;;  %v4506_v13 = vld [vmem:[%s7912_s0 + $0x60] sm:$0xff]  ;;  %v3949_v20 = vld [vmem:[%s7913_s4 + $0xb0] sm:$0xff] }
   0x8   :  { %3994 = vrot.lane.b32.xlu0 %v3993_v23, %s4309_s21  ;;  %v211_v33 = vsel %vm156_vm0, %v98_v29, %v99_v28  ;;  %v212_v34 = vsel %vm156_vm0, %v97_v16, %v98_v29  ;;  %v101_v36 = vrot.slane %v4429_v27, 1  ;;  %v3998_v38 = vpack.i.bf16 %v215_v30, %v216_v31  ;;  %2163 = vmatpush.bf16.msra.mxu2 %v3950_v5 }
   0x9   :  { %v4008_v37 = vpack.i.bf16 %v211_v33, %v212_v34  ;;  %v210_v40 = vsel %vm156_vm0, %v99_v28, %v100_v35  ;;  %vm606_vm2 = vcmp.lt.s32.totalorder %v4368_v6, 6  ;;  %v105_v18 = vrot.slane %v4480_v60, 1 }
   0xa   :  { %v209_v39 = vsel %vm156_vm0, %v100_v35, %v101_v36  ;;  %v106_v19 = vrot.slane %v4485_v61, 1  ;;  %v102_v29 = vrot.slane %v4506_v13, 1  ;;  %v103_v30 = vrot.slane %v4511_v15, 1 }
   0xb   :  { %4009 = vrot.lane.b32.xlu2 %v4008_v37, %s4309_s21  ;;  %v4023_v41 = vpack.i.bf16 %v209_v39, %v210_v40  ;;  %v3948_v40 = vld [vmem:[%s7913_s4 + $0xa8] sm:$0xff]  ;;  %vm1056_vm4 = vcmp.lt.s32.totalorder %v4368_v6, 4  ;;  %vm3355_vm10 = vcmask 1045504   ;;  %vm3367_vm11 = vcmask 195584  }
   0xc   :  { %2164 = vmatpush.bf16.msra.mxu2 %v3949_v20  ;;  %vm3357_vm12 = vcmask 1046528  }
   0xe   :  { %4004 = vrot.lane.b32.xlu1 %v4003_v32, %s4309_s21 }
  0x10   :  { %3999 = vrot.lane.b32.xlu0 %v3998_v38, %s4309_s21  ;;  %2165 = vmatpush.bf16.msra.mxu2 %v3948_v40  ;;  %v3955_v40 = vld [vmem:[%s7913_s4 + $0xe0] sm:$0xff] }
  0x16   :  { %4024 = vrot.lane.b32.xlu1 %v4023_v41, %s4309_s21 }
  0x65   :  { %v4010_v42 = vpop.permute.xlu2 %4009 }
  0x66   :  { %v4012_v43 = vunpack.i.h.bf16 %v4010_v42  ;;  %v4011_v44 = vunpack.i.l.bf16 %v4010_v42 }
  0x68   :  { %v4453_v47 = vsel %vm477_vm1, %v34_v22, %v4012_v43  ;;  %v4456_v48 = vsel %vm477_vm1, %v33_v12, %v4011_v44  ;;  %v3934_v22 = vld [vmem:[%s7913_s4 + $0x38] sm:$0xff]  ;;  %v204_v43 = vsel %vm156_vm0, %v105_v18, %v106_v19  ;;  %v207_v44 = vsel %vm156_vm0, %v102_v29, %v103_v30 }
  0x69   :  { %v550_v51 = vrot.slane %v4453_v47, 2  ;;  %v549_v52 = vrot.slane %v4456_v48, 2  ;;  %1825 = vmatpush.bf16.msra.mxu0 %v3934_v22 }
  0x6b   :  { %v662_v59 = vsel %vm606_vm2, %v549_v52, %v550_v51 }
  0x78   :  { %v286_v45 = vpop.permute.xlu1 %285 }
  0x79   :  { %v4463_v54 = vsel %vm477_vm1, %v4354_v1, %v286_v45  ;;  %v208_v45 = vsel %vm156_vm0, %v101_v36, %v102_v29 }
  0x7a   :  { %v3995_v46 = vpop.permute.xlu0 %3994  ;;  %v7921_v8 = vrot.slane %v4463_v54, 2 }
  0x7b   :  { %v3997_v49 = vunpack.i.h.bf16 %v3995_v46  ;;  %v3996_v50 = vunpack.i.l.bf16 %v3995_v46 }
  0x7d   :  { %v4467_v55 = vsel %vm477_vm1, %v4364_v3, %v3997_v49  ;;  %v4471_v56 = vsel %vm477_vm1, %v4359_v2, %v3996_v50  ;;  %v4494_v3 = vld [vmem:[%s7912_s0 + $0x88] sm:$0xff] }
  0x7e   :  { %v544_v10 = vrot.slane %v4467_v55, 2  ;;  %v543_v12 = vrot.slane %v4471_v56, 2  ;;  %v107_v24 = vrot.slane %v4494_v3, 1 }
  0x80   :  { %v4005_v53 = vpop.permute.xlu1 %4004  ;;  %v668_v32 = vsel %vm606_vm2, %v543_v12, %v544_v10  ;;  %v203_v42 = vsel %vm156_vm0, %v106_v19, %v107_v24  ;;  %v4616_v19 = vld [vmem:[%s7912_s0 + $0x98] sm:$0xff] }
  0x81   :  { %v4007_v57 = vunpack.i.h.bf16 %v4005_v53  ;;  %v4006_v63 = vunpack.i.l.bf16 %v4005_v53  ;;  %v4053_v46 = vpack.i.bf16 %v203_v42, %v204_v43  ;;  %v3947_v53 = vld [vmem:[%s7913_s4 + $0xa0] sm:$0xff]  ;;  %v3938_v42 = vld [vmem:[%s7913_s4 + $0x58] sm:$0xff] }
  0x82   :  { %v4000_v58 = vpop.permute.xlu0 %3999  ;;  %2166 = vmatpush.bf16.msra.mxu2 %v3947_v53  ;;  %v3954_v43 = vld [vmem:[%s7913_s4 + $0xd8] sm:$0xff]  ;;  %v3928_v53 = vld [vmem:[%s7913_s4 + $0x8] sm:$0xff] }
  0x83   :  { %v4489_v62 = vsel %vm477_vm1, %v4385_v11, %v4007_v57  ;;  %v4002_v0 = vunpack.i.h.bf16 %v4000_v58  ;;  %v4001_v2 = vunpack.i.l.bf16 %v4000_v58  ;;  %v4536_v25 = vsel %vm477_vm1, %v4379_v9, %v4006_v63 }
  0x84   :  { %v548_v11 = vrot.slane %v4489_v62, 2  ;;  %v669_v9 = vsel %vm606_vm2, %v7921_v8, %v543_v12  ;;  %v547_v41 = vrot.slane %v4536_v25, 2  ;;  %v4033_v57 = vpack.i.bf16 %v207_v44, %v208_v45  ;;  %v3929_v44 = vld [vmem:[%s7913_s4 + $0x10] sm:$0xff] }
  0x85   :  { %v4515_v16 = vsel %vm477_vm1, %v4394_v14, %v4002_v0  ;;  %v4519_v17 = vsel %vm477_vm1, %v4373_v7, %v4001_v2  ;;  %v3946_v0 = vld [vmem:[%s7913_s4 + $0x98] sm:$0xff]  ;;  %v3937_v45 = vld [vmem:[%s7913_s4 + $0x50] sm:$0xff] }
  0x86   :  { %v546_v14 = vrot.slane %v4515_v16, 2  ;;  %v545_v23 = vrot.slane %v4519_v17, 2  ;;  %v663_v7 = vsel %vm606_vm2, %v548_v11, %v549_v52  ;;  %v4578_v52 = vld [vmem:[%s7912_s0 + $0x70] sm:$0xff]  ;;  %v664_v36 = vsel %vm606_vm2, %v547_v41, %v548_v11  ;;  %2167 = vmatpush.bf16.msra.mxu2 %v3946_v0 }
  0x87   :  { %v4038_v28 = vpack.i.bf16 %v662_v59, %v663_v7  ;;  %v104_v59 = vrot.slane %v4578_v52, 1  ;;  %v4611_v11 = vld [vmem:[%s7912_s0 + $0x90] sm:$0xff] }
  0x88   :  { %v667_v31 = vsel %vm606_vm2, %v544_v10, %v545_v23  ;;  %v666_v33 = vsel %vm606_vm2, %v545_v23, %v546_v14  ;;  %v4025_v34 = vpop.permute.xlu1 %4024  ;;  %v108_v22 = vrot.slane %v4611_v11, 1  ;;  %v3944_v23 = vld [vmem:[%s7913_s4 + $0x88] sm:$0xff] }
  0x89   :  { %4039 = vrot.lane.b32.xlu1 %v4038_v28, %s4310_s19  ;;  %v4013_v35 = vpack.i.bf16 %v667_v31, %v668_v32  ;;  %v4018_v37 = vpack.i.bf16 %v669_v9, %v666_v33  ;;  %v4027_v38 = vunpack.i.h.bf16 %v4025_v34  ;;  %v4026_v39 = vunpack.i.l.bf16 %v4025_v34  ;;  %v3958_v31 = vld [vmem:[%s7913_s4 + $0xf8] sm:$0xff]  ;;  %v3933_v32 = vld [vmem:[%s7913_s4 + $0x30] sm:$0xff]  ;;  %v3932_v34 = vld [vmem:[%s7913_s4 + $0x28] sm:$0xff] }
  0x8a   :  { %v205_v10 = vsel %vm156_vm0, %v104_v59, %v105_v18  ;;  %v206_v12 = vsel %vm156_vm0, %v103_v30, %v104_v59  ;;  %v202_v28 = vsel %vm156_vm0, %v107_v24, %v108_v22  ;;  %v3942_v30 = vld [vmem:[%s7913_s4 + $0x78] sm:$0xff]  ;;  %v3943_v24 = vld [vmem:[%s7913_s4 + $0x80] sm:$0xff]  ;;  %2332 = vmatpush.bf16.msra.mxu3 %v3958_v31  ;;  %v3941_v33 = vld [vmem:[%s7913_s4 + $0x70] sm:$0xff]  ;;  %1826 = vmatpush.bf16.msra.mxu0 %v3933_v32 }
  0x8b   :  { %4014 = vrot.lane.b32.xlu2 %v4013_v35, %s4310_s19  ;;  %4019 = vrot.lane.b32.xlu0 %v4018_v37, %s4310_s19  ;;  %v4569_v49 = vsel %vm477_vm1, %v4424_v26, %v4027_v38  ;;  %v4573_v50 = vsel %vm477_vm1, %v4410_v21, %v4026_v39  ;;  %v665_v26 = vsel %vm606_vm2, %v546_v14, %v547_v41  ;;  %v109_v14 = vrot.slane %v4616_v19, 1  ;;  %v3957_v9 = vld [vmem:[%s7913_s4 + $0xf0] sm:$0xff]  ;;  %v3940_v35 = vld [vmem:[%s7913_s4 + $0x68] sm:$0xff] }
  0x8c   :  { %v552_v21 = vrot.slane %v4569_v49, 2  ;;  %v551_v58 = vrot.slane %v4573_v50, 2  ;;  %v4028_v63 = vpack.i.bf16 %v664_v36, %v665_v26  ;;  %v4043_v18 = vpack.i.bf16 %v205_v10, %v206_v12  ;;  %1994 = vmatpush.bf16.msra.mxu1 %v3942_v30  ;;  %v3956_v37 = vld [vmem:[%s7913_s4 + $0xe8] sm:$0xff]  ;;  %v3931_v38 = vld [vmem:[%s7913_s4 + $0x20] sm:$0xff]  ;;  %v3930_v41 = vld [vmem:[%s7913_s4 + $0x18] sm:$0xff] }
  0x8d   :  { %v201_v7 = vsel %vm156_vm0, %v108_v22, %v109_v14  ;;  %v3939_v39 = vld [vmem:[%s7913_s4 + $0x60] sm:$0xff]  ;;  %v3936_v36 = vld [vmem:[%s7913_s4 + $0x48] sm:$0xff] }
  0x8e   :  { %v660_v2 = vsel %vm606_vm2, %v551_v58, %v552_v21  ;;  %v661_v5 = vsel %vm606_vm2, %v550_v51, %v551_v58  ;;  %v3945_v51 = vld [vmem:[%s7913_s4 + $0x90] sm:$0xff]  ;;  %v4063_v29 = vpack.i.bf16 %v201_v7, %v202_v28  ;;  %2333 = vmatpush.bf16.msra.mxu3 %v3957_v9  ;;  %1827 = vmatpush.bf16.msra.mxu0 %v3932_v34  ;;  %v3952_v26 = vld [vmem:[%s7913_s4 + $0xc8] sm:$0xff]  ;;  %v3935_v58 = vld [vmem:[%s7913_s4 + $0x40] sm:$0xff] }
  0x8f   :  { %v4048_v20 = vpack.i.bf16 %v660_v2, %v661_v5  ;;  %2168 = vmatpush.bf16.msra.mxu2 %v3945_v51  ;;  %v3951_v59 = vld [vmem:[%s7913_s4 + $0xc0] sm:$0xff] }
  0x90   :  { %1995 = vmatpush.bf16.msra.mxu1 %v3941_v33 }
  0x91   :  { %4054 = vrot.lane.b32.xlu1 %v4053_v46, %s4309_s21  ;;  %v3953_v46 = vld [vmem:[%s7913_s4 + $0xd0] sm:$0xff] }
  0x92   :  { %2334 = vmatpush.bf16.msra.mxu3 %v3956_v37  ;;  %1828 = vmatpush.bf16.msra.mxu0 %v3931_v38 }
  0x93   :  { %4034 = vrot.lane.b32.xlu0 %v4033_v57, %s4309_s21  ;;  %4029 = vrot.lane.b32.xlu2 %v4028_v63, %s4310_s19  ;;  %v3927_v57 = vld [vmem:[%s7913_s4] sm:$0xff] }
  0x94   :  { %2169 = vmatpush.bf16.msra.mxu2 %v3944_v23  ;;  %1996 = vmatpush.bf16.msra.mxu1 %v3940_v35 }
  0x96   :  { %2335 = vmatpush.bf16.msra.mxu3 %v3955_v40  ;;  %1829 = vmatpush.bf16.msra.mxu0 %v3930_v41 }
  0x98   :  { %2170 = vmatpush.bf16.msra.mxu2 %v3943_v24  ;;  %1997 = vmatpush.bf16.msra.mxu1 %v3939_v39 }
  0x9a   :  { %2336 = vmatpush.bf16.msra.mxu3 %v3954_v43  ;;  %1830 = vmatpush.bf16.msra.mxu0 %v3929_v44  ;;  %v4779_v44 = vld [vmem:[%s7912_s0 + $0xb8] sm:$0xff] }
  0x9b   :  { %4049 = vrot.lane.b32.xlu0 %v4048_v20, %s4310_s19  ;;  %4044 = vrot.lane.b32.xlu2 %v4043_v18, %s4309_s21 }
  0x9c   :  { %1998 = vmatpush.bf16.msra.mxu1 %v3938_v42 }
  0x9e   :  { %2337 = vmatpush.bf16.msra.mxu3 %v3953_v46  ;;  %1831 = vmatpush.bf16.msra.mxu0 %v3928_v53 }
  0xa0   :  { %1999 = vmatpush.bf16.msra.mxu1 %v3937_v45  ;;  %v4784_v45 = vld [vmem:[%s7912_s0 + $0xc0] sm:$0xff] }
  0xa2   :  { %2338 = vmatpush.bf16.msra.mxu3 %v3952_v26  ;;  %1832 = vmatpush.bf16.msra.mxu0 %v3927_v57  ;;  %v4791_v26 = vld [vmem:[%s7912_s0 + $0xc8] sm:$0xff] }
  0xa3   :  { %4064 = vrot.lane.b32.xlu0 %v4063_v29, %s4309_s21 }
  0xa4   :  { %2000 = vmatpush.bf16.msra.mxu1 %v3936_v36 }
  0xa6   :  { %2339 = vmatpush.bf16.msra.mxu3 %v3951_v59 }
  0xa8   :  { %2001 = vmatpush.bf16.msra.mxu1 %v3935_v58 }
  0xe5   :  { %v4015_v63 = vpop.permute.xlu2 %4014 }
  0xe6   :  { %v4017_v0 = vunpack.i.h.bf16 %v4015_v63  ;;  %v4016_v2 = vunpack.i.l.bf16 %v4015_v63 }
  0xe8   :  { %v929_v5 = vsel %vm927_vm3, %v4471_v56, %v4016_v2  ;;  %v4711_v10 = vsel %vm927_vm3, %v4467_v55, %v4017_v0 }
  0xe9   :  { %v4714_v12 = vpack.c.bf16 %v4711_v10, %v929_v5  ;;  %v993_v30 = vrot.slane %v929_v5, 4  ;;  %v994_v55 = vrot.slane %v4711_v10, 4 }
  0xeb   :  { %8026 = vst [vmem:[#allocation2_spill] sm:$0xff] %v4714_v12  ;;  %2171 = vmatmul.bf16.vlgmr.msra.gmra.mxu2 %v4714_v12  ;;  %v1118_v38 = vsel %vm1056_vm4, %v993_v30, %v994_v55 }
  0xed   :  { %v4717_v51 = vpop.permute.xlu2 %4029 }
  0xee   :  { %v4031_v22 = vunpack.i.l.bf16 %v4717_v51  ;;  %v4032_v46 = vunpack.i.h.bf16 %v4717_v51  ;;  %v114_v51 = vrot.slane %v4784_v45, 1 }
  0xf0   :  { %v4738_v33 = vsel %vm927_vm3, %v4515_v16, %v4031_v22 }
  0xf5   :  { %v4045_v18 = vpop.permute.xlu2 %4044 }
  0xf6   :  { %v4046_v23 = vunpack.i.l.bf16 %v4045_v18  ;;  %v4047_v29 = vunpack.i.h.bf16 %v4045_v18 }
  0xf8   :  { %v4730_v32 = vsel %vm477_vm1, %v4511_v15, %v4046_v23  ;;  %v4751_v15 = vsel %vm477_vm1, %v4578_v52, %v4047_v29 }
  0xf9   :  { %v555_v16 = vrot.slane %v4730_v32, 2  ;;  %v556_v53 = vrot.slane %v4751_v15, 2 }
  0xfb   :  { %v4719_v20 = vpop.permute.xlu1 %4039  ;;  %v656_v23 = vsel %vm606_vm2, %v555_v16, %v556_v53 }
  0xfd   :  { %v4020_v7 = vpop.permute.xlu0 %4019 }
  0xfe   :  { %v4022_v28 = vunpack.i.h.bf16 %v4020_v7  ;;  %v4021_v56 = vunpack.i.l.bf16 %v4020_v7  ;;  %v115_v7 = vrot.slane %v4791_v26, 1 }
 0x100   :  { %v4726_v31 = vsel %vm927_vm3, %v4463_v54, %v4022_v28  ;;  %v4734_v24 = vsel %vm927_vm3, %v4519_v17, %v4021_v56  ;;  %v4831_v28 = vld [vmem:[%s7912_s0 + $0xb0] sm:$0xff] }
 0x101   :  { %v7920_v9 = vrot.slane %v4726_v31, 4  ;;  %v4742_v34 = vpack.c.bf16 %v929_v5, %v4726_v31  ;;  %v995_v35 = vrot.slane %v4734_v24, 4  ;;  %v4747_v37 = vpack.c.bf16 %v4738_v33, %v4734_v24 }
 0x102   :  { %v113_v5 = vrot.slane %v4779_v44, 1 }
 0x103   :  { %8027 = vst [vmem:[#allocation3_spill] sm:$0xff] %v4742_v34  ;;  %1833 = vmatmul.bf16.vlgmr.msra.gmra.mxu0 %v4742_v34  ;;  %v4055_v17 = vpop.permute.xlu1 %4054  ;;  %2176 = vmatmul.bf16.gmra.mxu2 %v4747_v37  ;;  %v4762_v39 = vsel %vm1056_vm4, %v7920_v9, %v993_v30  ;;  %v4768_v52 = vsel %vm1056_vm4, %v994_v55, %v995_v35  ;;  %v4041_v30 = vunpack.i.l.bf16 %v4719_v20 }
 0x104   :  { %v4057_v40 = vunpack.i.h.bf16 %v4055_v17  ;;  %v4056_v41 = vunpack.i.l.bf16 %v4055_v17  ;;  %v4771_v42 = vpack.c.bf16 %v1118_v38, %v4762_v39  ;;  %v4774_v43 = vpack.c.bf16 %v4768_v52, %v1118_v38 }
 0x105   :  { %v4035_v36 = vpop.permute.xlu0 %4034 }
 0x106   :  { %8028 = vst [vmem:[#allocation4_spill] sm:$0xff] %v4771_v42  ;;  %v4795_v57 = vsel %vm477_vm1, %v4485_v61, %v4057_v40  ;;  %v4799_v58 = vsel %vm477_vm1, %v4480_v60, %v4056_v41  ;;  %v4037_v59 = vunpack.i.h.bf16 %v4035_v36  ;;  %v4036_v63 = vunpack.i.l.bf16 %v4035_v36  ;;  %2002 = vmatmul.bf16.vlgmr.msra.gmra.mxu1 %v4771_v42  ;;  %2340 = vmatmul.bf16.vlgmr.msra.gmra.mxu3 %v4774_v43  ;;  %v4810_v61 = vld [vmem:[%s7912_s0 + $0xa0] sm:$0xff]  ;;  %v4815_v60 = vld [vmem:[%s7912_s0 + $0xa8] sm:$0xff] }
 0x107   :  { %8029 = vst [vmem:[#allocation5_spill] sm:$0xff] %v4774_v43  ;;  %v558_v0 = vrot.slane %v4795_v57, 2  ;;  %v557_v2 = vrot.slane %v4799_v58, 2  ;;  %v110_v17 = vrot.slane %v4810_v61, 1  ;;  %v111_v38 = vrot.slane %v4815_v60, 1 }
 0x108   :  { %v4819_v18 = vsel %vm477_vm1, %v4506_v13, %v4037_v59  ;;  %v4823_v22 = vsel %vm477_vm1, %v4429_v27, %v4036_v63 }
 0x109   :  { %v554_v56 = vrot.slane %v4819_v18, 2  ;;  %v553_v29 = vrot.slane %v4823_v22, 2  ;;  %v654_v27 = vsel %vm606_vm2, %v557_v2, %v558_v0  ;;  %v655_v13 = vsel %vm606_vm2, %v556_v53, %v557_v2 }
 0x10a   :  { %v4078_v55 = vpack.i.bf16 %v654_v27, %v655_v13  ;;  %v112_v53 = vrot.slane %v4831_v28, 1  ;;  %v933_v27 = vsel %vm927_vm3, %v4536_v25, %v4032_v46  ;;  %v195_v13 = vsel %vm156_vm0, %v114_v51, %v115_v7 }
 0x10b   :  { %v658_v40 = vsel %vm606_vm2, %v553_v29, %v554_v56  ;;  %v659_v41 = vsel %vm606_vm2, %v552_v21, %v553_v29  ;;  %v657_v36 = vsel %vm606_vm2, %v554_v56, %v555_v16  ;;  %v196_v21 = vsel %vm156_vm0, %v113_v5, %v114_v51 }
 0x10c   :  { %4079 = vrot.lane.b32.xlu0 %v4078_v55, %s4310_s19  ;;  %v4058_v59 = vpack.i.bf16 %v658_v40, %v659_v41  ;;  %v4068_v63 = vpack.i.bf16 %v656_v23, %v657_v36  ;;  %v934_v16 = vsel %vm927_vm3, %v4489_v62, %v4041_v30  ;;  %v199_v23 = vsel %vm156_vm0, %v110_v17, %v111_v38 }
 0x10d   :  { %v4854_v2 = vpop.permute.xlu0 %4049  ;;  %v200_v25 = vsel %vm156_vm0, %v109_v14, %v110_v17  ;;  %v197_v46 = vsel %vm156_vm0, %v112_v53, %v113_v5  ;;  %v198_v51 = vsel %vm156_vm0, %v111_v38, %v112_v53  ;;  %v996_v56 = vrot.slane %v4738_v33, 4 }
 0x10e   :  { %4059 = vrot.lane.b32.xlu2 %v4058_v59, %s4310_s19  ;;  %4069 = vrot.lane.b32.xlu1 %v4068_v63, %s4310_s19  ;;  %v997_v29 = vrot.slane %v933_v27, 4  ;;  %v4093_v55 = vpack.i.bf16 %v195_v13, %v196_v21  ;;  %v4881_v62 = vpack.c.bf16 %v4734_v24, %v4711_v10  ;;  %v4883_v30 = vpack.c.bf16 %v934_v16, %v933_v27  ;;  %v4920_v59 = vld [vmem:[%s7912_s0 + $0xd8] sm:$0xff] }
 0x10f   :  { %v4073_v40 = vpack.i.bf16 %v199_v23, %v200_v25  ;;  %v4083_v41 = vpack.i.bf16 %v197_v46, %v198_v51  ;;  %v1116_v14 = vsel %vm1056_vm4, %v995_v35, %v996_v56  ;;  %v4042_v24 = vunpack.i.h.bf16 %v4719_v20  ;;  %v4915_v20 = vld [vmem:[%s7912_s0 + $0xd0] sm:$0xff] }
 0x110   :  { %v1115_v5 = vsel %vm1056_vm4, %v996_v56, %v997_v29  ;;  %v4895_v17 = vpack.c.bf16 %v1116_v14, %v4768_v52  ;;  %v116_v25 = vrot.slane %v4915_v20, 1  ;;  %v117_v46 = vrot.slane %v4920_v59, 1 }
 0x111   :  { %v4897_v38 = vpack.c.bf16 %v1115_v5, %v1116_v14  ;;  %v998_v56 = vrot.slane %v934_v16, 4 }
 0x113   :  { %1838 = vmatmul.bf16.gmra.mxu0 %v4881_v62  ;;  %2181 = vmatmul.bf16.gmra.mxu2 %v4883_v30 }
 0x114   :  { %4094 = vrot.lane.b32.xlu0 %v4093_v55, %s4309_s21 }
 0x115   :  { %v4065_v10 = vpop.permute.xlu0 %4064 }
 0x116   :  { %v4067_v36 = vunpack.i.h.bf16 %v4065_v10  ;;  %v4066_v53 = vunpack.i.l.bf16 %v4065_v10  ;;  %4074 = vrot.lane.b32.xlu2 %v4073_v40, %s4309_s21  ;;  %4084 = vrot.lane.b32.xlu1 %v4083_v41, %s4309_s21  ;;  %v193_v40 = vsel %vm156_vm0, %v116_v25, %v117_v46  ;;  %v4949_v41 = vpack.c.bf16 %v933_v27, %v4738_v33 }
 0x117   :  { %2007 = vmatmul.bf16.gmra.mxu1 %v4895_v17  ;;  %2345 = vmatmul.bf16.gmra.mxu3 %v4897_v38  ;;  %v1114_v10 = vsel %vm1056_vm4, %v997_v29, %v998_v56  ;;  %v4052_v33 = vunpack.i.h.bf16 %v4854_v2 }
 0x118   :  { %v4906_v35 = vsel %vm477_vm1, %v4611_v11, %v4067_v36  ;;  %v4910_v52 = vsel %vm477_vm1, %v4494_v3, %v4066_v53  ;;  %v4051_v11 = vunpack.i.l.bf16 %v4854_v2  ;;  %v935_v3 = vsel %vm927_vm3, %v4456_v48, %v4042_v24 }
 0x119   :  { %v560_v63 = vrot.slane %v4906_v35, 2  ;;  %v559_v13 = vrot.slane %v4910_v52, 2  ;;  %v999_v55 = vrot.slane %v935_v3, 4  ;;  %v4959_v36 = vpack.c.bf16 %v1114_v10, %v1115_v5 }
 0x11a   :  { %v936_v48 = vsel %vm927_vm3, %v4453_v47, %v4051_v11 }
 0x11b   :  { %v652_v21 = vsel %vm606_vm2, %v559_v13, %v560_v63  ;;  %v653_v23 = vsel %vm606_vm2, %v558_v0, %v559_v13  ;;  %v194_v0 = vsel %vm156_vm0, %v115_v7, %v116_v25  ;;  %v4951_v14 = vpack.c.bf16 %v936_v48, %v935_v3 }
 0x11c   :  { %v4088_v51 = vpack.i.bf16 %v652_v21, %v653_v23  ;;  %v1113_v47 = vsel %vm1056_vm4, %v998_v56, %v999_v55  ;;  %v4103_v24 = vpack.i.bf16 %v193_v40, %v194_v0  ;;  %v937_v7 = vsel %vm927_vm3, %v4573_v50, %v4052_v33 }
 0x11d   :  { %v4961_v53 = vpack.c.bf16 %v1113_v47, %v1114_v10  ;;  %v1000_v27 = vrot.slane %v936_v48, 4  ;;  %v1001_v29 = vrot.slane %v937_v7, 4  ;;  %v4969_v13 = vpack.c.bf16 %v935_v3, %v934_v16 }
 0x11e   :  { %4089 = vrot.lane.b32.xlu2 %v4088_v51, %s4310_s19  ;;  %v4982_v50 = vpack.c.bf16 %v937_v7, %v936_v48 }
 0x11f   :  { %v1112_v5 = vsel %vm1056_vm4, %v999_v55, %v1000_v27  ;;  %v1111_v11 = vsel %vm1056_vm4, %v1000_v27, %v1001_v29 }
 0x120   :  { %v4976_v2 = vpack.c.bf16 %v1112_v5, %v1113_v47  ;;  %v4978_v21 = vpack.c.bf16 %v1111_v11, %v1112_v5  ;;  %v5021_v5 = vld [vmem:[%s7912_s0 + $0xe8] sm:$0xff] }
 0x122   :  { %8030 = vst [vmem:[#allocation6_spill] sm:$0xff] %v4976_v2 }
 0x123   :  { %1843 = vmatmul.bf16.gmra.mxu0 %v4949_v41  ;;  %2186 = vmatmul.bf16.gmra.mxu2 %v4951_v14  ;;  %8031 = vst [vmem:[#allocation7_spill] sm:$0xff] %v4978_v21 }
 0x126   :  { %4104 = vrot.lane.b32.xlu2 %v4103_v24, %s4309_s21 }
 0x127   :  { %2012 = vmatmul.bf16.gmra.mxu1 %v4959_v36  ;;  %2350 = vmatmul.bf16.gmra.mxu3 %v4961_v53 }
 0x133   :  { %1848 = vmatmul.bf16.gmra.mxu0 %v4969_v13 }
 0x137   :  { %2017 = vmatmul.bf16.gmra.mxu1 %v4976_v2  ;;  %2355 = vmatmul.bf16.gmra.mxu3 %v4978_v21 }
 0x143   :  { %1853 = vmatmul.bf16.gmra.mxu0 %v4982_v50 }
 0x168   :  { %v4060_v16 = vpop.permute.xlu2 %4059 }
 0x169   :  { %v4062_v3 = vunpack.i.h.bf16 %v4060_v16  ;;  %v4061_v23 = vunpack.i.l.bf16 %v4060_v16 }
 0x16b   :  { %v938_v25 = vsel %vm927_vm3, %v4569_v49, %v4061_v23  ;;  %v939_v51 = vsel %vm927_vm3, %v4823_v22, %v4062_v3  ;;  %v7923_v23 = vrot.slane %v5021_v5, 1 }
 0x16c   :  { %v1002_v56 = vrot.slane %v938_v25, 4  ;;  %v1003_v55 = vrot.slane %v939_v51, 4  ;;  %v4989_v40 = vpack.c.bf16 %v939_v51, %v938_v25  ;;  %v4991_v0 = vpack.c.bf16 %v938_v25, %v937_v7 }
 0x16e   :  { %8032 = vst [vmem:[#allocation8_spill] sm:$0xff] %v4989_v40  ;;  %1858 = vmatmul.bf16.gmra.mxu0 %v4989_v40  ;;  %2191 = vmatmul.bf16.gmra.mxu2 %v4991_v0  ;;  %v1110_v48 = vsel %vm1056_vm4, %v1001_v29, %v1002_v56  ;;  %v1109_v10 = vsel %vm1056_vm4, %v1002_v56, %v1003_v55  ;;  %v5016_v29 = vld [vmem:[%s7912_s0 + $0xe0] sm:$0xff] }
 0x16f   :  { %8033 = vst [vmem:[#allocation9_spill] sm:$0xff] %v4991_v0  ;;  %v4999_v49 = vpack.c.bf16 %v1110_v48, %v1111_v11  ;;  %v5001_v47 = vpack.c.bf16 %v1109_v10, %v1110_v48  ;;  %v118_v3 = vrot.slane %v5016_v29, 1 }
 0x170   :  { %v4075_v22 = vpop.permute.xlu2 %4074 }
 0x171   :  { %8034 = vst [vmem:[#allocation10_spill] sm:$0xff] %v4999_v49  ;;  %v4077_v24 = vunpack.i.h.bf16 %v4075_v22  ;;  %v4076_v33 = vunpack.i.l.bf16 %v4075_v22  ;;  %2022 = vmatmul.bf16.gmra.mxu1 %v4999_v49  ;;  %2360 = vmatmul.bf16.gmra.mxu3 %v5001_v47  ;;  %v191_v48 = vsel %vm156_vm0, %v118_v3, %v7923_v23  ;;  %v192_v22 = vsel %vm156_vm0, %v117_v46, %v118_v3 }
 0x172   :  { %8035 = vst [vmem:[#allocation11_spill] sm:$0xff] %v5001_v47 }
 0x173   :  { %v5007_v7 = vsel %vm477_vm1, %v4810_v61, %v4077_v24  ;;  %v5011_v27 = vsel %vm477_vm1, %v4616_v19, %v4076_v33  ;;  %v4113_v24 = vpack.i.bf16 %v191_v48, %v192_v22 }
 0x174   :  { %v7924_v11 = vrot.slane %v5007_v7, 2  ;;  %v561_v16 = vrot.slane %v5011_v27, 2 }
 0x176   :  { %v650_v19 = vsel %vm606_vm2, %v561_v16, %v7924_v11  ;;  %v651_v61 = vsel %vm606_vm2, %v560_v63, %v561_v16  ;;  %v2172_v63 = vpop.f32.mrf.mxu2  ;;  %v1377_v16 = vld [vmem:[%s7914_s1] sm:$0xff] }
 0x177   :  { %v4098_v25 = vpack.i.bf16 %v650_v19, %v651_v61 }
 0x178   :  { %v5035_v56 = vpop.permute.xlu2 %4089 }
 0x179   :  { %4099 = vrot.lane.b32.xlu1 %v4098_v25, %s4310_s19 }
 0x17e   :  { %v5046_v33 = vpop.permute.xlu0 %4079 }
 0x180   :  { %v1834_v19 = vpop.f32.mrf.mxu0  ;;  %v4070_v61 = vpop.permute.xlu1 %4069 }
 0x181   :  { %v1835_v25 = vadd.f32 %v1834_v19, %v1377_v16  ;;  %v4072_v9 = vunpack.i.h.bf16 %v4070_v61  ;;  %v4071_v8 = vunpack.i.l.bf16 %v4070_v61  ;;  %4114 = vrot.lane.b32.xlu1 %v4113_v24, %s4309_s21  ;;  %v4105_v4 = vpop.permute.xlu2 %4104 }
 0x182   :  { %v4107_v23 = vunpack.i.h.bf16 %v4105_v4  ;;  %v4106_v11 = vunpack.i.l.bf16 %v4105_v4  ;;  %v4081_v4 = vunpack.i.l.bf16 %v5046_v33 }
 0x183   :  { %v2003_v43 = vpop.f32.mrf.mxu1  ;;  %v940_v46 = vsel %vm927_vm3, %v4819_v18, %v4071_v8  ;;  %v5056_v3 = vsel %vm927_vm3, %v4730_v32, %v4072_v9  ;;  %v5072_v32 = vpop.f32.mrf.mxu2 }
 0x184   :  { %v2004_v48 = vadd.f32 %v2003_v43, %v1835_v25  ;;  %v5060_v22 = vsel %vm477_vm1, %v4915_v20, %v4107_v23  ;;  %v5064_v16 = vsel %vm477_vm1, %v4791_v26, %v4106_v11  ;;  %v1004_v24 = vrot.slane %v940_v46, 4  ;;  %8037 = vst [vmem:[#allocation13_spill] sm:$0xff] %v5072_v32 }
 0x185   :  { %v567_v19 = vrot.slane %v5064_v16, 2  ;;  %v7926_v8 = vrot.slane %v5056_v3, 4  ;;  %v5070_v18 = vpack.c.bf16 %v5056_v3, %v940_v46  ;;  %v5074_v43 = vpack.c.bf16 %v940_v46, %v939_v51  ;;  %v5102_v46 = vld [vmem:[%s7912_s0 + $0x110] sm:$0xff] }
 0x186   :  { %v4095_v9 = vpop.permute.xlu0 %4094  ;;  %v1108_v20 = vsel %vm1056_vm4, %v1003_v55, %v1004_v24  ;;  %v2173_v26 = vadd.f32 %v2172_v63, %v2004_v48  ;;  %v5107_v48 = vld [vmem:[%s7912_s0 + $0x118] sm:$0xff]  ;;  %v8042_v42 = vrot.slane %v5060_v22, 2 }
 0x187   :  { %8036 = vst [vmem:[#allocation12_spill] sm:$0xff] %v5070_v18  ;;  %v4097_v11 = vunpack.i.h.bf16 %v4095_v9  ;;  %v4096_v23 = vunpack.i.l.bf16 %v4095_v9  ;;  %1863 = vmatmul.bf16.gmra.mxu0 %v5070_v18  ;;  %v5079_v61 = vpack.c.bf16 %v1108_v20, %v1109_v10  ;;  %v5085_v25 = vsel %vm1056_vm4, %v1004_v24, %v7926_v8  ;;  %2196 = vmatmul.bf16.gmra.mxu2 %v5074_v43  ;;  %v5097_v10 = vld [vmem:[%s7912_s0 + $0x108] sm:$0xff] }
 0x188   :  { %8038 = vst [vmem:[#allocation14_spill] sm:$0xff] %v5074_v43  ;;  %v5089_v51 = vpop.f32.mrf.mxu0  ;;  %v4085_v55 = vpop.permute.xlu1 %4084  ;;  %v5092_v63 = vpack.c.bf16 %v5085_v25, %v1108_v20  ;;  %v644_v12 = vsel %vm606_vm2, %v567_v19, %v8042_v42  ;;  %v8046_v40 = vrot.slane %v5107_v48, 1 }
 0x189   :  { %8039 = vst [vmem:[#allocation15_spill] sm:$0xff] %v5079_v61  ;;  %v5111_v24 = vsel %vm477_vm1, %v4784_v45, %v4097_v11  ;;  %v5115_v9 = vsel %vm477_vm1, %v4779_v44, %v4096_v23  ;;  %v4087_v20 = vunpack.i.h.bf16 %v4085_v55  ;;  %2027 = vmatmul.bf16.gmra.mxu1 %v5079_v61  ;;  %v2341_v8 = vpop.f32.mrf.mxu3  ;;  %v123_v23 = vrot.slane %v5097_v10, 1 }
 0x18a   :  { %8040 = vst [vmem:[#allocation16_spill] sm:$0xff] %v5089_v51  ;;  %v566_v34 = vrot.slane %v5111_v24, 2  ;;  %v565_v32 = vrot.slane %v5115_v9, 2  ;;  %v4086_v51 = vunpack.i.l.bf16 %v4085_v55  ;;  %v5124_v45 = vadd.f32 %v2341_v8, %v2173_v26  ;;  %2365 = vmatmul.bf16.gmra.mxu3 %v5092_v63  ;;  %v5139_v55 = vld [vmem:[%s7912_s0 + $0xf0] sm:$0xff]  ;;  %v5144_v8 = vld [vmem:[%s7912_s0 + $0xf8] sm:$0xff] }
 0x18b   :  { %8041 = vst [vmem:[#allocation17_spill] sm:$0xff] %v5092_v63  ;;  %v5129_v44 = vsel %vm477_vm1, %v4831_v28, %v4087_v20  ;;  %v5131_v11 = vpop.f32.mrf.mxu1  ;;  %v124_v61 = vrot.slane %v5102_v46, 1  ;;  %v4082_v28 = vunpack.i.h.bf16 %v5046_v33  ;;  %v2177_v43 = vpop.f32.mrf.mxu2  ;;  %v1379_v33 = vld [vmem:[%s7914_s1 + $0x10] sm:$0xff] }
 0x18c   :  { %8043 = vst [vmem:[#allocation18_spill] sm:$0xff] %v5124_v45  ;;  %v564_v26 = vrot.slane %v5129_v44, 2  ;;  %v5150_v20 = vsel %vm477_vm1, %v4815_v60, %v4086_v51  ;;  %v645_v42 = vsel %vm606_vm2, %v566_v34, %v567_v19  ;;  %v646_v63 = vsel %vm606_vm2, %v565_v32, %v566_v34 }
 0x18d   :  { %8044 = vst [vmem:[#allocation19_spill] sm:$0xff] %v5131_v11  ;;  %v563_v11 = vrot.slane %v5150_v20, 2  ;;  %v4128_v45 = vpack.i.bf16 %v644_v12, %v645_v42  ;;  %v942_v60 = vsel %vm927_vm3, %v4751_v15, %v4081_v4  ;;  %v120_v51 = vrot.slane %v5139_v55, 1  ;;  %v5169_v12 = vld [vmem:[%s7912_s0 + $0x100] sm:$0xff] }
 0x18e   :  { %v647_v18 = vsel %vm606_vm2, %v564_v26, %v565_v32  ;;  %v121_v19 = vrot.slane %v5144_v8, 1  ;;  %v8045_v32 = vrot.slane %v5007_v7, 2  ;;  %v122_v4 = vrot.slane %v5169_v12, 1 }
 0x18f   :  { %4129 = vrot.lane.b32.xlu1 %v4128_v45, %s4310_s19  ;;  %v4118_v34 = vpack.i.bf16 %v646_v63, %v647_v18  ;;  %v648_v42 = vsel %vm606_vm2, %v563_v11, %v564_v26  ;;  %v943_v0 = vsel %vm927_vm3, %v4799_v58, %v4082_v28  ;;  %v185_v18 = vsel %vm156_vm0, %v124_v61, %v8046_v40 }
 0x190   :  { %v649_v15 = vsel %vm606_vm2, %v8045_v32, %v563_v11  ;;  %v1839_v47 = vpop.f32.mrf.mxu0  ;;  %v186_v63 = vsel %vm156_vm0, %v123_v23, %v124_v61  ;;  %v1006_v11 = vrot.slane %v942_v60, 4  ;;  %v188_v58 = vsel %vm156_vm0, %v121_v19, %v122_v4 }
 0x191   :  { %v4108_v49 = vpack.i.bf16 %v648_v42, %v649_v15  ;;  %v1840_v45 = vadd.f32 %v1839_v47, %v1379_v33  ;;  %v5187_v26 = vpop.f32.mrf.mxu3  ;;  %4119 = vrot.lane.b32.xlu2 %v4118_v34, %s4310_s19  ;;  %v187_v42 = vsel %vm156_vm0, %v122_v4, %v123_v23  ;;  %v1007_v28 = vrot.slane %v943_v0, 4 }
 0x192   :  { %8047 = vst [vmem:[#allocation20_spill] sm:$0xff] %v5187_v26  ;;  %v4143_v32 = vpack.i.bf16 %v185_v18, %v186_v63  ;;  %v189_v40 = vsel %vm156_vm0, %v120_v51, %v121_v19  ;;  %v8048_v47 = vrot.slane %v5021_v5, 1  ;;  %v5205_v15 = vpack.c.bf16 %v943_v0, %v942_v60 }
 0x193   :  { %4109 = vrot.lane.b32.xlu0 %v4108_v49, %s4310_s19  ;;  %v8049_v49 = vrot.slane %v5056_v3, 4  ;;  %v4133_v4 = vpack.i.bf16 %v187_v42, %v188_v58  ;;  %v5208_v18 = vpack.c.bf16 %v942_v60, %v5056_v3  ;;  %v1381_v58 = vld [vmem:[%s7914_s1 + $0x20] sm:$0xff] }
 0x194   :  { %v190_v61 = vsel %vm156_vm0, %v8048_v47, %v120_v51  ;;  %v2008_v33 = vpop.f32.mrf.mxu1  ;;  %8050 = vst [vmem:[#allocation21_spill] sm:$0xff] %v5205_v15  ;;  %v1105_v47 = vsel %vm1056_vm4, %v1006_v11, %v1007_v28 }
 0x195   :  { %v1106_v34 = vsel %vm1056_vm4, %v8049_v49, %v1006_v11  ;;  %v2009_v23 = vadd.f32 %v2008_v33, %v1840_v45  ;;  %8051 = vst [vmem:[#allocation22_spill] sm:$0xff] %v5208_v18  ;;  %v4123_v63 = vpack.i.bf16 %v189_v40, %v190_v61  ;;  %v5217_v49 = vpop.f32.mrf.mxu2  ;;  %v4092_v11 = vunpack.i.h.bf16 %v5035_v56 }
 0x196   :  { %v5213_v51 = vpack.c.bf16 %v1106_v34, %v5085_v25  ;;  %8053 = vst [vmem:[#allocation24_spill] sm:$0xff] %v5217_v49  ;;  %v5222_v3 = vpack.c.bf16 %v1105_v47, %v1106_v34 }
 0x197   :  { %1868 = vmatmul.bf16.gmra.mxu0 %v5205_v15  ;;  %4144 = vrot.lane.b32.xlu1 %v4143_v32, %s4309_s21  ;;  %v2178_v19 = vadd.f32 %v2177_v43, %v2009_v23  ;;  %v4091_v43 = vunpack.i.l.bf16 %v5035_v56  ;;  %v945_v61 = vsel %vm927_vm3, %v4910_v52, %v4092_v11 }
 0x198   :  { %8052 = vst [vmem:[#allocation23_spill] sm:$0xff] %v5213_v51  ;;  %2201 = vmatmul.bf16.gmra.mxu2 %v5208_v18  ;;  %v5220_v45 = vpop.f32.mrf.mxu0 }
 0x199   :  { %8054 = vst [vmem:[#allocation25_spill] sm:$0xff] %v5220_v45  ;;  %2032 = vmatmul.bf16.gmra.mxu1 %v5213_v51  ;;  %4134 = vrot.lane.b32.xlu2 %v4133_v4, %s4309_s21  ;;  %v944_v32 = vsel %vm927_vm3, %v4795_v57, %v4091_v43 }
 0x19a   :  { %8055 = vst [vmem:[#allocation26_spill] sm:$0xff] %v5222_v3  ;;  %v2346_v25 = vpop.f32.mrf.mxu3  ;;  %2370 = vmatmul.bf16.gmra.mxu3 %v5222_v3  ;;  %v1008_v4 = vrot.slane %v944_v32, 4  ;;  %v5245_v49 = vpack.c.bf16 %v945_v61, %v944_v32  ;;  %v1389_v3 = vld [vmem:[%s7914_s1 + $0x60] sm:$0xff] }
 0x19b   :  { %4124 = vrot.lane.b32.xlu0 %v4123_v63, %s4309_s21  ;;  %v5229_v60 = vadd.f32 %v2346_v25, %v2178_v19  ;;  %v1009_v63 = vrot.slane %v945_v61, 4 }
 0x19c   :  { %v5232_v42 = vpop.f32.mrf.mxu1  ;;  %v1104_v19 = vsel %vm1056_vm4, %v1007_v28, %v1008_v4  ;;  %8059 = vst [vmem:[#allocation30_spill] sm:$0xff] %v5245_v49 }
 0x19d   :  { %8056 = vst [vmem:[#allocation27_spill] sm:$0xff] %v5229_v60  ;;  %v2182_v34 = vpop.f32.mrf.mxu2  ;;  %v5250_v57 = vpack.c.bf16 %v1104_v19, %v1105_v47  ;;  %v1103_v43 = vsel %vm1056_vm4, %v1008_v4, %v1009_v63 }
 0x19e   :  { %8057 = vst [vmem:[#allocation28_spill] sm:$0xff] %v5232_v42  ;;  %v5247_v42 = vpack.c.bf16 %v944_v32, %v943_v0 }
 0x19f   :  { %8061 = vst [vmem:[#allocation32_spill] sm:$0xff] %v5250_v57 }
 0x1a0   :  { %v1844_v40 = vpop.f32.mrf.mxu0  ;;  %8060 = vst [vmem:[#allocation31_spill] sm:$0xff] %v5247_v42 }
 0x1a1   :  { %v1845_v33 = vadd.f32 %v1844_v40, %v1381_v58  ;;  %v5257_v58 = vpack.c.bf16 %v1103_v43, %v1104_v19  ;;  %v1383_v40 = vld [vmem:[%s7914_s1 + $0x30] sm:$0xff] }
 0x1a2   :  { %v5241_v23 = vpop.f32.mrf.mxu3 }
 0x1a3   :  { %8058 = vst [vmem:[#allocation29_spill] sm:$0xff] %v5241_v23 }
 0x1a4   :  { %v2013_v56 = vpop.f32.mrf.mxu1  ;;  %8063 = vst [vmem:[#allocation34_spill] sm:$0xff] %v5257_v58 }
 0x1a5   :  { %v2014_v25 = vadd.f32 %v2013_v56, %v1845_v33  ;;  %v5263_v32 = vpop.f32.mrf.mxu2 }
 0x1a6   :  { %8065 = vst [vmem:[#allocation36_spill] sm:$0xff] %v5263_v32 }
 0x1a7   :  { %1873 = vmatmul.bf16.gmra.mxu0 %v5245_v49  ;;  %v2183_v52 = vadd.f32 %v2182_v34, %v2014_v25 }
 0x1a8   :  { %2206 = vmatmul.bf16.gmra.mxu2 %v5247_v42  ;;  %v5255_v11 = vpop.f32.mrf.mxu0 }
 0x1a9   :  { %8062 = vst [vmem:[#allocation33_spill] sm:$0xff] %v5255_v11  ;;  %2037 = vmatmul.bf16.gmra.mxu1 %v5250_v57  ;;  %v5476_v57 = vld [vmem:[%s7912_s0 + $0x130] sm:$0xff] }
 0x1aa   :  { %v2351_v28 = vpop.f32.mrf.mxu3  ;;  %2375 = vmatmul.bf16.gmra.mxu3 %v5257_v58  ;;  %v5458_v58 = vld [vmem:[%s7912_s0 + $0x140] sm:$0xff] }
 0x1ab   :  { %v5261_v0 = vadd.f32 %v2351_v28, %v2183_v52 }
 0x1ac   :  { %v5265_v47 = vpop.f32.mrf.mxu1 }
 0x1ad   :  { %8064 = vst [vmem:[#allocation35_spill] sm:$0xff] %v5261_v0  ;;  %v2187_v25 = vpop.f32.mrf.mxu2 }
 0x1ae   :  { %8066 = vst [vmem:[#allocation37_spill] sm:$0xff] %v5265_v47  ;;  %v1385_v47 = vld [vmem:[%s7914_s1 + $0x40] sm:$0xff] }
 0x1b0   :  { %v1849_v33 = vpop.f32.mrf.mxu0 }
 0x1b1   :  { %v1850_v34 = vadd.f32 %v1849_v33, %v1383_v40 }
 0x1b2   :  { %v5270_v4 = vpop.f32.mrf.mxu3 }
 0x1b3   :  { %8067 = vst [vmem:[#allocation38_spill] sm:$0xff] %v5270_v4 }
 0x1b4   :  { %v2018_v56 = vpop.f32.mrf.mxu1 }
 0x1b5   :  { %v2019_v19 = vadd.f32 %v2018_v56, %v1850_v34  ;;  %v5278_v32 = vpop.f32.mrf.mxu2 }
 0x1b6   :  { %8071 = vst [vmem:[#allocation42_spill] sm:$0xff] %v5278_v32 }
 0x1b7   :  { %v2188_v11 = vadd.f32 %v2187_v25, %v2019_v19 }
 0x1b8   :  { %v5274_v52 = vpop.f32.mrf.mxu0 }
 0x1b9   :  { %8069 = vst [vmem:[#allocation40_spill] sm:$0xff] %v5274_v52 }
 0x1ba   :  { %v2356_v23 = vpop.f32.mrf.mxu3 }
 0x1bb   :  { %v5272_v45 = vadd.f32 %v2356_v23, %v2188_v11 }
 0x1bc   :  { %v5276_v28 = vpop.f32.mrf.mxu1 }
 0x1bd   :  { %8068 = vst [vmem:[#allocation39_spill] sm:$0xff] %v5272_v45 }
 0x1be   :  { %8070 = vst [vmem:[#allocation41_spill] sm:$0xff] %v5276_v28 }
 0x1c0   :  { %v1854_v40 = vpop.f32.mrf.mxu0 }
 0x1c1   :  { %v1855_v19 = vadd.f32 %v1854_v40, %v1385_v47 }
 0x1c2   :  { %v5283_v4 = vpop.f32.mrf.mxu3 }
 0x1c3   :  { %8072 = vst [vmem:[#allocation43_spill] sm:$0xff] %v5283_v4 }
 0x1eb   :  { %v4100_v33 = vpop.permute.xlu1 %4099 }
 0x1ec   :  { %v4102_v34 = vunpack.i.h.bf16 %v4100_v33  ;;  %v4101_v56 = vunpack.i.l.bf16 %v4100_v33 }
 0x1ee   :  { %v2023_v25 = vpop.f32.mrf.mxu1  ;;  %v946_v23 = vsel %vm927_vm3, %v4906_v35, %v4101_v56  ;;  %v5289_v11 = vsel %vm927_vm3, %v5011_v27, %v4102_v34  ;;  %v5312_v56 = vpop.f32.mrf.mxu0 }
 0x1ef   :  { %v2024_v32 = vadd.f32 %v2023_v25, %v1855_v19  ;;  %v1010_v28 = vrot.slane %v946_v23, 4  ;;  %v7938_v52 = vrot.slane %v5289_v11, 4  ;;  %v5293_v45 = vpack.c.bf16 %v5289_v11, %v946_v23  ;;  %8077 = vst [vmem:[#allocation48_spill] sm:$0xff] %v5312_v56 }
 0x1f0   :  { %v5295_v0 = vpack.c.bf16 %v946_v23, %v945_v61  ;;  %v5329_v23 = vld [vmem:[%s7912_s0 + $0x120] sm:$0xff] }
 0x1f1   :  { %8073 = vst [vmem:[#allocation44_spill] sm:$0xff] %v5293_v45  ;;  %1878 = vmatmul.bf16.gmra.mxu0 %v5293_v45  ;;  %v2192_v47 = vpop.f32.mrf.mxu2  ;;  %v1102_v40 = vsel %vm1056_vm4, %v1009_v63, %v1010_v28  ;;  %v5304_v35 = vsel %vm1056_vm4, %v1010_v28, %v7938_v52 }
 0x1f2   :  { %8074 = vst [vmem:[#allocation45_spill] sm:$0xff] %v5295_v0  ;;  %v2193_v27 = vadd.f32 %v2192_v47, %v2024_v32  ;;  %2211 = vmatmul.bf16.gmra.mxu2 %v5295_v0  ;;  %v5307_v33 = vpack.c.bf16 %v1102_v40, %v1103_v43  ;;  %v5310_v61 = vpack.c.bf16 %v5304_v35, %v1102_v40  ;;  %v5334_v47 = vld [vmem:[%s7912_s0 + $0x128] sm:$0xff] }
 0x1f3   :  { %v4115_v34 = vpop.permute.xlu1 %4114 }
 0x1f4   :  { %8075 = vst [vmem:[#allocation46_spill] sm:$0xff] %v5307_v33  ;;  %v4117_v19 = vunpack.i.h.bf16 %v4115_v34  ;;  %v4116_v25 = vunpack.i.l.bf16 %v4115_v34  ;;  %2042 = vmatmul.bf16.gmra.mxu1 %v5307_v33  ;;  %v2361_v63 = vpop.f32.mrf.mxu3  ;;  %2380 = vmatmul.bf16.gmra.mxu3 %v5310_v61  ;;  %v8079_v34 = vrot.slane %v5060_v22, 2 }
 0x1f5   :  { %8076 = vst [vmem:[#allocation47_spill] sm:$0xff] %v5310_v61  ;;  %v5316_v28 = vadd.f32 %v2361_v63, %v2193_v27  ;;  %v7941_v63 = vrot.slane %v5334_v47, 1 }
 0x1f6   :  { %v5320_v32 = vsel %vm477_vm1, %v5016_v29, %v4117_v19  ;;  %v5324_v43 = vsel %vm477_vm1, %v4920_v59, %v4116_v25  ;;  %v5338_v29 = vpop.permute.xlu2 %4119  ;;  %v126_v25 = vrot.slane %v5329_v23, 1  ;;  %v1859_v56 = vpop.f32.mrf.mxu0 }
 0x1f7   :  { %8078 = vst [vmem:[#allocation49_spill] sm:$0xff] %v5316_v28  ;;  %v7939_v40 = vrot.slane %v5320_v32, 2  ;;  %v569_v27 = vrot.slane %v5324_v43, 2  ;;  %v5359_v26 = vpop.f32.mrf.mxu1  ;;  %v8093_v15 = vrot.slane %v5320_v32, 2 }
 0x1f8   :  { %v183_v4 = vsel %vm156_vm0, %v126_v25, %v7941_v63  ;;  %8081 = vst [vmem:[#allocation50_spill] sm:$0xff] %v5359_v26 }
 0x1f9   :  { %v642_v59 = vsel %vm606_vm2, %v569_v27, %v7939_v40  ;;  %v643_v19 = vsel %vm606_vm2, %v8079_v34, %v569_v27  ;;  %v8080_v40 = vrot.slane %v5107_v48, 1 }
 0x1fa   :  { %v4138_v52 = vpack.i.bf16 %v642_v59, %v643_v19  ;;  %v5366_v19 = vpop.f32.mrf.mxu2 }
 0x1fb   :  { %v184_v28 = vsel %vm156_vm0, %v8080_v40, %v126_v25  ;;  %8082 = vst [vmem:[#allocation51_spill] sm:$0xff] %v5366_v19 }
 0x1fc   :  { %4139 = vrot.lane.b32.xlu0 %v4138_v52, %s4310_s19  ;;  %v4153_v27 = vpack.i.bf16 %v183_v4, %v184_v28  ;;  %v1387_v52 = vld [vmem:[%s7914_s1 + $0x50] sm:$0xff]  ;;  %v5369_v33 = vpop.f32.mrf.mxu3 }
 0x1fd   :  { %v1860_v63 = vadd.f32 %v1859_v56, %v1387_v52  ;;  %8083 = vst [vmem:[#allocation52_spill] sm:$0xff] %v5369_v33 }
 0x1fe   :  { %v4135_v60 = vpop.permute.xlu2 %4134  ;;  %v5371_v4 = vpop.f32.mrf.mxu0 }
 0x1ff   :  { %v4136_v59 = vunpack.i.l.bf16 %v4135_v60  ;;  %v4137_v26 = vunpack.i.h.bf16 %v4135_v60  ;;  %8084 = vst [vmem:[#allocation53_spill] sm:$0xff] %v5371_v4 }
 0x201   :  { %v5361_v34 = vpop.permute.xlu1 %4129  ;;  %v5375_v0 = vsel %vm477_vm1, %v5144_v8, %v4136_v59  ;;  %v5392_v8 = vsel %vm477_vm1, %v5169_v12, %v4137_v26  ;;  %v4122_v12 = vunpack.i.h.bf16 %v5338_v29 }
 0x204   :  { %4154 = vrot.lane.b32.xlu0 %v4153_v27, %s4309_s21 }
 0x205   :  { %v4110_v61 = vpop.permute.xlu0 %4109 }
 0x206   :  { %v4112_v40 = vunpack.i.h.bf16 %v4110_v61  ;;  %v4111_v25 = vunpack.i.l.bf16 %v4110_v61  ;;  %v2028_v28 = vpop.f32.mrf.mxu1 }
 0x207   :  { %v2029_v45 = vadd.f32 %v2028_v28, %v1860_v63 }
 0x208   :  { %v948_v19 = vsel %vm927_vm3, %v5007_v7, %v4111_v25  ;;  %v5381_v27 = vsel %vm927_vm3, %v5150_v20, %v4112_v40  ;;  %v573_v7 = vrot.slane %v5375_v0, 2  ;;  %v8087_v20 = vrot.slane %v5289_v11, 4 }
 0x209   :  { %v1012_v56 = vrot.slane %v948_v19, 4  ;;  %v7945_v52 = vrot.slane %v5381_v27, 4  ;;  %v5385_v60 = vpack.c.bf16 %v5381_v27, %v948_v19  ;;  %v5388_v61 = vpack.c.bf16 %v948_v19, %v5289_v11  ;;  %v4145_v4 = vpop.permute.xlu1 %4144  ;;  %v5417_v11 = vld [vmem:[%s7912_s0 + $0x148] sm:$0xff] }
 0x20a   :  { %v4147_v63 = vunpack.i.h.bf16 %v4145_v4  ;;  %v4146_v59 = vunpack.i.l.bf16 %v4145_v4  ;;  %v2197_v26 = vpop.f32.mrf.mxu2 }
 0x20b   :  { %8085 = vst [vmem:[#allocation54_spill] sm:$0xff] %v5385_v60  ;;  %1883 = vmatmul.bf16.gmra.mxu0 %v5385_v60  ;;  %2216 = vmatmul.bf16.gmra.mxu2 %v5388_v61  ;;  %v1100_v40 = vsel %vm1056_vm4, %v8087_v20, %v1012_v56  ;;  %v5405_v19 = vsel %vm1056_vm4, %v1012_v56, %v7945_v52  ;;  %v574_v20 = vrot.slane %v5392_v8, 2 }
 0x20c   :  { %8086 = vst [vmem:[#allocation55_spill] sm:$0xff] %v5388_v61  ;;  %v5409_v25 = vpack.c.bf16 %v1100_v40, %v5304_v35  ;;  %v5412_v4 = vpack.c.bf16 %v5405_v19, %v1100_v40  ;;  %v5421_v28 = vsel %vm477_vm1, %v5102_v46, %v4147_v63  ;;  %v5425_v56 = vsel %vm477_vm1, %v5097_v10, %v4146_v59  ;;  %v5431_v40 = vld [vmem:[%s7912_s0 + $0x150] sm:$0xff]  ;;  %v5440_v10 = vld [vmem:[%s7912_s0 + $0x158] sm:$0xff]  ;;  %v1864_v59 = vpop.f32.mrf.mxu0 }
 0x20d   :  { %v2198_v35 = vadd.f32 %v2197_v26, %v2029_v45  ;;  %v4125_v52 = vpop.permute.xlu0 %4124  ;;  %v575_v61 = vrot.slane %v5425_v56, 2  ;;  %v2366_v63 = vpop.f32.mrf.mxu3  ;;  %v4121_v45 = vunpack.i.l.bf16 %v5338_v29 }
 0x20e   :  { %8088 = vst [vmem:[#allocation56_spill] sm:$0xff] %v5409_v25  ;;  %v4127_v60 = vunpack.i.h.bf16 %v4125_v52  ;;  %v4126_v46 = vunpack.i.l.bf16 %v4125_v52  ;;  %2047 = vmatmul.bf16.gmra.mxu1 %v5409_v25  ;;  %2385 = vmatmul.bf16.gmra.mxu3 %v5412_v4  ;;  %v5445_v33 = vpop.f32.mrf.mxu1  ;;  %v638_v52 = vsel %vm606_vm2, %v573_v7, %v574_v20  ;;  %v131_v25 = vrot.slane %v5417_v11, 1 }
 0x20f   :  { %8089 = vst [vmem:[#allocation57_spill] sm:$0xff] %v5412_v4  ;;  %v5443_v26 = vadd.f32 %v2366_v63, %v2198_v35  ;;  %v5453_v4 = vld [vmem:[%s7912_s0 + $0x138] sm:$0xff]  ;;  %v8092_v63 = vrot.slane %v5421_v28, 2  ;;  %v950_v21 = vsel %vm927_vm3, %v5129_v44, %v4121_v45  ;;  %v8097_v45 = vrot.slane %v5334_v47, 1 }
 0x210   :  { %8091 = vst [vmem:[#allocation59_spill] sm:$0xff] %v5445_v33  ;;  %v5462_v29 = vsel %vm477_vm1, %v5139_v55, %v4127_v60  ;;  %v5466_v35 = vsel %vm477_vm1, %v5021_v5, %v4126_v46  ;;  %v637_v5 = vsel %vm606_vm2, %v574_v20, %v575_v61  ;;  %v129_v49 = vrot.slane %v5453_v4, 1 }
 0x211   :  { %8090 = vst [vmem:[#allocation58_spill] sm:$0xff] %v5443_v26  ;;  %v636_v33 = vsel %vm606_vm2, %v575_v61, %v8092_v63  ;;  %v132_v26 = vrot.slane %v5431_v40, 1  ;;  %v572_v42 = vrot.slane %v5462_v29, 2  ;;  %v571_v55 = vrot.slane %v5466_v35, 2 }
 0x212   :  { %v4168_v46 = vpack.i.bf16 %v636_v33, %v637_v5  ;;  %v130_v63 = vrot.slane %v5458_v58, 1  ;;  %v128_v33 = vrot.slane %v5476_v57, 1  ;;  %v5497_v20 = vpop.f32.mrf.mxu2 }
 0x213   :  { %v639_v51 = vsel %vm606_vm2, %v572_v42, %v573_v7  ;;  %v640_v18 = vsel %vm606_vm2, %v571_v55, %v572_v42  ;;  %v641_v61 = vsel %vm606_vm2, %v8093_v15, %v571_v55  ;;  %8094 = vst [vmem:[#allocation60_spill] sm:$0xff] %v5497_v20  ;;  %v951_v7 = vsel %vm927_vm3, %v5115_v9, %v4122_v12 }
 0x214   :  { %4169 = vrot.lane.b32.xlu0 %v4168_v46, %s4310_s19  ;;  %v4158_v5 = vpack.i.bf16 %v638_v52, %v639_v51  ;;  %v4148_v60 = vpack.i.bf16 %v640_v18, %v641_v61  ;;  %v8095_v42 = vrot.slane %v5440_v10, 1  ;;  %v178_v15 = vsel %vm156_vm0, %v131_v25, %v132_v26  ;;  %v5524_v46 = vpop.f32.mrf.mxu0 }
 0x215   :  { %v1865_v55 = vadd.f32 %v1864_v59, %v1389_v3  ;;  %v5512_v18 = vpop.f32.mrf.mxu3  ;;  %v179_v44 = vsel %vm156_vm0, %v130_v63, %v131_v25  ;;  %v180_v9 = vsel %vm156_vm0, %v129_v49, %v130_v63  ;;  %v181_v12 = vsel %vm156_vm0, %v128_v33, %v129_v49  ;;  %8098 = vst [vmem:[#allocation62_spill] sm:$0xff] %v5524_v46 }
 0x216   :  { %v177_v2 = vsel %vm156_vm0, %v132_v26, %v8095_v42  ;;  %4159 = vrot.lane.b32.xlu1 %v4158_v5, %s4310_s19  ;;  %4149 = vrot.lane.b32.xlu2 %v4148_v60, %s4310_s19  ;;  %8096 = vst [vmem:[#allocation61_spill] sm:$0xff] %v5512_v18  ;;  %v2033_v51 = vpop.f32.mrf.mxu1  ;;  %v182_v3 = vsel %vm156_vm0, %v8097_v45, %v128_v33  ;;  %v1014_v26 = vrot.slane %v950_v21, 4  ;;  %v1015_v52 = vrot.slane %v951_v7, 4 }
 0x217   :  { %v2034_v59 = vadd.f32 %v2033_v51, %v1865_v55  ;;  %v4183_v60 = vpack.i.bf16 %v177_v2, %v178_v15  ;;  %v5526_v61 = vpack.c.bf16 %v951_v7, %v950_v21  ;;  %v5529_v25 = vpack.c.bf16 %v950_v21, %v5381_v27 }
 0x218   :  { %v4173_v63 = vpack.i.bf16 %v179_v44, %v180_v9  ;;  %v4163_v5 = vpack.i.bf16 %v181_v12, %v182_v3  ;;  %v8099_v49 = vrot.slane %v5381_v27, 4  ;;  %v1097_v2 = vsel %vm1056_vm4, %v1014_v26, %v1015_v52 }
 0x219   :  { %v4132_v51 = vunpack.i.h.bf16 %v5361_v34  ;;  %v4131_v44 = vunpack.i.l.bf16 %v5361_v34 }
 0x21a   :  { %v1098_v42 = vsel %vm1056_vm4, %v8099_v49, %v1014_v26 }
 0x21b   :  { %1888 = vmatmul.bf16.gmra.mxu0 %v5526_v61  ;;  %2221 = vmatmul.bf16.gmra.mxu2 %v5529_v25  ;;  %v2202_v33 = vpop.f32.mrf.mxu2  ;;  %v5541_v21 = vpack.c.bf16 %v1098_v42, %v5405_v19  ;;  %v5543_v55 = vpack.c.bf16 %v1097_v2, %v1098_v42  ;;  %v1391_v19 = vld [vmem:[%s7914_s1 + $0x70] sm:$0xff]  ;;  %v952_v3 = vsel %vm927_vm3, %v5111_v24, %v4131_v44 }
 0x21c   :  { %4184 = vrot.lane.b32.xlu0 %v4183_v60, %s4309_s21  ;;  %v2203_v15 = vadd.f32 %v2202_v33, %v2034_v59  ;;  %v1869_v45 = vpop.f32.mrf.mxu0  ;;  %v953_v59 = vsel %vm927_vm3, %v5064_v16, %v4132_v51 }
 0x21d   :  { %v2371_v27 = vpop.f32.mrf.mxu3  ;;  %v1870_v26 = vadd.f32 %v1869_v45, %v1391_v19  ;;  %v5566_v33 = vpack.c.bf16 %v953_v59, %v952_v3 }
 0x21e   :  { %4174 = vrot.lane.b32.xlu1 %v4173_v63, %s4309_s21  ;;  %4164 = vrot.lane.b32.xlu2 %v4163_v5, %s4309_s21  ;;  %v5550_v9 = vadd.f32 %v2371_v27, %v2203_v15  ;;  %v5553_v12 = vpop.f32.mrf.mxu1  ;;  %v1016_v63 = vrot.slane %v952_v3, 4  ;;  %v1017_v5 = vrot.slane %v953_v59, 4  ;;  %v5568_v15 = vpack.c.bf16 %v952_v3, %v951_v7 }
 0x21f   :  { %2052 = vmatmul.bf16.gmra.mxu1 %v5541_v21  ;;  %2390 = vmatmul.bf16.gmra.mxu3 %v5543_v55  ;;  %8101 = vst [vmem:[#allocation64_spill] sm:$0xff] %v5553_v12 }
 0x220   :  { %8100 = vst [vmem:[#allocation63_spill] sm:$0xff] %v5550_v9  ;;  %v1096_v27 = vsel %vm1056_vm4, %v1015_v52, %v1016_v63  ;;  %v1095_v24 = vsel %vm1056_vm4, %v1016_v63, %v1017_v5 }
 0x221   :  { %8104 = vst [vmem:[#allocation67_spill] sm:$0xff] %v5568_v15  ;;  %v5576_v44 = vpack.c.bf16 %v1096_v27, %v1097_v2  ;;  %v5578_v19 = vpack.c.bf16 %v1095_v24, %v1096_v27 }
 0x223   :  { %v5562_v34 = vpop.f32.mrf.mxu2  ;;  %8105 = vst [vmem:[#allocation68_spill] sm:$0xff] %v5576_v44 }
 0x224   :  { %8102 = vst [vmem:[#allocation65_spill] sm:$0xff] %v5562_v34  ;;  %v5584_v52 = vpop.f32.mrf.mxu0 }
 0x225   :  { %v5564_v60 = vpop.f32.mrf.mxu3  ;;  %8106 = vst [vmem:[#allocation69_spill] sm:$0xff] %v5578_v19 }
 0x226   :  { %8103 = vst [vmem:[#allocation66_spill] sm:$0xff] %v5564_v60  ;;  %v2038_v49 = vpop.f32.mrf.mxu1 }
 0x227   :  { %v2039_v42 = vadd.f32 %v2038_v49, %v1870_v26  ;;  %8108 = vst [vmem:[#allocation71_spill] sm:$0xff] %v5584_v52  ;;  %v1393_v26 = vld [vmem:[%s7914_s1 + $0x80] sm:$0xff] }
 0x22b   :  { %1893 = vmatmul.bf16.gmra.mxu0 %v5566_v33  ;;  %2226 = vmatmul.bf16.gmra.mxu2 %v5568_v15  ;;  %v2207_v16 = vpop.f32.mrf.mxu2 }
 0x22c   :  { %v2208_v51 = vadd.f32 %v2207_v16, %v2039_v42  ;;  %v1874_v63 = vpop.f32.mrf.mxu0 }
 0x22d   :  { %v2376_v45 = vpop.f32.mrf.mxu3 }
 0x22e   :  { %v5581_v7 = vadd.f32 %v2376_v45, %v2208_v51  ;;  %v5586_v3 = vpop.f32.mrf.mxu1  ;;  %v1875_v45 = vadd.f32 %v1874_v63, %v1393_v26 }
 0x22f   :  { %2057 = vmatmul.bf16.gmra.mxu1 %v5576_v44  ;;  %2395 = vmatmul.bf16.gmra.mxu3 %v5578_v19  ;;  %8109 = vst [vmem:[#allocation72_spill] sm:$0xff] %v5586_v3 }
 0x230   :  { %8107 = vst [vmem:[#allocation70_spill] sm:$0xff] %v5581_v7 }
 0x233   :  { %v5591_v2 = vpop.f32.mrf.mxu2 }
 0x234   :  { %8110 = vst [vmem:[#allocation73_spill] sm:$0xff] %v5591_v2 }
 0x235   :  { %v5593_v42 = vpop.f32.mrf.mxu3 }
 0x236   :  { %8111 = vst [vmem:[#allocation74_spill] sm:$0xff] %v5593_v42 }
 0x26e   :  { %v4140_v49 = vpop.permute.xlu0 %4139 }
 0x26f   :  { %v4142_v27 = vunpack.i.h.bf16 %v4140_v49  ;;  %v4141_v16 = vunpack.i.l.bf16 %v4140_v49 }
 0x270   :  { %v4150_v51 = vpop.permute.xlu2 %4149 }
 0x271   :  { %v2043_v60 = vpop.f32.mrf.mxu1  ;;  %v954_v52 = vsel %vm927_vm3, %v5060_v22, %v4141_v16  ;;  %v5599_v3 = vsel %vm927_vm3, %v5324_v43, %v4142_v27 }
 0x272   :  { %v2044_v34 = vadd.f32 %v2043_v60, %v1875_v45  ;;  %v1018_v7 = vrot.slane %v954_v52, 4  ;;  %v1019_v12 = vrot.slane %v5599_v3, 4  ;;  %v5603_v2 = vpack.c.bf16 %v5599_v3, %v954_v52 }
 0x273   :  { %v5605_v42 = vpack.c.bf16 %v954_v52, %v953_v59  ;;  %v5623_v52 = vld [vmem:[%s7912_s0 + $0x160] sm:$0xff] }
 0x274   :  { %8112 = vst [vmem:[#allocation75_spill] sm:$0xff] %v5603_v2  ;;  %1898 = vmatmul.bf16.gmra.mxu0 %v5603_v2  ;;  %v1094_v26 = vsel %vm1056_vm4, %v1017_v5, %v1018_v7  ;;  %v5612_v22 = vsel %vm1056_vm4, %v1018_v7, %v1019_v12  ;;  %v4151_v5 = vunpack.i.l.bf16 %v4150_v51 }
 0x275   :  { %8113 = vst [vmem:[#allocation76_spill] sm:$0xff] %v5605_v42  ;;  %v2212_v43 = vpop.f32.mrf.mxu2  ;;  %2231 = vmatmul.bf16.gmra.mxu2 %v5605_v42  ;;  %v5615_v60 = vpack.c.bf16 %v1094_v26, %v1095_v24  ;;  %v5618_v63 = vpack.c.bf16 %v5612_v22, %v1094_v26  ;;  %v4152_v24 = vunpack.i.h.bf16 %v4150_v51  ;;  %v134_v51 = vrot.slane %v5623_v52, 1 }
 0x276   :  { %v2213_v49 = vadd.f32 %v2212_v43, %v2044_v34  ;;  %v4155_v59 = vpop.permute.xlu0 %4154  ;;  %v5632_v34 = vld [vmem:[%s7912_s0 + $0x168] sm:$0xff]  ;;  %v5634_v43 = vpop.f32.mrf.mxu0 }
 0x277   :  { %8114 = vst [vmem:[#allocation77_spill] sm:$0xff] %v5615_v60  ;;  %v4157_v27 = vunpack.i.h.bf16 %v4155_v59  ;;  %v4156_v16 = vunpack.i.l.bf16 %v4155_v59  ;;  %2062 = vmatmul.bf16.gmra.mxu1 %v5615_v60  ;;  %v2381_v45 = vpop.f32.mrf.mxu3  ;;  %2400 = vmatmul.bf16.gmra.mxu3 %v5618_v63  ;;  %v135_v9 = vrot.slane %v5632_v34, 1 }
 0x278   :  { %8115 = vst [vmem:[#allocation78_spill] sm:$0xff] %v5618_v63  ;;  %v4165_v7 = vpop.permute.xlu2 %4164  ;;  %v5627_v18 = vadd.f32 %v2381_v45, %v2213_v49  ;;  %v5648_v49 = vld [vmem:[%s7912_s0 + $0x170] sm:$0xff] }
 0x279   :  { %v4167_v46 = vunpack.i.h.bf16 %v4165_v7  ;;  %v4166_v26 = vunpack.i.l.bf16 %v4165_v7  ;;  %8117 = vst [vmem:[#allocation80_spill] sm:$0xff] %v5634_v43  ;;  %v5638_v59 = vsel %vm477_vm1, %v5329_v23, %v4157_v27  ;;  %v5642_v20 = vsel %vm477_vm1, %v5107_v48, %v4156_v16  ;;  %v5663_v48 = vld [vmem:[%s7912_s0 + $0x178] sm:$0xff] }
 0x27a   :  { %8116 = vst [vmem:[#allocation79_spill] sm:$0xff] %v5627_v18  ;;  %v578_v7 = vrot.slane %v5638_v59, 2  ;;  %v577_v45 = vrot.slane %v5642_v20, 2  ;;  %v956_v18 = vsel %vm927_vm3, %v5320_v32, %v4151_v5  ;;  %v136_v27 = vrot.slane %v5648_v49, 1 }
 0x27b   :  { %v5654_v43 = vsel %vm477_vm1, %v5476_v57, %v4167_v46  ;;  %v5658_v23 = vsel %vm477_vm1, %v5334_v47, %v4166_v26  ;;  %v8118_v47 = vrot.slane %v5421_v28, 2  ;;  %v5678_v26 = vsel %vm927_vm3, %v5466_v35, %v4152_v24 }
 0x27c   :  { %v579_v16 = vrot.slane %v5658_v23, 2  ;;  %v634_v57 = vsel %vm606_vm2, %v577_v45, %v578_v7  ;;  %v8119_v60 = vrot.slane %v5654_v43, 2  ;;  %v7965_v42 = vrot.slane %v5663_v48, 1 }
 0x27d   :  { %v635_v46 = vsel %vm606_vm2, %v8118_v47, %v577_v45  ;;  %v1020_v19 = vrot.slane %v956_v18, 4  ;;  %v7966_v35 = vrot.slane %v5678_v26, 4  ;;  %v175_v24 = vsel %vm156_vm0, %v134_v51, %v135_v9 }
 0x27e   :  { %v4178_v63 = vpack.i.bf16 %v634_v57, %v635_v46  ;;  %v632_v32 = vsel %vm606_vm2, %v579_v16, %v8119_v60  ;;  %v633_v5 = vsel %vm606_vm2, %v578_v7, %v579_v16  ;;  %v8120_v45 = vrot.slane %v5440_v10, 1  ;;  %v3982_v7 = vld [vmem:[%s7913_s4 + $0x1b8] sm:$0xff]  ;;  %v1879_v16 = vpop.f32.mrf.mxu0  ;;  %v5706_v57 = vpop.f32.mrf.mxu1 }
 0x27f   :  { %v4188_v2 = vpack.i.bf16 %v632_v32, %v633_v5  ;;  %8121 = vst [vmem:[#allocation81_spill] sm:$0xff] %v5706_v57  ;;  %v5709_v47 = vpack.c.bf16 %v5678_v26, %v956_v18  ;;  %2839 = vmatpush.bf16.msrb.mxu2 %v3982_v7  ;;  %v5714_v46 = vpack.c.bf16 %v956_v18, %v5599_v3  ;;  %v5729_v18 = vpop.f32.mrf.mxu2 }
 0x280   :  { %4179 = vrot.lane.b32.xlu2 %v4178_v63, %s4310_s19  ;;  %v176_v60 = vsel %vm156_vm0, %v8120_v45, %v134_v51  ;;  %v173_v63 = vsel %vm156_vm0, %v136_v27, %v7965_v42  ;;  %v1092_v51 = vsel %vm1056_vm4, %v1019_v12, %v1020_v19  ;;  %v5720_v5 = vsel %vm1056_vm4, %v1020_v19, %v7966_v35  ;;  %v3990_v12 = vld [vmem:[%s7913_s4 + $0x1f8] sm:$0xff]  ;;  %v1395_v45 = vld [vmem:[%s7914_s1 + $0x90] sm:$0xff] }
 0x281   :  { %4189 = vrot.lane.b32.xlu1 %v4188_v2, %s4310_s19  ;;  %v174_v2 = vsel %vm156_vm0, %v135_v9, %v136_v27  ;;  %8122 = vst [vmem:[#allocation82_spill] sm:$0xff] %v5709_v47  ;;  %v4193_v32 = vpack.i.bf16 %v175_v24, %v176_v60  ;;  %v3966_v27 = vld [vmem:[%s7913_s4 + $0x138] sm:$0xff]  ;;  %v5735_v19 = vpack.c.bf16 %v1092_v51, %v5612_v22  ;;  %v5748_v22 = vpop.f32.mrf.mxu3 }
 0x282   :  { %8123 = vst [vmem:[#allocation83_spill] sm:$0xff] %v5714_v46  ;;  %v4203_v9 = vpack.i.bf16 %v173_v63, %v174_v2  ;;  %v3974_v24 = vld [vmem:[%s7913_s4 + $0x178] sm:$0xff]  ;;  %v5744_v60 = vpack.c.bf16 %v5720_v5, %v1092_v51  ;;  %2501 = vmatpush.bf16.msrb.mxu0 %v3966_v27  ;;  %3008 = vmatpush.bf16.msrb.mxu3 %v3990_v12 }
 0x283   :  { %8124 = vst [vmem:[#allocation84_spill] sm:$0xff] %v5729_v18  ;;  %v1880_v42 = vadd.f32 %v1879_v16, %v1395_v45  ;;  %2670 = vmatpush.bf16.msrb.mxu1 %v3974_v24 }
 0x284   :  { %1903 = vmatmul.bf16.gmra.mxu0 %v5709_v47  ;;  %8125 = vst [vmem:[#allocation85_spill] sm:$0xff] %v5735_v19 }
 0x285   :  { %2236 = vmatmul.bf16.gmra.mxu2 %v5714_v46  ;;  %8126 = vst [vmem:[#allocation86_spill] sm:$0xff] %v5744_v60 }
 0x286   :  { %v5731_v3 = vpop.permute.xlu0 %4169  ;;  %8127 = vst [vmem:[#allocation87_spill] sm:$0xff] %v5748_v22  ;;  %v5752_v51 = vpop.f32.mrf.mxu0 }
 0x287   :  { %2067 = vmatmul.bf16.gmra.mxu1 %v5735_v19  ;;  %2405 = vmatmul.bf16.gmra.mxu3 %v5744_v60  ;;  %8128 = vst [vmem:[#allocation88_spill] sm:$0xff] %v5752_v51 }
 0x288   :  { %v4160_v7 = vpop.permute.xlu1 %4159  ;;  %4194 = vrot.lane.b32.xlu2 %v4193_v32, %s4309_s21 }
 0x289   :  { %v4162_v63 = vunpack.i.h.bf16 %v4160_v7  ;;  %v4161_v2 = vunpack.i.l.bf16 %v4160_v7  ;;  %4204 = vrot.lane.b32.xlu1 %v4203_v9, %s4309_s21 }
 0x28b   :  { %v2048_v35 = vpop.f32.mrf.mxu1  ;;  %v958_v12 = vsel %vm927_vm3, %v5462_v29, %v4161_v2  ;;  %v5758_v32 = vsel %vm927_vm3, %v5375_v0, %v4162_v63  ;;  %v5776_v63 = vld [vmem:[%s7912_s0 + $0x180] sm:$0xff] }
 0x28c   :  { %v2049_v27 = vadd.f32 %v2048_v35, %v1880_v42  ;;  %v1022_v19 = vrot.slane %v958_v12, 4  ;;  %v7970_v16 = vrot.slane %v5758_v32, 4  ;;  %v5794_v2 = vpack.c.bf16 %v5758_v32, %v958_v12 }
 0x28e   :  { %v2217_v22 = vpop.f32.mrf.mxu2  ;;  %v4185_v18 = vpop.permute.xlu0 %4184  ;;  %8131 = vst [vmem:[#allocation91_spill] sm:$0xff] %v5794_v2 }
 0x28f   :  { %v2218_v7 = vadd.f32 %v2217_v22, %v2049_v27  ;;  %v4187_v57 = vunpack.i.h.bf16 %v4185_v18  ;;  %v4186_v9 = vunpack.i.l.bf16 %v4185_v18  ;;  %v8132_v27 = vrot.slane %v5678_v26, 4 }
 0x290   :  { %v4175_v60 = vpop.permute.xlu1 %4174 }
 0x291   :  { %v5763_v24 = vsel %vm477_vm1, %v5431_v40, %v4187_v57  ;;  %v5767_v29 = vsel %vm477_vm1, %v5417_v11, %v4186_v9  ;;  %v4177_v42 = vunpack.i.h.bf16 %v4175_v60  ;;  %v4176_v0 = vunpack.i.l.bf16 %v4175_v60  ;;  %v2386_v35 = vpop.f32.mrf.mxu3  ;;  %v5781_v40 = vld [vmem:[%s7912_s0 + $0x188] sm:$0xff]  ;;  %v1884_v9 = vpop.f32.mrf.mxu0 }
 0x292   :  { %v7969_v45 = vrot.slane %v5763_v24, 2  ;;  %v583_v22 = vrot.slane %v5767_v29, 2  ;;  %v5771_v18 = vadd.f32 %v2386_v35, %v2218_v7  ;;  %v1090_v7 = vsel %vm1056_vm4, %v8132_v27, %v1022_v19 }
 0x293   :  { %v5785_v11 = vsel %vm477_vm1, %v5458_v58, %v4177_v42  ;;  %v5789_v57 = vsel %vm477_vm1, %v5453_v4, %v4176_v0  ;;  %v5791_v60 = vpop.f32.mrf.mxu1  ;;  %v5803_v42 = vpack.c.bf16 %v958_v12, %v5678_v26  ;;  %v1089_v0 = vsel %vm1056_vm4, %v1022_v19, %v7970_v16 }
 0x294   :  { %8129 = vst [vmem:[#allocation89_spill] sm:$0xff] %v5771_v18  ;;  %v582_v35 = vrot.slane %v5785_v11, 2  ;;  %v581_v58 = vrot.slane %v5789_v57, 2  ;;  %v628_v4 = vsel %vm606_vm2, %v583_v22, %v7969_v45  ;;  %1908 = vmatmul.bf16.gmra.mxu0 %v5794_v2  ;;  %v138_v27 = vrot.slane %v5776_v63, 1 }
 0x295   :  { %8130 = vst [vmem:[#allocation90_spill] sm:$0xff] %v5791_v60  ;;  %v139_v60 = vrot.slane %v5781_v40, 1  ;;  %2241 = vmatmul.bf16.gmra.mxu2 %v5803_v42  ;;  %v8135_v45 = vrot.slane %v5654_v43, 2  ;;  %v5828_v19 = vpack.c.bf16 %v1090_v7, %v5720_v5  ;;  %v5844_v5 = vpack.c.bf16 %v1089_v0, %v1090_v7 }
 0x296   :  { %8133 = vst [vmem:[#allocation92_spill] sm:$0xff] %v5803_v42  ;;  %v5816_v51 = vpop.f32.mrf.mxu2  ;;  %v629_v26 = vsel %vm606_vm2, %v582_v35, %v583_v22  ;;  %v630_v12 = vsel %vm606_vm2, %v581_v58, %v582_v35  ;;  %v5838_v22 = vld [vmem:[%s7912_s0 + $0x198] sm:$0xff]  ;;  %v1397_v35 = vld [vmem:[%s7914_s1 + $0xa0] sm:$0xff]  ;;  %v8139_v7 = vrot.slane %v5663_v48, 1 }
 0x297   :  { %8134 = vst [vmem:[#allocation93_spill] sm:$0xff] %v5816_v51  ;;  %v631_v18 = vsel %vm606_vm2, %v8135_v45, %v581_v58  ;;  %v4208_v16 = vpack.i.bf16 %v628_v4, %v629_v26  ;;  %v5833_v51 = vld [vmem:[%s7912_s0 + $0x190] sm:$0xff]  ;;  %2072 = vmatmul.bf16.gmra.mxu1 %v5828_v19  ;;  %v171_v4 = vsel %vm156_vm0, %v138_v27, %v139_v60  ;;  %v4171_v26 = vunpack.i.l.bf16 %v5731_v3 }
 0x298   :  { %8136 = vst [vmem:[#allocation94_spill] sm:$0xff] %v5828_v19  ;;  %v4198_v2 = vpack.i.bf16 %v630_v12, %v631_v18  ;;  %v140_v45 = vrot.slane %v5833_v51, 1  ;;  %v7979_v18 = vrot.slane %v5838_v22, 1  ;;  %2410 = vmatmul.bf16.gmra.mxu3 %v5844_v5  ;;  %v172_v12 = vsel %vm156_vm0, %v8139_v7, %v138_v27 }
 0x299   :  { %8137 = vst [vmem:[#allocation95_spill] sm:$0xff] %v5844_v5  ;;  %4209 = vrot.lane.b32.xlu2 %v4208_v16, %s4310_s19  ;;  %v5850_v58 = vpop.f32.mrf.mxu3  ;;  %v4172_v19 = vunpack.i.h.bf16 %v5731_v3  ;;  %v4213_v47 = vpack.i.bf16 %v171_v4, %v172_v12  ;;  %v5867_v44 = vpop.f32.mrf.mxu0  ;;  %v960_v27 = vsel %vm927_vm3, %v5392_v8, %v4171_v26 }
 0x29a   :  { %4199 = vrot.lane.b32.xlu0 %v4198_v2, %s4310_s19  ;;  %8138 = vst [vmem:[#allocation96_spill] sm:$0xff] %v5850_v58  ;;  %v169_v16 = vsel %vm156_vm0, %v140_v45, %v7979_v18  ;;  %v170_v2 = vsel %vm156_vm0, %v139_v60, %v140_v45  ;;  %v1885_v58 = vadd.f32 %v1884_v9, %v1397_v35  ;;  %v1024_v60 = vrot.slane %v960_v27, 4 }
 0x29b   :  { %v4223_v5 = vpack.i.bf16 %v169_v16, %v170_v2  ;;  %8140 = vst [vmem:[#allocation97_spill] sm:$0xff] %v5867_v44  ;;  %v961_v18 = vsel %vm927_vm3, %v5425_v56, %v4172_v19  ;;  %v8142_v45 = vrot.slane %v5758_v32, 4  ;;  %v5886_v56 = vpack.c.bf16 %v960_v27, %v5758_v32 }
 0x29c   :  { %v2053_v42 = vpop.f32.mrf.mxu1  ;;  %v5877_v35 = vpack.c.bf16 %v961_v18, %v960_v27 }
 0x29d   :  { %v2054_v46 = vadd.f32 %v2053_v42, %v1885_v58  ;;  %v1025_v42 = vrot.slane %v961_v18, 4  ;;  %v1088_v8 = vsel %vm1056_vm4, %v8142_v45, %v1024_v60  ;;  %8144 = vst [vmem:[#allocation100_spill] sm:$0xff] %v5886_v56  ;;  %v3989_v45 = vld [vmem:[%s7913_s4 + $0x1f0] sm:$0xff] }
 0x29e   :  { %v2222_v15 = vpop.f32.mrf.mxu2  ;;  %3009 = vmatpush.bf16.msrb.mxu3 %v3989_v45 }
 0x29f   :  { %v2223_v7 = vadd.f32 %v2222_v15, %v2054_v46  ;;  %v5892_v46 = vpack.c.bf16 %v1088_v8, %v1089_v0  ;;  %v1087_v19 = vsel %vm1056_vm4, %v1024_v60, %v1025_v42  ;;  %v3981_v60 = vld [vmem:[%s7913_s4 + $0x1b0] sm:$0xff] }
 0x2a0   :  { %v5900_v32 = vpack.c.bf16 %v1087_v19, %v1088_v8  ;;  %2840 = vmatpush.bf16.msrb.mxu2 %v3981_v60  ;;  %v3973_v8 = vld [vmem:[%s7913_s4 + $0x170] sm:$0xff] }
 0x2a1   :  { %4224 = vrot.lane.b32.xlu2 %v4223_v5, %s4309_s21  ;;  %8146 = vst [vmem:[#allocation102_spill] sm:$0xff] %v5892_v46  ;;  %v1399_v5 = vld [vmem:[%s7914_s1 + $0xb0] sm:$0xff]  ;;  %v1889_v58 = vpop.f32.mrf.mxu0  ;;  %2671 = vmatpush.bf16.msrb.mxu1 %v3973_v8 }
 0x2a2   :  { %4214 = vrot.lane.b32.xlu0 %v4213_v47, %s4309_s21  ;;  %v2391_v3 = vpop.f32.mrf.mxu3  ;;  %8147 = vst [vmem:[#allocation103_spill] sm:$0xff] %v5900_v32  ;;  %v1890_v26 = vadd.f32 %v1889_v58, %v1399_v5 }
 0x2a3   :  { %v5875_v9 = vadd.f32 %v2391_v3, %v2223_v7  ;;  %v3965_v3 = vld [vmem:[%s7913_s4 + $0x130] sm:$0xff] }
 0x2a4   :  { %v5883_v15 = vpop.f32.mrf.mxu1  ;;  %1913 = vmatmul.bf16.gmra.mxu0 %v5877_v35 }
 0x2a5   :  { %8141 = vst [vmem:[#allocation98_spill] sm:$0xff] %v5875_v9  ;;  %2246 = vmatmul.bf16.gmra.mxu2 %v5886_v56  ;;  %2502 = vmatpush.bf16.msrb.mxu0 %v3965_v3 }
 0x2a6   :  { %8143 = vst [vmem:[#allocation99_spill] sm:$0xff] %v5883_v15  ;;  %v5889_v47 = vpop.f32.mrf.mxu2 }
 0x2a7   :  { %8145 = vst [vmem:[#allocation101_spill] sm:$0xff] %v5889_v47  ;;  %2077 = vmatmul.bf16.gmra.mxu1 %v5892_v46 }
 0x2a8   :  { %2415 = vmatmul.bf16.gmra.mxu3 %v5900_v32 }
 0x2aa   :  { %v5902_v4 = vpop.f32.mrf.mxu3 }
 0x2ab   :  { %8148 = vst [vmem:[#allocation104_spill] sm:$0xff] %v5902_v4 }
 0x2ac   :  { %v2058_v12 = vpop.f32.mrf.mxu1 }
 0x2ad   :  { %v2059_v0 = vadd.f32 %v2058_v12, %v1890_v26  ;;  %v5919_v12 = vpop.f32.mrf.mxu0 }
 0x2ae   :  { %v2227_v16 = vpop.f32.mrf.mxu2  ;;  %8150 = vst [vmem:[#allocation106_spill] sm:$0xff] %v5919_v12 }
 0x2af   :  { %v2228_v2 = vadd.f32 %v2227_v16, %v2059_v0 }
 0x2b2   :  { %v2396_v27 = vpop.f32.mrf.mxu3 }
 0x2b3   :  { %v5905_v7 = vadd.f32 %v2396_v27, %v2228_v2 }
 0x2b4   :  { %v5978_v44 = vpop.f32.mrf.mxu1 }
 0x2b5   :  { %8149 = vst [vmem:[#allocation105_spill] sm:$0xff] %v5905_v7  ;;  %v8156_v7 = vrot.slane %v5838_v22, 1 }
 0x2b6   :  { %8157 = vst [vmem:[#allocation111_spill] sm:$0xff] %v5978_v44 }
 0x2da   :  { %v4180_v5 = vpop.permute.xlu2 %4179 }
 0x2db   :  { %v4182_v58 = vunpack.i.h.bf16 %v4180_v5  ;;  %v4181_v26 = vunpack.i.l.bf16 %v4180_v5 }
 0x2dd   :  { %v962_v0 = vsel %vm927_vm3, %v5421_v28, %v4181_v26  ;;  %v963_v16 = vsel %vm927_vm3, %v5642_v20, %v4182_v58 }
 0x2de   :  { %v1026_v2 = vrot.slane %v962_v0, 4  ;;  %v1027_v27 = vrot.slane %v963_v16, 4  ;;  %v5925_v60 = vpack.c.bf16 %v963_v16, %v962_v0  ;;  %v5927_v3 = vpack.c.bf16 %v962_v0, %v961_v18  ;;  %v5957_v0 = vld [vmem:[%s7912_s0 + $0x1a8] sm:$0xff] }
 0x2df   :  { %v7980_v12 = vrot.slane %v5957_v0, 1 }
 0x2e0   :  { %8151 = vst [vmem:[#allocation107_spill] sm:$0xff] %v5925_v60  ;;  %1918 = vmatmul.bf16.gmra.mxu0 %v5925_v60  ;;  %2251 = vmatmul.bf16.gmra.mxu2 %v5927_v3  ;;  %v1086_v45 = vsel %vm1056_vm4, %v1025_v42, %v1026_v2  ;;  %v1085_v8 = vsel %vm1056_vm4, %v1026_v2, %v1027_v27 }
 0x2e1   :  { %8152 = vst [vmem:[#allocation108_spill] sm:$0xff] %v5927_v3  ;;  %v5935_v28 = vpack.c.bf16 %v1086_v45, %v1087_v19  ;;  %v5937_v5 = vpack.c.bf16 %v1085_v8, %v1086_v45  ;;  %v5952_v19 = vld [vmem:[%s7912_s0 + $0x1a0] sm:$0xff] }
 0x2e2   :  { %v4195_v20 = vpop.permute.xlu2 %4194 }
 0x2e3   :  { %8153 = vst [vmem:[#allocation109_spill] sm:$0xff] %v5935_v28  ;;  %v4197_v58 = vunpack.i.h.bf16 %v4195_v20  ;;  %v4196_v26 = vunpack.i.l.bf16 %v4195_v20  ;;  %2082 = vmatmul.bf16.gmra.mxu1 %v5935_v28  ;;  %2420 = vmatmul.bf16.gmra.mxu3 %v5937_v5 }
 0x2e4   :  { %8154 = vst [vmem:[#allocation110_spill] sm:$0xff] %v5937_v5 }
 0x2e5   :  { %v5943_v18 = vsel %vm477_vm1, %v5623_v52, %v4197_v58  ;;  %v5947_v42 = vsel %vm477_vm1, %v5440_v10, %v4196_v26  ;;  %v1894_v52 = vpop.f32.mrf.mxu0  ;;  %v8155_v10 = vrot.slane %v5763_v24, 2  ;;  %v142_v26 = vrot.slane %v5952_v19, 1 }
 0x2e6   :  { %v586_v2 = vrot.slane %v5943_v18, 2  ;;  %v585_v45 = vrot.slane %v5947_v42, 2 }
 0x2e7   :  { %v167_v47 = vsel %vm156_vm0, %v142_v26, %v7980_v12  ;;  %v168_v15 = vsel %vm156_vm0, %v8156_v7, %v142_v26 }
 0x2e8   :  { %v626_v20 = vsel %vm606_vm2, %v585_v45, %v586_v2  ;;  %v627_v58 = vsel %vm606_vm2, %v8155_v10, %v585_v45  ;;  %v4233_v45 = vpack.i.bf16 %v167_v47, %v168_v15  ;;  %v1401_v10 = vld [vmem:[%s7914_s1 + $0xc0] sm:$0xff] }
 0x2e9   :  { %v4218_v4 = vpack.i.bf16 %v626_v20, %v627_v58  ;;  %v5987_v58 = vpop.f32.mrf.mxu3  ;;  %v1895_v12 = vadd.f32 %v1894_v52, %v1401_v10 }
 0x2ea   :  { %8160 = vst [vmem:[#allocation114_spill] sm:$0xff] %v5987_v58 }
 0x2eb   :  { %4219 = vrot.lane.b32.xlu1 %v4218_v4, %s4310_s19  ;;  %v5985_v4 = vpop.f32.mrf.mxu2 }
 0x2ec   :  { %8159 = vst [vmem:[#allocation113_spill] sm:$0xff] %v5985_v4 }
 0x2ed   :  { %v5983_v20 = vpop.f32.mrf.mxu0 }
 0x2ee   :  { %8158 = vst [vmem:[#allocation112_spill] sm:$0xff] %v5983_v20 }
 0x2f3   :  { %v4190_v9 = vpop.permute.xlu1 %4189  ;;  %4234 = vrot.lane.b32.xlu1 %v4233_v45, %s4309_s21 }
 0x2f4   :  { %v4192_v5 = vunpack.i.h.bf16 %v4190_v9  ;;  %v4191_v28 = vunpack.i.l.bf16 %v4190_v9  ;;  %v2063_v7 = vpop.f32.mrf.mxu1 }
 0x2f5   :  { %v2064_v26 = vadd.f32 %v2063_v7, %v1895_v12  ;;  %v1899_v52 = vpop.f32.mrf.mxu0 }
 0x2f6   :  { %v964_v15 = vsel %vm927_vm3, %v5638_v59, %v4191_v28  ;;  %v5994_v47 = vsel %vm927_vm3, %v5658_v23, %v4192_v5 }
 0x2f7   :  { %v1028_v20 = vrot.slane %v964_v15, 4  ;;  %v7983_v4 = vrot.slane %v5994_v47, 4  ;;  %v5998_v58 = vpack.c.bf16 %v5994_v47, %v964_v15  ;;  %v6000_v44 = vpack.c.bf16 %v964_v15, %v963_v16 }
 0x2f8   :  { %v2232_v9 = vpop.f32.mrf.mxu2 }
 0x2f9   :  { %8161 = vst [vmem:[#allocation115_spill] sm:$0xff] %v5998_v58  ;;  %1923 = vmatmul.bf16.gmra.mxu0 %v5998_v58  ;;  %2256 = vmatmul.bf16.gmra.mxu2 %v6000_v44  ;;  %v1084_v59 = vsel %vm1056_vm4, %v1027_v27, %v1028_v20  ;;  %v6010_v23 = vsel %vm1056_vm4, %v1028_v20, %v7983_v4 }
 0x2fa   :  { %8162 = vst [vmem:[#allocation116_spill] sm:$0xff] %v6000_v44  ;;  %v2233_v12 = vadd.f32 %v2232_v9, %v2064_v26  ;;  %v6012_v28 = vpack.c.bf16 %v1084_v59, %v1085_v8  ;;  %v6015_v16 = vpack.c.bf16 %v6010_v23, %v1084_v59  ;;  %v2401_v45 = vpop.f32.mrf.mxu3  ;;  %v6034_v26 = vld [vmem:[%s7912_s0 + $0x1b0] sm:$0xff]  ;;  %v6039_v9 = vld [vmem:[%s7912_s0 + $0x1b8] sm:$0xff] }
 0x2fb   :  { %v4205_v5 = vpop.permute.xlu1 %4204  ;;  %v7990_v4 = vrot.slane %v6039_v9, 1 }
 0x2fc   :  { %8163 = vst [vmem:[#allocation117_spill] sm:$0xff] %v6012_v28  ;;  %v4207_v10 = vunpack.i.h.bf16 %v4205_v5  ;;  %v4206_v7 = vunpack.i.l.bf16 %v4205_v5  ;;  %2087 = vmatmul.bf16.gmra.mxu1 %v6012_v28  ;;  %v6018_v15 = vadd.f32 %v2401_v45, %v2233_v12  ;;  %2425 = vmatmul.bf16.gmra.mxu3 %v6015_v16  ;;  %v6021_v27 = vpop.f32.mrf.mxu1 }
 0x2fd   :  { %8164 = vst [vmem:[#allocation118_spill] sm:$0xff] %v6015_v16  ;;  %v6061_v16 = vpop.f32.mrf.mxu0 }
 0x2fe   :  { %8165 = vst [vmem:[#allocation119_spill] sm:$0xff] %v6018_v15  ;;  %v6025_v20 = vsel %vm477_vm1, %v5648_v49, %v4207_v10  ;;  %v6029_v8 = vsel %vm477_vm1, %v5632_v34, %v4206_v7  ;;  %v6043_v49 = vpop.permute.xlu2 %4209  ;;  %v1403_v34 = vld [vmem:[%s7914_s1 + $0xd0] sm:$0xff]  ;;  %v144_v7 = vrot.slane %v6034_v26, 1  ;;  %v3980_v15 = vld [vmem:[%s7913_s4 + $0x1a8] sm:$0xff] }
 0x2ff   :  { %8166 = vst [vmem:[#allocation120_spill] sm:$0xff] %v6021_v27  ;;  %v7985_v59 = vrot.slane %v6025_v20, 2  ;;  %v587_v12 = vrot.slane %v6029_v8, 2  ;;  %2841 = vmatpush.bf16.msrb.mxu2 %v3980_v15 }
 0x300   :  { %v6048_v5 = vpop.f32.mrf.mxu2  ;;  %8168 = vst [vmem:[#allocation122_spill] sm:$0xff] %v6061_v16  ;;  %v8170_v16 = vrot.slane %v5957_v0, 1 }
 0x301   :  { %8167 = vst [vmem:[#allocation121_spill] sm:$0xff] %v6048_v5  ;;  %v624_v45 = vsel %vm606_vm2, %v587_v12, %v7985_v59  ;;  %v625_v10 = vsel %vm606_vm2, %v586_v2, %v587_v12  ;;  %v3964_v59 = vld [vmem:[%s7913_s4 + $0x128] sm:$0xff]  ;;  %v1900_v12 = vadd.f32 %v1899_v52, %v1403_v34 }
 0x302   :  { %v4228_v27 = vpack.i.bf16 %v624_v45, %v625_v10  ;;  %v6063_v5 = vpop.f32.mrf.mxu3  ;;  %v3988_v2 = vld [vmem:[%s7913_s4 + $0x1e8] sm:$0xff]  ;;  %v165_v10 = vsel %vm156_vm0, %v144_v7, %v7990_v4  ;;  %2503 = vmatpush.bf16.msrb.mxu0 %v3964_v59 }
 0x303   :  { %8169 = vst [vmem:[#allocation123_spill] sm:$0xff] %v6063_v5  ;;  %v166_v5 = vsel %vm156_vm0, %v8170_v16, %v144_v7  ;;  %3010 = vmatpush.bf16.msrb.mxu3 %v3988_v2  ;;  %v3972_v52 = vld [vmem:[%s7913_s4 + $0x168] sm:$0xff] }
 0x304   :  { %4229 = vrot.lane.b32.xlu0 %v4228_v27, %s4310_s19  ;;  %v2068_v45 = vpop.f32.mrf.mxu1  ;;  %v4243_v27 = vpack.i.bf16 %v165_v10, %v166_v5  ;;  %2672 = vmatpush.bf16.msrb.mxu1 %v3972_v52  ;;  %v6162_v52 = vld [vmem:[%s7912_s0 + $0x1c0] sm:$0xff] }
 0x305   :  { %v2069_v28 = vadd.f32 %v2068_v45, %v1900_v12  ;;  %v1904_v59 = vpop.f32.mrf.mxu0 }
 0x306   :  { %v4225_v34 = vpop.permute.xlu2 %4224 }
 0x307   :  { %v4227_v32 = vunpack.i.h.bf16 %v4225_v34  ;;  %v4226_v16 = vunpack.i.l.bf16 %v4225_v34 }
 0x308   :  { %v2237_v15 = vpop.f32.mrf.mxu2 }
 0x309   :  { %v2238_v44 = vadd.f32 %v2237_v15, %v2069_v28 }
 0x30a   :  { %v2406_v60 = vpop.f32.mrf.mxu3 }
 0x30b   :  { %v6084_v7 = vadd.f32 %v2406_v60, %v2238_v44  ;;  %v6103_v44 = vsel %vm477_vm1, %v5833_v51, %v4227_v32 }
 0x30c   :  { %v4200_v58 = vpop.permute.xlu0 %4199  ;;  %4244 = vrot.lane.b32.xlu0 %v4243_v27, %s4309_s21  ;;  %v6086_v2 = vpop.f32.mrf.mxu1 }
 0x30d   :  { %v4202_v3 = vunpack.i.h.bf16 %v4200_v58  ;;  %v4201_v4 = vunpack.i.l.bf16 %v4200_v58  ;;  %8171 = vst [vmem:[#allocation124_spill] sm:$0xff] %v6084_v7 }
 0x30e   :  { %8172 = vst [vmem:[#allocation125_spill] sm:$0xff] %v6086_v2 }
 0x30f   :  { %v966_v5 = vsel %vm927_vm3, %v5654_v43, %v4201_v4  ;;  %v6092_v12 = vsel %vm927_vm3, %v5789_v57, %v4202_v3  ;;  %v6107_v43 = vsel %vm477_vm1, %v5781_v40, %v4226_v16  ;;  %v1405_v57 = vld [vmem:[%s7914_s1 + $0xe0] sm:$0xff]  ;;  %v8176_v3 = vrot.slane %v5994_v47, 4 }
 0x310   :  { %v1030_v28 = vrot.slane %v966_v5, 4  ;;  %v7993_v58 = vrot.slane %v6092_v12, 4  ;;  %v6096_v45 = vpack.c.bf16 %v6092_v12, %v966_v5  ;;  %v6099_v10 = vpack.c.bf16 %v966_v5, %v5994_v47  ;;  %v6113_v60 = vpop.f32.mrf.mxu2 }
 0x311   :  { %8175 = vst [vmem:[#allocation128_spill] sm:$0xff] %v6113_v60  ;;  %v591_v27 = vrot.slane %v6107_v43, 2  ;;  %v1905_v34 = vadd.f32 %v1904_v59, %v1405_v57  ;;  %v6148_v59 = vld [vmem:[%s7912_s0 + $0x1d8] sm:$0xff]  ;;  %v4212_v57 = vunpack.i.h.bf16 %v6043_v49  ;;  %v6165_v60 = vpop.f32.mrf.mxu0 }
 0x312   :  { %8173 = vst [vmem:[#allocation126_spill] sm:$0xff] %v6096_v45  ;;  %1928 = vmatmul.bf16.gmra.mxu0 %v6096_v45  ;;  %2261 = vmatmul.bf16.gmra.mxu2 %v6099_v10  ;;  %v1082_v51 = vsel %vm1056_vm4, %v8176_v3, %v1030_v28  ;;  %v1081_v40 = vsel %vm1056_vm4, %v1030_v28, %v7993_v58  ;;  %v6132_v5 = vpop.f32.mrf.mxu3  ;;  %v6143_v3 = vld [vmem:[%s7912_s0 + $0x1d0] sm:$0xff] }
 0x313   :  { %8174 = vst [vmem:[#allocation127_spill] sm:$0xff] %v6099_v10  ;;  %v6125_v32 = vpack.c.bf16 %v1082_v51, %v6010_v23  ;;  %v6127_v4 = vpack.c.bf16 %v1081_v40, %v1082_v51  ;;  %v6138_v23 = vld [vmem:[%s7912_s0 + $0x1c8] sm:$0xff]  ;;  %v6189_v56 = vsel %vm927_vm3, %v5767_v29, %v4212_v57  ;;  %v8185_v29 = vrot.slane %v6039_v9, 1 }
 0x314   :  { %v4215_v15 = vpop.permute.xlu0 %4214  ;;  %8179 = vst [vmem:[#allocation131_spill] sm:$0xff] %v6132_v5  ;;  %v2073_v28 = vpop.f32.mrf.mxu1  ;;  %v4211_v5 = vunpack.i.l.bf16 %v6043_v49 }
 0x315   :  { %8177 = vst [vmem:[#allocation129_spill] sm:$0xff] %v6125_v32  ;;  %v4217_v47 = vunpack.i.h.bf16 %v4215_v15  ;;  %v4216_v16 = vunpack.i.l.bf16 %v4215_v15  ;;  %2092 = vmatmul.bf16.gmra.mxu1 %v6125_v32  ;;  %2430 = vmatmul.bf16.gmra.mxu3 %v6127_v4  ;;  %v2074_v58 = vadd.f32 %v2073_v28, %v1905_v34  ;;  %v147_v34 = vrot.slane %v6138_v23, 1 }
 0x316   :  { %8178 = vst [vmem:[#allocation130_spill] sm:$0xff] %v6127_v4  ;;  %v8182_v4 = vrot.slane %v6025_v20, 2 }
 0x317   :  { %v6153_v51 = vsel %vm477_vm1, %v5776_v63, %v4217_v47  ;;  %v6157_v15 = vsel %vm477_vm1, %v5663_v48, %v4216_v16  ;;  %8180 = vst [vmem:[#allocation132_spill] sm:$0xff] %v6165_v60  ;;  %v8181_v63 = vrot.slane %v6103_v44, 2  ;;  %v148_v47 = vrot.slane %v6143_v3, 1 }
 0x318   :  { %v590_v2 = vrot.slane %v6153_v51, 2  ;;  %v589_v7 = vrot.slane %v6157_v15, 2  ;;  %v2242_v28 = vpop.f32.mrf.mxu2  ;;  %v968_v16 = vsel %vm927_vm3, %v5785_v11, %v4211_v5 }
 0x319   :  { %v620_v48 = vsel %vm606_vm2, %v591_v27, %v8181_v63  ;;  %v146_v63 = vrot.slane %v6162_v52, 1  ;;  %v2243_v10 = vadd.f32 %v2242_v28, %v2074_v58  ;;  %v6211_v5 = vpack.c.bf16 %v6189_v56, %v968_v16 }
 0x31a   :  { %v621_v49 = vsel %vm606_vm2, %v590_v2, %v591_v27  ;;  %v622_v60 = vsel %vm606_vm2, %v589_v7, %v590_v2  ;;  %v623_v32 = vsel %vm606_vm2, %v8182_v4, %v589_v7  ;;  %v8184_v7 = vrot.slane %v6148_v59, 1 }
 0x31b   :  { %v4248_v45 = vpack.i.bf16 %v620_v48, %v621_v49  ;;  %v4238_v46 = vpack.i.bf16 %v622_v60, %v623_v32  ;;  %v2411_v2 = vpop.f32.mrf.mxu3  ;;  %v162_v60 = vsel %vm156_vm0, %v147_v34, %v148_v47  ;;  %v163_v11 = vsel %vm156_vm0, %v146_v63, %v147_v34  ;;  %v1909_v49 = vpop.f32.mrf.mxu0 }
 0x31c   :  { %v6193_v27 = vpop.f32.mrf.mxu1  ;;  %v161_v58 = vsel %vm156_vm0, %v148_v47, %v8184_v7  ;;  %v1032_v32 = vrot.slane %v968_v16, 4  ;;  %v1033_v4 = vrot.slane %v6189_v56, 4  ;;  %v6214_v57 = vpack.c.bf16 %v968_v16, %v6092_v12 }
 0x31d   :  { %4249 = vrot.lane.b32.xlu1 %v4248_v45, %s4310_s19  ;;  %4239 = vrot.lane.b32.xlu2 %v4238_v46, %s4310_s19  ;;  %8183 = vst [vmem:[#allocation133_spill] sm:$0xff] %v6193_v27  ;;  %v164_v45 = vsel %vm156_vm0, %v8185_v29, %v146_v63  ;;  %v6207_v46 = vadd.f32 %v2411_v2, %v2243_v10  ;;  %v8187_v34 = vrot.slane %v6092_v12, 4  ;;  %v1407_v10 = vld [vmem:[%s7914_s1 + $0xf0] sm:$0xff] }
 0x31e   :  { %v4263_v48 = vpack.i.bf16 %v161_v58, %v162_v60  ;;  %v4253_v47 = vpack.i.bf16 %v163_v11, %v164_v45  ;;  %v1079_v16 = vsel %vm1056_vm4, %v1032_v32, %v1033_v4  ;;  %v1910_v7 = vadd.f32 %v1909_v49, %v1407_v10 }
 0x31f   :  { %8186 = vst [vmem:[#allocation134_spill] sm:$0xff] %v6207_v46  ;;  %v1080_v28 = vsel %vm1056_vm4, %v8187_v34, %v1032_v32  ;;  %v3979_v34 = vld [vmem:[%s7913_s4 + $0x1a0] sm:$0xff] }
 0x320   :  { %v6224_v63 = vpop.f32.mrf.mxu2  ;;  %v6229_v2 = vpack.c.bf16 %v1080_v28, %v1081_v40  ;;  %v6231_v12 = vpack.c.bf16 %v1079_v16, %v1080_v28  ;;  %2842 = vmatpush.bf16.msrb.mxu2 %v3979_v34  ;;  %v3971_v28 = vld [vmem:[%s7913_s4 + $0x160] sm:$0xff] }
 0x321   :  { %8188 = vst [vmem:[#allocation135_spill] sm:$0xff] %v6224_v63  ;;  %2673 = vmatpush.bf16.msrb.mxu1 %v3971_v28 }
 0x322   :  { %1933 = vmatmul.bf16.gmra.mxu0 %v6211_v5  ;;  %2266 = vmatmul.bf16.gmra.mxu2 %v6214_v57 }
 0x323   :  { %v6236_v58 = vpop.f32.mrf.mxu3  ;;  %v6253_v10 = vpop.f32.mrf.mxu0 }
 0x324   :  { %8189 = vst [vmem:[#allocation136_spill] sm:$0xff] %v6236_v58  ;;  %v2078_v60 = vpop.f32.mrf.mxu1 }
 0x325   :  { %4264 = vrot.lane.b32.xlu1 %v4263_v48, %s4309_s21  ;;  %4254 = vrot.lane.b32.xlu2 %v4253_v47, %s4309_s21  ;;  %v2079_v11 = vadd.f32 %v2078_v60, %v1910_v7  ;;  %v3963_v48 = vld [vmem:[%s7913_s4 + $0x120] sm:$0xff]  ;;  %8191 = vst [vmem:[#allocation138_spill] sm:$0xff] %v6253_v10 }
 0x326   :  { %2097 = vmatmul.bf16.gmra.mxu1 %v6229_v2  ;;  %2435 = vmatmul.bf16.gmra.mxu3 %v6231_v12  ;;  %v3987_v47 = vld [vmem:[%s7913_s4 + $0x1e0] sm:$0xff] }
 0x327   :  { %2504 = vmatpush.bf16.msrb.mxu0 %v3963_v48  ;;  %3011 = vmatpush.bf16.msrb.mxu3 %v3987_v47  ;;  %v1409_v60 = vld [vmem:[%s7914_s1 + $0x100] sm:$0xff] }
 0x328   :  { %v2247_v29 = vpop.f32.mrf.mxu2 }
 0x329   :  { %v2248_v45 = vadd.f32 %v2247_v29, %v2079_v11 }
 0x32b   :  { %v2416_v32 = vpop.f32.mrf.mxu3  ;;  %v1914_v11 = vpop.f32.mrf.mxu0 }
 0x32c   :  { %v6239_v40 = vadd.f32 %v2416_v32, %v2248_v45  ;;  %v6255_v49 = vpop.f32.mrf.mxu1  ;;  %v1915_v48 = vadd.f32 %v1914_v11, %v1409_v60 }
 0x32d   :  { %8192 = vst [vmem:[#allocation139_spill] sm:$0xff] %v6255_v49 }
 0x32e   :  { %8190 = vst [vmem:[#allocation137_spill] sm:$0xff] %v6239_v40 }
 0x330   :  { %v6257_v7 = vpop.f32.mrf.mxu2 }
 0x331   :  { %8193 = vst [vmem:[#allocation140_spill] sm:$0xff] %v6257_v7 }
 0x333   :  { %v6262_v45 = vpop.f32.mrf.mxu3 }
 0x334   :  { %8194 = vst [vmem:[#allocation141_spill] sm:$0xff] %v6262_v45 }
 0x35d   :  { %v4220_v29 = vpop.permute.xlu1 %4219 }
 0x35e   :  { %v4222_v32 = vunpack.i.h.bf16 %v4220_v29  ;;  %v4221_v34 = vunpack.i.l.bf16 %v4220_v29 }
 0x360   :  { %v2083_v47 = vpop.f32.mrf.mxu1  ;;  %v970_v28 = vsel %vm927_vm3, %v5763_v24, %v4221_v34  ;;  %v971_v49 = vsel %vm927_vm3, %v5947_v42, %v4222_v32 }
 0x361   :  { %v2084_v10 = vadd.f32 %v2083_v47, %v1915_v48  ;;  %v1034_v7 = vrot.slane %v970_v28, 4  ;;  %v1035_v58 = vrot.slane %v971_v49, 4  ;;  %v6268_v63 = vpack.c.bf16 %v971_v49, %v970_v28 }
 0x362   :  { %v6271_v40 = vpack.c.bf16 %v970_v28, %v6189_v56 }
 0x363   :  { %1938 = vmatmul.bf16.gmra.mxu0 %v6268_v63  ;;  %v2252_v45 = vpop.f32.mrf.mxu2  ;;  %v1078_v60 = vsel %vm1056_vm4, %v1033_v4, %v1034_v7  ;;  %v1077_v24 = vsel %vm1056_vm4, %v1034_v7, %v1035_v58  ;;  %v6303_v7 = vld [vmem:[%s7912_s0 + $0x1e8] sm:$0xff] }
 0x364   :  { %8195 = vst [vmem:[#allocation142_spill] sm:$0xff] %v6271_v40  ;;  %v2253_v11 = vadd.f32 %v2252_v45, %v2084_v10  ;;  %2271 = vmatmul.bf16.gmra.mxu2 %v6271_v40  ;;  %v6279_v42 = vpack.c.bf16 %v1078_v60, %v1079_v16  ;;  %v6281_v29 = vpack.c.bf16 %v1077_v24, %v1078_v60  ;;  %v6298_v10 = vld [vmem:[%s7912_s0 + $0x1e0] sm:$0xff] }
 0x365   :  { %v4235_v32 = vpop.permute.xlu1 %4234 }
 0x366   :  { %8196 = vst [vmem:[#allocation143_spill] sm:$0xff] %v6279_v42  ;;  %v4237_v34 = vunpack.i.h.bf16 %v4235_v32  ;;  %v4236_v56 = vunpack.i.l.bf16 %v4235_v32  ;;  %2102 = vmatmul.bf16.gmra.mxu1 %v6279_v42  ;;  %v2421_v48 = vpop.f32.mrf.mxu3  ;;  %2440 = vmatmul.bf16.gmra.mxu3 %v6281_v29  ;;  %v8001_v32 = vrot.slane %v6303_v7, 1 }
 0x367   :  { %8197 = vst [vmem:[#allocation144_spill] sm:$0xff] %v6281_v29  ;;  %v6285_v47 = vadd.f32 %v2421_v48, %v2253_v11  ;;  %v150_v11 = vrot.slane %v6298_v10, 1 }
 0x368   :  { %v6289_v4 = vsel %vm477_vm1, %v5952_v19, %v4237_v34  ;;  %v6293_v16 = vsel %vm477_vm1, %v5838_v22, %v4236_v56  ;;  %v8199_v19 = vrot.slane %v6103_v44, 2  ;;  %v6317_v56 = vpop.f32.mrf.mxu0 }
 0x369   :  { %8198 = vst [vmem:[#allocation145_spill] sm:$0xff] %v6285_v47  ;;  %v8000_v45 = vrot.slane %v6289_v4, 2  ;;  %v593_v28 = vrot.slane %v6293_v16, 2  ;;  %v159_v48 = vsel %vm156_vm0, %v150_v11, %v8001_v32 }
 0x36a   :  { %8200 = vst [vmem:[#allocation146_spill] sm:$0xff] %v6317_v56 }
 0x36b   :  { %v618_v22 = vsel %vm606_vm2, %v593_v28, %v8000_v45  ;;  %v619_v60 = vsel %vm606_vm2, %v8199_v19, %v593_v28  ;;  %v8201_v45 = vrot.slane %v6148_v59, 1  ;;  %v6328_v28 = vpop.f32.mrf.mxu1  ;;  %v6330_v27 = vpop.f32.mrf.mxu2 }
 0x36c   :  { %v4258_v34 = vpack.i.bf16 %v618_v22, %v619_v60  ;;  %8202 = vst [vmem:[#allocation147_spill] sm:$0xff] %v6328_v28  ;;  %v1411_v22 = vld [vmem:[%s7914_s1 + $0x110] sm:$0xff] }
 0x36d   :  { %v160_v47 = vsel %vm156_vm0, %v8201_v45, %v150_v11  ;;  %8203 = vst [vmem:[#allocation148_spill] sm:$0xff] %v6330_v27 }
 0x36e   :  { %4259 = vrot.lane.b32.xlu0 %v4258_v34, %s4310_s19  ;;  %v4273_v19 = vpack.i.bf16 %v159_v48, %v160_v47  ;;  %v6336_v32 = vpop.f32.mrf.mxu3 }
 0x36f   :  { %8204 = vst [vmem:[#allocation149_spill] sm:$0xff] %v6336_v32 }
 0x370   :  { %v1919_v60 = vpop.f32.mrf.mxu0 }
 0x371   :  { %v1920_v42 = vadd.f32 %v1919_v60, %v1411_v22 }
 0x376   :  { %v4230_v56 = vpop.permute.xlu0 %4229  ;;  %4274 = vrot.lane.b32.xlu0 %v4273_v19, %s4309_s21 }
 0x377   :  { %v4240_v34 = vpop.permute.xlu2 %4239  ;;  %v4232_v46 = vunpack.i.h.bf16 %v4230_v56  ;;  %v4231_v29 = vunpack.i.l.bf16 %v4230_v56 }
 0x379   :  { %v2088_v45 = vpop.f32.mrf.mxu1  ;;  %v972_v47 = vsel %vm927_vm3, %v5943_v18, %v4231_v29  ;;  %v6342_v11 = vsel %vm927_vm3, %v6029_v8, %v4232_v46  ;;  %v4241_v29 = vunpack.i.l.bf16 %v4240_v34 }
 0x37a   :  { %v2089_v48 = vadd.f32 %v2088_v45, %v1920_v42  ;;  %v1036_v27 = vrot.slane %v972_v47, 4  ;;  %v8006_v28 = vrot.slane %v6342_v11, 4  ;;  %v6346_v40 = vpack.c.bf16 %v6342_v11, %v972_v47 }
 0x37b   :  { %v6348_v19 = vpack.c.bf16 %v972_v47, %v971_v49  ;;  %v4242_v42 = vunpack.i.h.bf16 %v4240_v34  ;;  %v6377_v34 = vld [vmem:[%s7912_s0 + $0x1f0] sm:$0xff] }
 0x37c   :  { %8205 = vst [vmem:[#allocation150_spill] sm:$0xff] %v6346_v40  ;;  %1943 = vmatmul.bf16.gmra.mxu0 %v6346_v40  ;;  %v2257_v56 = vpop.f32.mrf.mxu2  ;;  %v1076_v22 = vsel %vm1056_vm4, %v1035_v58, %v1036_v27  ;;  %v6357_v18 = vsel %vm1056_vm4, %v1036_v27, %v8006_v28 }
 0x37d   :  { %8206 = vst [vmem:[#allocation151_spill] sm:$0xff] %v6348_v19  ;;  %v2258_v8 = vadd.f32 %v2257_v56, %v2089_v48  ;;  %2276 = vmatmul.bf16.gmra.mxu2 %v6348_v19  ;;  %v6360_v46 = vpack.c.bf16 %v1076_v22, %v1077_v24  ;;  %v6363_v49 = vpack.c.bf16 %v6357_v18, %v1076_v22  ;;  %v6372_v24 = vld [vmem:[%s7912_s0 + $0x1f8] sm:$0xff] }
 0x37e   :  { %v4245_v45 = vpop.permute.xlu0 %4244 }
 0x37f   :  { %8207 = vst [vmem:[#allocation152_spill] sm:$0xff] %v6360_v46  ;;  %v4255_v60 = vpop.permute.xlu2 %4254  ;;  %v4247_v32 = vunpack.i.h.bf16 %v4245_v45  ;;  %v4246_v40 = vunpack.i.l.bf16 %v4245_v45  ;;  %2107 = vmatmul.bf16.gmra.mxu1 %v6360_v46  ;;  %v2426_v27 = vpop.f32.mrf.mxu3  ;;  %2445 = vmatmul.bf16.gmra.mxu3 %v6363_v49 }
 0x380   :  { %8208 = vst [vmem:[#allocation153_spill] sm:$0xff] %v6363_v49  ;;  %v4257_v47 = vunpack.i.h.bf16 %v4255_v60  ;;  %v4256_v58 = vunpack.i.l.bf16 %v4255_v60  ;;  %v6367_v48 = vadd.f32 %v2426_v27, %v2258_v8 }
 0x381   :  { %v6389_v8 = vsel %vm477_vm1, %v6034_v26, %v4247_v32  ;;  %v6393_v60 = vsel %vm477_vm1, %v5957_v0, %v4246_v40  ;;  %v153_v26 = vrot.slane %v6372_v24, 1  ;;  %v152_v0 = vrot.slane %v6377_v34, 1  ;;  %v3978_v40 = vld [vmem:[%s7913_s4 + $0x198] sm:$0xff] }
 0x382   :  { %8209 = vst [vmem:[#allocation154_spill] sm:$0xff] %v6367_v48  ;;  %v6381_v56 = vsel %vm477_vm1, %v6162_v52, %v4257_v47  ;;  %v6385_v22 = vsel %vm477_vm1, %v6039_v9, %v4256_v58  ;;  %v596_v28 = vrot.slane %v6389_v8, 2  ;;  %v595_v52 = vrot.slane %v6393_v60, 2  ;;  %v3962_v32 = vld [vmem:[%s7913_s4 + $0x118] sm:$0xff]  ;;  %2843 = vmatpush.bf16.msrb.mxu2 %v3978_v40 }
 0x383   :  { %v8010_v45 = vrot.slane %v6381_v56, 2  ;;  %v597_v27 = vrot.slane %v6385_v22, 2  ;;  %v974_v9 = vsel %vm927_vm3, %v6025_v20, %v4241_v29  ;;  %v6403_v47 = vsel %vm927_vm3, %v6157_v15, %v4242_v42  ;;  %v3986_v20 = vld [vmem:[%s7913_s4 + $0x1d8] sm:$0xff]  ;;  %v6416_v29 = vpop.f32.mrf.mxu0  ;;  %2505 = vmatpush.bf16.msrb.mxu0 %v3962_v32 }
 0x384   :  { %8210 = vst [vmem:[#allocation155_spill] sm:$0xff] %v6416_v29  ;;  %v616_v58 = vsel %vm606_vm2, %v595_v52, %v596_v28  ;;  %v8211_v48 = vrot.slane %v6289_v4, 2  ;;  %v3970_v29 = vld [vmem:[%s7913_s4 + $0x158] sm:$0xff]  ;;  %3012 = vmatpush.bf16.msrb.mxu3 %v3986_v20  ;;  %v6445_v40 = vpack.c.bf16 %v6403_v47, %v974_v9  ;;  %v8214_v32 = vrot.slane %v6342_v11, 4 }
 0x385   :  { %v614_v15 = vsel %vm606_vm2, %v597_v27, %v8010_v45  ;;  %v615_v42 = vsel %vm606_vm2, %v596_v28, %v597_v27  ;;  %v1038_v27 = vrot.slane %v974_v9, 4  ;;  %v1039_v28 = vrot.slane %v6403_v47, 4  ;;  %2674 = vmatpush.bf16.msrb.mxu1 %v3970_v29 }
 0x386   :  { %v617_v49 = vsel %vm606_vm2, %v8211_v48, %v595_v52  ;;  %v4278_v46 = vpack.i.bf16 %v614_v15, %v615_v42  ;;  %v157_v45 = vsel %vm156_vm0, %v152_v0, %v153_v26  ;;  %v8212_v48 = vrot.slane %v6303_v7, 1  ;;  %v6442_v52 = vpop.f32.mrf.mxu1 }
 0x387   :  { %v4268_v19 = vpack.i.bf16 %v616_v58, %v617_v49  ;;  %8213 = vst [vmem:[#allocation156_spill] sm:$0xff] %v6442_v52  ;;  %v1074_v20 = vsel %vm1056_vm4, %v8214_v32, %v1038_v27  ;;  %v1073_v15 = vsel %vm1056_vm4, %v1038_v27, %v1039_v28  ;;  %v8216_v29 = vrot.slane %v4354_v1, 1 }
 0x388   :  { %4279 = vrot.lane.b32.xlu1 %v4278_v46, %s4310_s19  ;;  %v158_v49 = vsel %vm156_vm0, %v8212_v48, %v152_v0  ;;  %v6448_v46 = vpack.c.bf16 %v974_v9, %v6342_v11  ;;  %v6456_v0 = vpop.f32.mrf.mxu2  ;;  %v1413_v11 = vld [vmem:[%s7914_s1 + $0x120] sm:$0xff]  ;;  %v6468_v58 = vpack.c.bf16 %v1074_v20, %v6357_v18  ;;  %v6470_v27 = vpack.c.bf16 %v1073_v15, %v1074_v20  ;;  %v6472_v48 = vpop.f32.mrf.mxu3  ;;  %v3977_v18 = vld [vmem:[%s7913_s4 + $0x190] sm:$0xff] }
 0x389   :  { %4269 = vrot.lane.b32.xlu2 %v4268_v19, %s4310_s19  ;;  %v4283_v19 = vpack.i.bf16 %v157_v45, %v158_v49  ;;  %8215 = vst [vmem:[#allocation157_spill] sm:$0xff] %v6456_v0  ;;  %v220_v9 = vsel %vm156_vm0, %v153_v26, %v8216_v29  ;;  %2844 = vmatpush.bf16.msrb.mxu2 %v3977_v18 }
 0x38a   :  { %8217 = vst [vmem:[#allocation158_spill] sm:$0xff] %v6468_v58 }
 0x38b   :  { %v1924_v42 = vpop.f32.mrf.mxu0  ;;  %8218 = vst [vmem:[#allocation159_spill] sm:$0xff] %v6470_v27 }
 0x38c   :  { %1948 = vmatmul.bf16.gmra.mxu0 %v6445_v40  ;;  %8219 = vst [vmem:[#allocation160_spill] sm:$0xff] %v6472_v48  ;;  %v1925_v1 = vadd.f32 %v1924_v42, %v1413_v11 }
 0x38d   :  { %2281 = vmatmul.bf16.gmra.mxu2 %v6448_v46 }
 0x38f   :  { %v4250_v45 = vpop.permute.xlu1 %4249  ;;  %2112 = vmatmul.bf16.gmra.mxu1 %v6468_v58  ;;  %2450 = vmatmul.bf16.gmra.mxu3 %v6470_v27 }
 0x390   :  { %411 = vrot.lane.b32.xlu1 %v220_v9, %s4309_s21  ;;  %v4252_v26 = vunpack.i.h.bf16 %v4250_v45  ;;  %v4251_v49 = vunpack.i.l.bf16 %v4250_v45 }
 0x391   :  { %4284 = vrot.lane.b32.xlu2 %v4283_v19, %s4309_s21 }
 0x392   :  { %v2093_v32 = vpop.f32.mrf.mxu1  ;;  %v976_v9 = vsel %vm927_vm3, %v6153_v51, %v4251_v49  ;;  %v6485_v19 = vsel %vm927_vm3, %v6107_v43, %v4252_v26 }
 0x393   :  { %v2094_v20 = vadd.f32 %v2093_v32, %v1925_v1  ;;  %v6487_v11 = vpop.f32.mrf.mxu0  ;;  %v1040_v27 = vrot.slane %v976_v9, 4  ;;  %v1041_v58 = vrot.slane %v6485_v19, 4  ;;  %v6505_v18 = vpack.c.bf16 %v6485_v19, %v976_v9 }
 0x394   :  { %8220 = vst [vmem:[#allocation161_spill] sm:$0xff] %v6487_v11 }
 0x395   :  { %v2262_v29 = vpop.f32.mrf.mxu2 }
 0x396   :  { %v2263_v42 = vadd.f32 %v2262_v29, %v2094_v20  ;;  %v8224_v20 = vrot.slane %v6381_v56, 2 }
 0x397   :  { %v4265_v45 = vpop.permute.xlu1 %4264 }
 0x398   :  { %v4267_v48 = vunpack.i.h.bf16 %v4265_v45  ;;  %v4266_v0 = vunpack.i.l.bf16 %v4265_v45  ;;  %v2431_v52 = vpop.f32.mrf.mxu3 }
 0x399   :  { %v6490_v1 = vadd.f32 %v2431_v52, %v2263_v42  ;;  %v6508_v52 = vpack.c.bf16 %v976_v9, %v6403_v47 }
 0x39a   :  { %v6494_v32 = vsel %vm477_vm1, %v6143_v3, %v4267_v48  ;;  %v6498_v43 = vsel %vm477_vm1, %v6138_v23, %v4266_v0  ;;  %v6500_v51 = vpop.f32.mrf.mxu1  ;;  %v1072_v3 = vsel %vm1056_vm4, %v1039_v28, %v1040_v27  ;;  %v1071_v48 = vsel %vm1056_vm4, %v1040_v27, %v1041_v58  ;;  %v1415_v27 = vld [vmem:[%s7914_s1 + $0x130] sm:$0xff] }
 0x39b   :  { %8221 = vst [vmem:[#allocation162_spill] sm:$0xff] %v6490_v1  ;;  %v8013_v26 = vrot.slane %v6494_v32, 2  ;;  %v599_v49 = vrot.slane %v6498_v43, 2  ;;  %v1929_v29 = vpop.f32.mrf.mxu0  ;;  %v6529_v9 = vpack.c.bf16 %v1072_v3, %v1073_v15  ;;  %v6531_v42 = vpack.c.bf16 %v1071_v48, %v1072_v3  ;;  %v3961_v15 = vld [vmem:[%s7913_s4 + $0x110] sm:$0xff] }
 0x39c   :  { %8222 = vst [vmem:[#allocation163_spill] sm:$0xff] %v6500_v51  ;;  %1953 = vmatmul.bf16.gmra.mxu0 %v6505_v18  ;;  %v3985_v3 = vld [vmem:[%s7913_s4 + $0x1d0] sm:$0xff] }
 0x39d   :  { %v6515_v23 = vpop.f32.mrf.mxu2  ;;  %v612_v0 = vsel %vm606_vm2, %v599_v49, %v8013_v26  ;;  %v613_v47 = vsel %vm606_vm2, %v8224_v20, %v599_v49  ;;  %2286 = vmatmul.bf16.gmra.mxu2 %v6508_v52  ;;  %8225 = vst [vmem:[#allocation165_spill] sm:$0xff] %v6529_v9  ;;  %v1930_v49 = vadd.f32 %v1929_v29, %v1415_v27 }
 0x39e   :  { %8223 = vst [vmem:[#allocation164_spill] sm:$0xff] %v6515_v23  ;;  %v4288_v28 = vpack.i.bf16 %v612_v0, %v613_v47  ;;  %2506 = vmatpush.bf16.msrb.mxu0 %v3961_v15  ;;  %3013 = vmatpush.bf16.msrb.mxu3 %v3985_v3 }
 0x39f   :  { %8226 = vst [vmem:[#allocation166_spill] sm:$0xff] %v6531_v42  ;;  %2117 = vmatmul.bf16.gmra.mxu1 %v6529_v9  ;;  %2455 = vmatmul.bf16.gmra.mxu3 %v6531_v42 }
 0x3a0   :  { %4289 = vrot.lane.b32.xlu0 %v4288_v28, %s4310_s19  ;;  %v6534_v45 = vpop.f32.mrf.mxu3  ;;  %v3969_v28 = vld [vmem:[%s7913_s4 + $0x150] sm:$0xff] }
 0x3a1   :  { %8227 = vst [vmem:[#allocation167_spill] sm:$0xff] %v6534_v45  ;;  %2675 = vmatpush.bf16.msrb.mxu1 %v3969_v28 }
 0x3a3   :  { %v2098_v20 = vpop.f32.mrf.mxu1  ;;  %v6549_v27 = vpop.f32.mrf.mxu0 }
 0x3a4   :  { %v2099_v0 = vadd.f32 %v2098_v20, %v1930_v49  ;;  %8229 = vst [vmem:[#allocation169_spill] sm:$0xff] %v6549_v27 }
 0x3a5   :  { %v2267_v47 = vpop.f32.mrf.mxu2 }
 0x3a6   :  { %v2268_v26 = vadd.f32 %v2267_v47, %v2099_v0 }
 0x3a9   :  { %v2436_v23 = vpop.f32.mrf.mxu3 }
 0x3aa   :  { %v6538_v51 = vadd.f32 %v2436_v23, %v2268_v26  ;;  %v1417_v26 = vld [vmem:[%s7914_s1 + $0x140] sm:$0xff] }
 0x3ab   :  { %v6551_v29 = vpop.f32.mrf.mxu1  ;;  %v1934_v23 = vpop.f32.mrf.mxu0 }
 0x3ac   :  { %8228 = vst [vmem:[#allocation168_spill] sm:$0xff] %v6538_v51  ;;  %v1935_v45 = vadd.f32 %v1934_v23, %v1417_v26 }
 0x3ad   :  { %8230 = vst [vmem:[#allocation170_spill] sm:$0xff] %v6551_v29  ;;  %v6556_v49 = vpop.f32.mrf.mxu2 }
 0x3ae   :  { %8231 = vst [vmem:[#allocation171_spill] sm:$0xff] %v6556_v49 }
 0x3b1   :  { %v6558_v0 = vpop.f32.mrf.mxu3 }
 0x3b2   :  { %8232 = vst [vmem:[#allocation172_spill] sm:$0xff] %v6558_v0 }
 0x3e0   :  { %v4260_v20 = vpop.permute.xlu0 %4259 }
 0x3e1   :  { %v4262_v47 = vunpack.i.h.bf16 %v4260_v20  ;;  %v4261_v15 = vunpack.i.l.bf16 %v4260_v20 }
 0x3e3   :  { %v4270_v3 = vpop.permute.xlu2 %4269  ;;  %v2103_v51 = vpop.f32.mrf.mxu1  ;;  %v978_v28 = vsel %vm927_vm3, %v6103_v44, %v4261_v15  ;;  %v979_v29 = vsel %vm927_vm3, %v6293_v16, %v4262_v47 }
 0x3e4   :  { %v2104_v27 = vadd.f32 %v2103_v51, %v1935_v45  ;;  %v1042_v11 = vrot.slane %v978_v28, 4  ;;  %v1043_v1 = vrot.slane %v979_v29, 4  ;;  %v6564_v42 = vpack.c.bf16 %v979_v29, %v978_v28 }
 0x3e5   :  { %v6567_v49 = vpack.c.bf16 %v978_v28, %v6485_v19  ;;  %v4272_v47 = vunpack.i.h.bf16 %v4270_v3  ;;  %v4271_v19 = vunpack.i.l.bf16 %v4270_v3 }
 0x3e6   :  { %8233 = vst [vmem:[#allocation173_spill] sm:$0xff] %v6564_v42  ;;  %1958 = vmatmul.bf16.gmra.mxu0 %v6564_v42  ;;  %v1070_v26 = vsel %vm1056_vm4, %v1041_v58, %v1042_v11  ;;  %v1069_v23 = vsel %vm1056_vm4, %v1042_v11, %v1043_v1 }
 0x3e7   :  { %v2272_v44 = vpop.f32.mrf.mxu2  ;;  %2291 = vmatmul.bf16.gmra.mxu2 %v6567_v49  ;;  %v6575_v16 = vpack.c.bf16 %v1070_v26, %v1071_v48  ;;  %v6577_v51 = vpack.c.bf16 %v1069_v23, %v1070_v26  ;;  %v6583_v48 = vpop.f32.mrf.mxu0 }
 0x3e8   :  { %v2273_v45 = vadd.f32 %v2272_v44, %v2104_v27  ;;  %v4275_v20 = vpop.permute.xlu0 %4274  ;;  %8235 = vst [vmem:[#allocation175_spill] sm:$0xff] %v6583_v48 }
 0x3e9   :  { %v4277_v15 = vunpack.i.h.bf16 %v4275_v20  ;;  %v4276_v28 = vunpack.i.l.bf16 %v4275_v20  ;;  %2122 = vmatmul.bf16.gmra.mxu1 %v6575_v16  ;;  %v2441_v58 = vpop.f32.mrf.mxu3  ;;  %2460 = vmatmul.bf16.gmra.mxu3 %v6577_v51 }
 0x3ea   :  { %v6581_v9 = vadd.f32 %v2441_v58, %v2273_v45 }
 0x3eb   :  { %v4285_v0 = vpop.permute.xlu2 %4284  ;;  %v6587_v27 = vsel %vm477_vm1, %v6298_v10, %v4277_v15  ;;  %v6591_v3 = vsel %vm477_vm1, %v6148_v59, %v4276_v28  ;;  %v980_v59 = vsel %vm927_vm3, %v6289_v4, %v4271_v19  ;;  %v981_v15 = vsel %vm927_vm3, %v6393_v60, %v4272_v47  ;;  %v6621_v47 = vpop.f32.mrf.mxu1 }
 0x3ec   :  { %v4287_v11 = vunpack.i.h.bf16 %v4285_v0  ;;  %v4286_v42 = vunpack.i.l.bf16 %v4285_v0  ;;  %8234 = vst [vmem:[#allocation174_spill] sm:$0xff] %v6581_v9  ;;  %v602_v26 = vrot.slane %v6587_v27, 2  ;;  %v601_v44 = vrot.slane %v6591_v3, 2 }
 0x3ed   :  { %v1044_v4 = vrot.slane %v980_v59, 4  ;;  %v1045_v19 = vrot.slane %v981_v15, 4  ;;  %8237 = vst [vmem:[#allocation176_spill] sm:$0xff] %v6621_v47  ;;  %v6623_v48 = vpack.c.bf16 %v981_v15, %v980_v59 }
 0x3ee   :  { %v6597_v20 = vsel %vm477_vm1, %v6377_v34, %v4287_v11  ;;  %v6601_v0 = vsel %vm477_vm1, %v6303_v7, %v4286_v42  ;;  %v610_v28 = vsel %vm606_vm2, %v601_v44, %v602_v26  ;;  %v8236_v34 = vrot.slane %v6494_v32, 2 }
 0x3ef   :  { %v604_v45 = vrot.slane %v6597_v20, 2  ;;  %v603_v10 = vrot.slane %v6601_v0, 2  ;;  %v1939_v60 = vpop.f32.mrf.mxu0  ;;  %8238 = vst [vmem:[#allocation177_spill] sm:$0xff] %v6623_v48 }
 0x3f0   :  { %v611_v58 = vsel %vm606_vm2, %v8236_v34, %v601_v44  ;;  %v1068_v44 = vsel %vm1056_vm4, %v1043_v1, %v1044_v4  ;;  %v6629_v34 = vpack.c.bf16 %v980_v59, %v979_v29 }
 0x3f1   :  { %v4293_v7 = vpack.i.bf16 %v610_v28, %v611_v58  ;;  %v608_v42 = vsel %vm606_vm2, %v603_v10, %v604_v45  ;;  %v609_v11 = vsel %vm606_vm2, %v602_v26, %v603_v10  ;;  %v1067_v28 = vsel %vm1056_vm4, %v1044_v4, %v1045_v19  ;;  %v1419_v10 = vld [vmem:[%s7914_s1 + $0x150] sm:$0xff]  ;;  %v6640_v58 = vpop.f32.mrf.mxu2  ;;  %v6644_v29 = vpop.f32.mrf.mxu3 }
 0x3f2   :  { %v4298_v9 = vpack.i.bf16 %v608_v42, %v609_v11  ;;  %8239 = vst [vmem:[#allocation178_spill] sm:$0xff] %v6629_v34  ;;  %v6633_v26 = vpack.c.bf16 %v1068_v44, %v1069_v23  ;;  %v1940_v42 = vadd.f32 %v1939_v60, %v1419_v10  ;;  %v3976_v10 = vld [vmem:[%s7913_s4 + $0x188] sm:$0xff] }
 0x3f3   :  { %4294 = vrot.lane.b32.xlu2 %v4293_v7, %s4310_s19  ;;  %8242 = vst [vmem:[#allocation181_spill] sm:$0xff] %v6640_v58  ;;  %2845 = vmatpush.bf16.msrb.mxu2 %v3976_v10 }
 0x3f4   :  { %4299 = vrot.lane.b32.xlu0 %v4298_v9, %s4310_s19  ;;  %8240 = vst [vmem:[#allocation179_spill] sm:$0xff] %v6633_v26  ;;  %v6635_v9 = vpack.c.bf16 %v1067_v28, %v1068_v44 }
 0x3f5   :  { %8243 = vst [vmem:[#allocation182_spill] sm:$0xff] %v6644_v29 }
 0x3f6   :  { %1963 = vmatmul.bf16.gmra.mxu0 %v6623_v48  ;;  %8241 = vst [vmem:[#allocation180_spill] sm:$0xff] %v6635_v9 }
 0x3f7   :  { %2296 = vmatmul.bf16.gmra.mxu2 %v6629_v34  ;;  %v6646_v11 = vpop.f32.mrf.mxu0 }
 0x3f8   :  { %8244 = vst [vmem:[#allocation183_spill] sm:$0xff] %v6646_v11 }
 0x3f9   :  { %2127 = vmatmul.bf16.gmra.mxu1 %v6633_v26  ;;  %2465 = vmatmul.bf16.gmra.mxu3 %v6635_v9 }
 0x3fa   :  { %v4280_v1 = vpop.permute.xlu1 %4279 }
 0x3fb   :  { %v4282_v59 = vunpack.i.h.bf16 %v4280_v1  ;;  %v4281_v7 = vunpack.i.l.bf16 %v4280_v1 }
 0x3fc   :  { %v2108_v23 = vpop.f32.mrf.mxu1 }
 0x3fd   :  { %v2109_v4 = vadd.f32 %v2108_v23, %v1940_v42  ;;  %v982_v44 = vsel %vm927_vm3, %v6389_v8, %v4281_v7  ;;  %v983_v58 = vsel %vm927_vm3, %v6385_v22, %v4282_v59 }
 0x3fe   :  { %v1046_v34 = vrot.slane %v982_v44, 4  ;;  %v1047_v26 = vrot.slane %v983_v58, 4  ;;  %v6664_v22 = vpack.c.bf16 %v983_v58, %v982_v44  ;;  %v6676_v42 = vpack.c.bf16 %v982_v44, %v981_v15 }
 0x3ff   :  { %v1944_v59 = vpop.f32.mrf.mxu0 }
 0x400   :  { %v2277_v47 = vpop.f32.mrf.mxu2 }
 0x401   :  { %v2278_v48 = vadd.f32 %v2277_v47, %v2109_v4  ;;  %v1066_v47 = vsel %vm1056_vm4, %v1045_v19, %v1046_v34  ;;  %v8247_v19 = vrot.slane %v4463_v54, 2  ;;  %v1421_v54 = vld [vmem:[%s7914_s1 + $0x160] sm:$0xff] }
 0x402   :  { %v412_v9 = vpop.permute.xlu1 %411  ;;  %v2446_v60 = vpop.f32.mrf.mxu3  ;;  %v6689_v15 = vpack.c.bf16 %v1066_v47, %v1067_v28  ;;  %v1945_v28 = vadd.f32 %v1944_v59, %v1421_v54 }
 0x403   :  { %v6654_v29 = vsel %vm477_vm1, %v6372_v24, %v412_v9  ;;  %v6660_v8 = vadd.f32 %v2446_v60, %v2278_v48  ;;  %v1065_v24 = vsel %vm1056_vm4, %v1046_v34, %v1047_v26  ;;  %v3960_v9 = vld [vmem:[%s7913_s4 + $0x108] sm:$0xff] }
 0x404   :  { %v605_v1 = vrot.slane %v6654_v29, 2  ;;  %v6662_v7 = vpop.f32.mrf.mxu1  ;;  %v3984_v48 = vld [vmem:[%s7913_s4 + $0x1c8] sm:$0xff]  ;;  %v6691_v44 = vpack.c.bf16 %v1065_v24, %v1066_v47  ;;  %2507 = vmatpush.bf16.msrb.mxu0 %v3960_v9 }
 0x405   :  { %8245 = vst [vmem:[#allocation184_spill] sm:$0xff] %v6660_v8  ;;  %3014 = vmatpush.bf16.msrb.mxu3 %v3984_v48  ;;  %v3968_v60 = vld [vmem:[%s7913_s4 + $0x148] sm:$0xff] }
 0x406   :  { %8246 = vst [vmem:[#allocation185_spill] sm:$0xff] %v6662_v7  ;;  %v607_v23 = vsel %vm606_vm2, %v604_v45, %v605_v1  ;;  %v670_v34 = vsel %vm606_vm2, %v605_v1, %v8247_v19  ;;  %1968 = vmatmul.bf16.gmra.mxu0 %v6664_v22  ;;  %2676 = vmatpush.bf16.msrb.mxu1 %v3968_v60 }
 0x407   :  { %v4303_v4 = vpack.i.bf16 %v670_v34, %v607_v23  ;;  %2301 = vmatmul.bf16.gmra.mxu2 %v6676_v42  ;;  %v6703_v48 = vpop.f32.mrf.mxu0 }
 0x408   :  { %v6693_v45 = vpop.f32.mrf.mxu2  ;;  %8250 = vst [vmem:[#allocation188_spill] sm:$0xff] %v6703_v48 }
 0x409   :  { %8248 = vst [vmem:[#allocation186_spill] sm:$0xff] %v6693_v45  ;;  %4304 = vrot.lane.b32.xlu1 %v4303_v4, %s4310_s19  ;;  %2132 = vmatmul.bf16.gmra.mxu1 %v6689_v15 }
 0x40a   :  { %2470 = vmatmul.bf16.gmra.mxu3 %v6691_v44  ;;  %v6701_v10 = vpop.f32.mrf.mxu3 }
 0x40b   :  { %8249 = vst [vmem:[#allocation187_spill] sm:$0xff] %v6701_v10 }
 0x40c   :  { %v2113_v1 = vpop.f32.mrf.mxu1 }
 0x40d   :  { %v2114_v47 = vadd.f32 %v2113_v1, %v1945_v28 }
 0x410   :  { %v2282_v9 = vpop.f32.mrf.mxu2 }
 0x411   :  { %v2283_v23 = vadd.f32 %v2282_v9, %v2114_v47 }
 0x412   :  { %v4290_v19 = vpop.permute.xlu0 %4289  ;;  %v2451_v60 = vpop.f32.mrf.mxu3 }
 0x413   :  { %v4292_v34 = vunpack.i.h.bf16 %v4290_v19  ;;  %v4291_v4 = vunpack.i.l.bf16 %v4290_v19  ;;  %v6705_v45 = vadd.f32 %v2451_v60, %v2283_v23 }
 0x414   :  { %v6711_v10 = vpop.f32.mrf.mxu1 }
 0x415   :  { %8251 = vst [vmem:[#allocation189_spill] sm:$0xff] %v6705_v45  ;;  %v984_v7 = vsel %vm927_vm3, %v6381_v56, %v4291_v4  ;;  %v985_v11 = vsel %vm927_vm3, %v6498_v43, %v4292_v34 }
 0x416   :  { %8252 = vst [vmem:[#allocation190_spill] sm:$0xff] %v6711_v10  ;;  %v1048_v59 = vrot.slane %v984_v7, 4  ;;  %v1049_v54 = vrot.slane %v985_v11, 4  ;;  %v6713_v28 = vpack.c.bf16 %v985_v11, %v984_v7  ;;  %v6715_v1 = vpack.c.bf16 %v984_v7, %v983_v58  ;;  %v1423_v58 = vld [vmem:[%s7914_s1 + $0x170] sm:$0xff]  ;;  %v1949_v7 = vpop.f32.mrf.mxu0  ;;  %v3959_v10 = vld [vmem:[%s7913_s4 + $0x100] sm:$0xff] }
 0x417   :  { %2508 = vmatpush.bf16.msrb.mxu0 %v3959_v10 }
 0x418   :  { %1973 = vmatmul.bf16.gmra.mxu0 %v6713_v28  ;;  %2306 = vmatmul.bf16.gmra.mxu2 %v6715_v1  ;;  %v1064_v47 = vsel %vm1056_vm4, %v1047_v26, %v1048_v59  ;;  %v1063_v56 = vsel %vm1056_vm4, %v1048_v59, %v1049_v54  ;;  %v6723_v9 = vpop.f32.mrf.mxu2  ;;  %v1950_v26 = vadd.f32 %v1949_v7, %v1423_v58  ;;  %v3967_v58 = vld [vmem:[%s7913_s4 + $0x140] sm:$0xff] }
 0x419   :  { %8253 = vst [vmem:[#allocation191_spill] sm:$0xff] %v6723_v9  ;;  %v6725_v43 = vpack.c.bf16 %v1064_v47, %v1065_v24  ;;  %v6727_v23 = vpack.c.bf16 %v1063_v56, %v1064_v47  ;;  %v3975_v47 = vld [vmem:[%s7913_s4 + $0x180] sm:$0xff]  ;;  %2677 = vmatpush.bf16.msrb.mxu1 %v3967_v58 }
 0x41a   :  { %v6734_v19 = vpop.f32.mrf.mxu3  ;;  %2846 = vmatpush.bf16.msrb.mxu2 %v3975_v47 }
 0x41b   :  { %2137 = vmatmul.bf16.gmra.mxu1 %v6725_v43  ;;  %2475 = vmatmul.bf16.gmra.mxu3 %v6727_v23  ;;  %8254 = vst [vmem:[#allocation192_spill] sm:$0xff] %v6734_v19  ;;  %v3983_v19 = vld [vmem:[%s7913_s4 + $0x1c0] sm:$0xff] }
 0x41c   :  { %v2118_v34 = vpop.f32.mrf.mxu1  ;;  %3015 = vmatpush.bf16.msrb.mxu3 %v3983_v19 }
 0x41d   :  { %v2119_v4 = vadd.f32 %v2118_v34, %v1950_v26 }
 0x420   :  { %v2287_v60 = vpop.f32.mrf.mxu2 }
 0x421   :  { %v2288_v59 = vadd.f32 %v2287_v60, %v2119_v4 }
 0x422   :  { %v2456_v24 = vpop.f32.mrf.mxu3 }
 0x423   :  { %v6736_v9 = vadd.f32 %v2456_v24, %v2288_v59  ;;  %v6754_v59 = vpop.f32.mrf.mxu0 }
 0x424   :  { %8256 = vst [vmem:[#allocation194_spill] sm:$0xff] %v6754_v59 }
 0x425   :  { %8255 = vst [vmem:[#allocation193_spill] sm:$0xff] %v6736_v9 }
 0x44d   :  { %v4295_v7 = vpop.permute.xlu2 %4294 }
 0x44e   :  { %v4297_v26 = vunpack.i.h.bf16 %v4295_v7  ;;  %v4296_v34 = vunpack.i.l.bf16 %v4295_v7 }
 0x450   :  { %v987_v4 = vsel %vm927_vm3, %v6591_v3, %v4297_v26  ;;  %v986_v60 = vsel %vm927_vm3, %v6494_v32, %v4296_v34  ;;  %v6772_v26 = vpop.f32.mrf.mxu1  ;;  %v1425_v34 = vld [vmem:[%s7914_s1 + $0x180] sm:$0xff] }
 0x451   :  { %v1051_v24 = vrot.slane %v987_v4, 4  ;;  %v1050_v47 = vrot.slane %v986_v60, 4  ;;  %v6756_v10 = vpack.c.bf16 %v987_v4, %v986_v60  ;;  %v6758_v19 = vpack.c.bf16 %v986_v60, %v985_v11  ;;  %v1954_v11 = vpop.f32.mrf.mxu0  ;;  %8260 = vst [vmem:[#allocation198_spill] sm:$0xff] %v6772_v26  ;;  %v6777_v60 = vpop.f32.mrf.mxu2 }
 0x452   :  { %8261 = vst [vmem:[#allocation199_spill] sm:$0xff] %v6777_v60 }
 0x453   :  { %8257 = vst [vmem:[#allocation195_spill] sm:$0xff] %v6758_v19  ;;  %1978 = vmatmul.bf16.gmra.mxu0 %v6756_v10  ;;  %2311 = vmatmul.bf16.gmra.mxu2 %v6758_v19  ;;  %v1062_v58 = vsel %vm1056_vm4, %v1049_v54, %v1050_v47  ;;  %v1061_v3 = vsel %vm1056_vm4, %v1050_v47, %v1051_v24  ;;  %v6781_v47 = vpop.f32.mrf.mxu3 }
 0x454   :  { %v6766_v7 = vpack.c.bf16 %v1062_v58, %v1063_v56  ;;  %v6768_v32 = vpack.c.bf16 %v1061_v3, %v1062_v58  ;;  %8263 = vst [vmem:[#allocation201_spill] sm:$0xff] %v6781_v47  ;;  %v1955_v58 = vadd.f32 %v1954_v11, %v1425_v34 }
 0x456   :  { %8258 = vst [vmem:[#allocation196_spill] sm:$0xff] %v6766_v7  ;;  %2142 = vmatmul.bf16.gmra.mxu1 %v6766_v7  ;;  %2480 = vmatmul.bf16.gmra.mxu3 %v6768_v32 }
 0x457   :  { %8259 = vst [vmem:[#allocation197_spill] sm:$0xff] %v6768_v32 }
 0x459   :  { %v6779_v54 = vpop.f32.mrf.mxu0 }
 0x45a   :  { %8262 = vst [vmem:[#allocation200_spill] sm:$0xff] %v6779_v54 }
 0x466   :  { %v4300_v56 = vpop.permute.xlu0 %4299  ;;  %v2123_v48 = vpop.f32.mrf.mxu1 }
 0x467   :  { %v4302_v59 = vunpack.i.h.bf16 %v4300_v56  ;;  %v4301_v9 = vunpack.i.l.bf16 %v4300_v56  ;;  %v2124_v8 = vadd.f32 %v2123_v48, %v1955_v58 }
 0x469   :  { %v989_v45 = vsel %vm927_vm3, %v6601_v0, %v4302_v59  ;;  %v988_v26 = vsel %vm927_vm3, %v6587_v27, %v4301_v9  ;;  %v1959_v59 = vpop.f32.mrf.mxu0 }
 0x46a   :  { %v1053_v32 = vrot.slane %v989_v45, 4  ;;  %v1052_v7 = vrot.slane %v988_v26, 4  ;;  %v6787_v19 = vpack.c.bf16 %v989_v45, %v988_v26  ;;  %v6789_v60 = vpack.c.bf16 %v988_v26, %v987_v4  ;;  %v2292_v54 = vpop.f32.mrf.mxu2 }
 0x46b   :  { %v2293_v27 = vadd.f32 %v2292_v54, %v2124_v8 }
 0x46c   :  { %1983 = vmatmul.bf16.gmra.mxu0 %v6787_v19  ;;  %2316 = vmatmul.bf16.gmra.mxu2 %v6789_v60  ;;  %v1060_v11 = vsel %vm1056_vm4, %v1051_v24, %v1052_v7  ;;  %v1059_v0 = vsel %vm1056_vm4, %v1052_v7, %v1053_v32  ;;  %v2461_v34 = vpop.f32.mrf.mxu3  ;;  %v1427_v24 = vld [vmem:[%s7914_s1 + $0x190] sm:$0xff] }
 0x46d   :  { %v6797_v48 = vpack.c.bf16 %v1060_v11, %v1061_v3  ;;  %v6799_v9 = vpack.c.bf16 %v1059_v0, %v1060_v11  ;;  %v6802_v4 = vadd.f32 %v2461_v34, %v2293_v27  ;;  %v1960_v3 = vadd.f32 %v1959_v59, %v1427_v24 }
 0x46e   :  { %v6805_v26 = vpop.f32.mrf.mxu1 }
 0x46f   :  { %8264 = vst [vmem:[#allocation202_spill] sm:$0xff] %v6797_v48  ;;  %2147 = vmatmul.bf16.gmra.mxu1 %v6797_v48  ;;  %2485 = vmatmul.bf16.gmra.mxu3 %v6799_v9 }
 0x470   :  { %8265 = vst [vmem:[#allocation203_spill] sm:$0xff] %v6799_v9 }
 0x471   :  { %8266 = vst [vmem:[#allocation204_spill] sm:$0xff] %v6802_v4  ;;  %v6814_v54 = vpop.f32.mrf.mxu0 }
 0x472   :  { %8267 = vst [vmem:[#allocation205_spill] sm:$0xff] %v6805_v26  ;;  %v6810_v7 = vpop.f32.mrf.mxu2 }
 0x473   :  { %8268 = vst [vmem:[#allocation206_spill] sm:$0xff] %v6810_v7 }
 0x474   :  { %v6812_v8 = vpop.f32.mrf.mxu3  ;;  %8270 = vst [vmem:[#allocation208_spill] sm:$0xff] %v6814_v54 }
 0x475   :  { %8269 = vst [vmem:[#allocation207_spill] sm:$0xff] %v6812_v8 }
 0x476   :  { %v2128_v56 = vpop.f32.mrf.mxu1 }
 0x477   :  { %v2129_v58 = vadd.f32 %v2128_v56, %v1960_v3 }
 0x479   :  { %v1964_v56 = vpop.f32.mrf.mxu0 }
 0x47a   :  { %v2297_v27 = vpop.f32.mrf.mxu2 }
 0x47b   :  { %v4305_v11 = vpop.permute.xlu1 %4304  ;;  %v2298_v4 = vadd.f32 %v2297_v27, %v2129_v58 }
 0x47c   :  { %v4307_v34 = vunpack.i.h.bf16 %v4305_v11  ;;  %v4306_v47 = vunpack.i.l.bf16 %v4305_v11  ;;  %v2466_v9 = vpop.f32.mrf.mxu3 }
 0x47d   :  { %v6820_v7 = vadd.f32 %v2466_v9, %v2298_v4 }
 0x47e   :  { %v991_v26 = vsel %vm927_vm3, %v6654_v29, %v4307_v34  ;;  %v990_v48 = vsel %vm927_vm3, %v6597_v20, %v4306_v47  ;;  %v6822_v24 = vpop.f32.mrf.mxu1 }
 0x47f   :  { %8271 = vst [vmem:[#allocation209_spill] sm:$0xff] %v6820_v7  ;;  %v1055_v8 = vrot.slane %v991_v26, 4  ;;  %v1054_v59 = vrot.slane %v990_v48, 4  ;;  %v6824_v54 = vpack.c.bf16 %v991_v26, %v990_v48  ;;  %v6826_v3 = vpack.c.bf16 %v990_v48, %v989_v45  ;;  %v1429_v45 = vld [vmem:[%s7914_s1 + $0x1a0] sm:$0xff] }
 0x480   :  { %8272 = vst [vmem:[#allocation210_spill] sm:$0xff] %v6822_v24  ;;  %v8275_v7 = vrot.slane %v4726_v31, 4 }
 0x481   :  { %1988 = vmatmul.bf16.gmra.mxu0 %v6824_v54  ;;  %2321 = vmatmul.bf16.gmra.mxu2 %v6826_v3  ;;  %v1058_v29 = vsel %vm1056_vm4, %v1053_v32, %v1054_v59  ;;  %v1057_v20 = vsel %vm1056_vm4, %v1054_v59, %v1055_v8  ;;  %v1965_v32 = vadd.f32 %v1964_v56, %v1429_v45  ;;  %v6847_v27 = vpop.f32.mrf.mxu0 }
 0x482   :  { %v6834_v47 = vpack.c.bf16 %v1058_v29, %v1059_v0  ;;  %v6836_v9 = vpack.c.bf16 %v1057_v20, %v1058_v29  ;;  %v6841_v48 = vpop.f32.mrf.mxu2 }
 0x483   :  { %8273 = vst [vmem:[#allocation211_spill] sm:$0xff] %v6841_v48  ;;  %v6854_v48 = vpack.c.bf16 %v4726_v31, %v991_v26  ;;  %v1431_v26 = vld [vmem:[%s7914_s1 + $0x1b0] sm:$0xff] }
 0x484   :  { %2152 = vmatmul.bf16.gmra.mxu1 %v6834_v47  ;;  %2490 = vmatmul.bf16.gmra.mxu3 %v6836_v9  ;;  %v6845_v4 = vpop.f32.mrf.mxu3 }
 0x485   :  { %8274 = vst [vmem:[#allocation212_spill] sm:$0xff] %v6845_v4  ;;  %v1120_v4 = vsel %vm1056_vm4, %v1055_v8, %v8275_v7 }
 0x486   :  { %v2133_v58 = vpop.f32.mrf.mxu1  ;;  %v6862_v56 = vpack.c.bf16 %v1120_v4, %v1057_v20  ;;  %v6865_v45 = vpack.c.bf16 %v4762_v39, %v1120_v4 }
 0x487   :  { %v2134_v11 = vadd.f32 %v2133_v58, %v1965_v32 }
 0x489   :  { %v1969_v58 = vpop.f32.mrf.mxu0 }
 0x48a   :  { %v2302_v0 = vpop.f32.mrf.mxu2  ;;  %v1970_v31 = vadd.f32 %v1969_v58, %v1431_v26  ;;  %v8286_v26 = vld [vmem:[#allocation10_spill] sm:$0xff]  ;;  %v8287_v58 = vld [vmem:[#allocation11_spill] sm:$0xff] }
 0x48b   :  { %v2303_v34 = vadd.f32 %v2302_v0, %v2134_v11  ;;  %v8283_v0 = vld [vmem:[#allocation8_spill] sm:$0xff] }
 0x48d   :  { %v2471_v59 = vpop.f32.mrf.mxu3 }
 0x48e   :  { %v6849_v29 = vadd.f32 %v2471_v59, %v2303_v34  ;;  %v6851_v24 = vpop.f32.mrf.mxu1 }
 0x491   :  { %2326 = vmatmul.bf16.gmra.mxu2 %v6854_v48  ;;  %2509 = vmatmul.bf16.vlgmr.msrb.gmra.mxu0 %v4881_v62  ;;  %v6886_v11 = vpop.f32.mrf.mxu0 }
 0x492   :  { %v6867_v32 = vpop.f32.mrf.mxu2  ;;  %8277 = vst [vmem:[#allocation214_spill] sm:$0xff] %v6886_v11  ;;  %v8321_v11 = vld [vmem:[#allocation56_spill] sm:$0xff] }
 0x494   :  { %2157 = vmatmul.bf16.gmra.mxu1 %v6862_v56  ;;  %2495 = vmatmul.bf16.gmra.mxu3 %v6865_v45 }
 0x495   :  { %v6874_v6 = vpop.f32.mrf.mxu3 }
 0x496   :  { %8276 = vst [vmem:[#allocation213_spill] sm:$0xff] %v6874_v6  ;;  %v8341_v6 = vld [vmem:[#allocation76_spill] sm:$0xff] }
 0x498   :  { %v2138_v62 = vpop.f32.mrf.mxu1 }
 0x499   :  { %v2139_v7 = vadd.f32 %v2138_v62, %v1970_v31 }
 0x49b   :  { %v2307_v8 = vpop.f32.mrf.mxu2 }
 0x49c   :  { %v2308_v20 = vadd.f32 %v2307_v8, %v2139_v7 }
 0x49e   :  { %v2476_v39 = vpop.f32.mrf.mxu3 }
 0x49f   :  { %v6876_v4 = vadd.f32 %v2476_v39, %v2308_v20  ;;  %v8289_v39 = vld [vmem:[#allocation12_spill] sm:$0xff] }
 0x4a1   :  { %2514 = vmatmul.bf16.gmra.mxu0 %v4949_v41  ;;  %2847 = vmatmul.bf16.vlgmr.msrb.gmra.mxu2 %v4747_v37  ;;  %v8278_v41 = vld [vmem:[#allocation6_spill] sm:$0xff]  ;;  %v8279_v37 = vld [vmem:[#allocation7_spill] sm:$0xff] }
 0x4a4   :  { %2678 = vmatmul.bf16.vlgmr.msrb.gmra.mxu1 %v4895_v17  ;;  %3016 = vmatmul.bf16.vlgmr.msrb.gmra.mxu3 %v4897_v38  ;;  %v1974_v17 = vpop.f32.mrf.mxu0  ;;  %v6892_v38 = vpop.f32.mrf.mxu1 }
 0x4a5   :  { %8280 = vst [vmem:[#allocation6_spill] sm:$0xff] %v6892_v38 }
 0x4b1   :  { %2519 = vmatmul.bf16.gmra.mxu0 %v4969_v13  ;;  %2852 = vmatmul.bf16.gmra.mxu2 %v4883_v30  ;;  %v6894_v13 = vpop.f32.mrf.mxu2  ;;  %v1433_v30 = vld [vmem:[%s7914_s1 + $0x1c0] sm:$0xff] }
 0x4b2   :  { %8281 = vst [vmem:[#allocation7_spill] sm:$0xff] %v6894_v13 }
 0x4b4   :  { %2683 = vmatmul.bf16.gmra.mxu1 %v4959_v36  ;;  %3021 = vmatmul.bf16.gmra.mxu3 %v4961_v53  ;;  %v6899_v36 = vpop.f32.mrf.mxu3  ;;  %v1975_v53 = vadd.f32 %v1974_v17, %v1433_v30  ;;  %v8292_v30 = vld [vmem:[#allocation15_spill] sm:$0xff] }
 0x4b5   :  { %8282 = vst [vmem:[#allocation215_spill] sm:$0xff] %v6899_v36 }
 0x4c1   :  { %2524 = vmatmul.bf16.gmra.mxu0 %v4982_v50  ;;  %2857 = vmatmul.bf16.gmra.mxu2 %v4951_v14  ;;  %v8284_v50 = vld [vmem:[#allocation9_spill] sm:$0xff]  ;;  %v6903_v14 = vpop.f32.mrf.mxu0 }
 0x4c2   :  { %8285 = vst [vmem:[#allocation8_spill] sm:$0xff] %v6903_v14 }
 0x4c4   :  { %2688 = vmatmul.bf16.gmra.mxu1 %v8278_v41  ;;  %3026 = vmatmul.bf16.gmra.mxu3 %v8279_v37  ;;  %v8290_v41 = vld [vmem:[#allocation14_spill] sm:$0xff] }
 0x4d0   :  { %v1979_v20 = vpop.f32.mrf.mxu0 }
 0x4d1   :  { %2529 = vmatmul.bf16.gmra.mxu0 %v8283_v0  ;;  %2862 = vmatmul.bf16.gmra.mxu2 %v8284_v50  ;;  %v1435_v50 = vld [vmem:[%s7914_s1 + $0x1d0] sm:$0xff] }
 0x4d3   :  { %v2143_v34 = vpop.f32.mrf.mxu1 }
 0x4d4   :  { %v2144_v59 = vadd.f32 %v2143_v34, %v1975_v53  ;;  %2693 = vmatmul.bf16.gmra.mxu1 %v8286_v26  ;;  %3031 = vmatmul.bf16.gmra.mxu3 %v8287_v58  ;;  %v8293_v53 = vld [vmem:[#allocation17_spill] sm:$0xff] }
 0x4d6   :  { %v2312_v31 = vpop.f32.mrf.mxu2 }
 0x4d7   :  { %v2313_v62 = vadd.f32 %v2312_v31, %v2144_v59  ;;  %v1980_v59 = vadd.f32 %v1979_v20, %v1435_v50  ;;  %v8299_v20 = vld [vmem:[#allocation23_spill] sm:$0xff]  ;;  %v8300_v50 = vld [vmem:[#allocation26_spill] sm:$0xff] }
 0x4d8   :  { %v1981_v17 = vpop.f32.mrf.mxu0 }
 0x4d9   :  { %v2481_v7 = vpop.f32.mrf.mxu3 }
 0x4da   :  { %v6907_v8 = vadd.f32 %v2481_v7, %v2313_v62  ;;  %v1436_v7 = vld [vmem:[%s7914_s1 + $0x1d8] sm:$0xff] }
 0x4db   :  { %v6911_v37 = vpop.f32.mrf.mxu1 }
 0x4dc   :  { %8288 = vst [vmem:[#allocation9_spill] sm:$0xff] %v6907_v8 }
 0x4dd   :  { %8291 = vst [vmem:[#allocation10_spill] sm:$0xff] %v6911_v37 }
 0x4de   :  { %v6915_v0 = vpop.f32.mrf.mxu2 }
 0x4df   :  { %8294 = vst [vmem:[#allocation11_spill] sm:$0xff] %v6915_v0  ;;  %v1982_v0 = vadd.f32 %v1981_v17, %v1436_v7 }
 0x4e1   :  { %2534 = vmatmul.bf16.gmra.mxu0 %v8289_v39  ;;  %2867 = vmatmul.bf16.gmra.mxu2 %v8290_v41  ;;  %v6920_v34 = vpop.f32.mrf.mxu3 }
 0x4e2   :  { %8295 = vst [vmem:[#allocation12_spill] sm:$0xff] %v6920_v34 }
 0x4e4   :  { %2698 = vmatmul.bf16.gmra.mxu1 %v8292_v30  ;;  %3036 = vmatmul.bf16.gmra.mxu3 %v8293_v53  ;;  %v8296_v30 = vld [vmem:[#allocation21_spill] sm:$0xff]  ;;  %v8297_v53 = vld [vmem:[#allocation22_spill] sm:$0xff] }
 0x4e9   :  { %v1984_v58 = vpop.f32.mrf.mxu0 }
 0x4ec   :  { %v2148_v26 = vpop.f32.mrf.mxu1 }
 0x4ed   :  { %v2149_v31 = vadd.f32 %v2148_v26, %v1980_v59 }
 0x4ef   :  { %v2317_v62 = vpop.f32.mrf.mxu2 }
 0x4f0   :  { %v2318_v39 = vadd.f32 %v2317_v62, %v2149_v31  ;;  %v1437_v31 = vld [vmem:[%s7914_s1 + $0x1e0] sm:$0xff] }
 0x4f1   :  { %2539 = vmatmul.bf16.gmra.mxu0 %v8296_v30  ;;  %2872 = vmatmul.bf16.gmra.mxu2 %v8297_v53  ;;  %v1986_v59 = vpop.f32.mrf.mxu0  ;;  %v1985_v17 = vadd.f32 %v1984_v58, %v1437_v31  ;;  %v8304_v30 = vld [vmem:[#allocation32_spill] sm:$0xff]  ;;  %v8305_v53 = vld [vmem:[#allocation34_spill] sm:$0xff] }
 0x4f2   :  { %v2486_v41 = vpop.f32.mrf.mxu3 }
 0x4f3   :  { %v6927_v8 = vadd.f32 %v2486_v41, %v2318_v39  ;;  %v8302_v39 = vld [vmem:[#allocation30_spill] sm:$0xff] }
 0x4f4   :  { %v2150_v37 = vpop.f32.mrf.mxu1  ;;  %2703 = vmatmul.bf16.gmra.mxu1 %v8299_v20  ;;  %3041 = vmatmul.bf16.gmra.mxu3 %v8300_v50 }
 0x4f5   :  { %8298 = vst [vmem:[#allocation14_spill] sm:$0xff] %v6927_v8  ;;  %v2151_v34 = vadd.f32 %v2150_v37, %v1982_v0  ;;  %v8303_v37 = vld [vmem:[#allocation31_spill] sm:$0xff] }
 0x4f7   :  { %v2319_v26 = vpop.f32.mrf.mxu2 }
 0x4f8   :  { %v2320_v14 = vadd.f32 %v2319_v26, %v2151_v34 }
 0x4fa   :  { %v2488_v36 = vpop.f32.mrf.mxu3 }
 0x4fb   :  { %v6931_v13 = vadd.f32 %v2488_v36, %v2320_v14  ;;  %v1438_v36 = vld [vmem:[%s7914_s1 + $0x1e8] sm:$0xff] }
 0x4fc   :  { %v1987_v50 = vadd.f32 %v1986_v59, %v1438_v36  ;;  %v8310_v59 = vld [vmem:[#allocation45_spill] sm:$0xff] }
 0x4fd   :  { %8301 = vst [vmem:[#allocation15_spill] sm:$0xff] %v6931_v13 }
 0x4fe   :  { %v1989_v62 = vpop.f32.mrf.mxu0 }
 0x501   :  { %v2153_v7 = vpop.f32.mrf.mxu1  ;;  %2544 = vmatmul.bf16.gmra.mxu0 %v8302_v39  ;;  %2877 = vmatmul.bf16.gmra.mxu2 %v8303_v37 }
 0x502   :  { %v2154_v0 = vadd.f32 %v2153_v7, %v1985_v17  ;;  %v1439_v17 = vld [vmem:[%s7914_s1 + $0x1f0] sm:$0xff] }
 0x503   :  { %v1990_v8 = vadd.f32 %v1989_v62, %v1439_v17  ;;  %v3432_v17 = vld [vmem:[%s7915_s5 + $0x1f8] sm:$0xff] }
 0x504   :  { %v2322_v41 = vpop.f32.mrf.mxu2  ;;  %2708 = vmatmul.bf16.gmra.mxu1 %v8304_v30  ;;  %3046 = vmatmul.bf16.gmra.mxu3 %v8305_v53  ;;  %v8307_v30 = vld [vmem:[#allocation18_spill] sm:$0xff] }
 0x505   :  { %v2323_v14 = vadd.f32 %v2322_v41, %v2154_v0  ;;  %v8309_v41 = vld [vmem:[#allocation44_spill] sm:$0xff]  ;;  %3561 = vmatpush.msra.mxu3 %v3432_v17 }
 0x506   :  { %v1991_v34 = vpop.f32.mrf.mxu0 }
 0x507   :  { %v2491_v20 = vpop.f32.mrf.mxu3 }
 0x508   :  { %v6943_v58 = vadd.f32 %v2491_v20, %v2323_v14  ;;  %v8311_v20 = vld [vmem:[#allocation46_spill] sm:$0xff] }
 0x509   :  { %v2155_v26 = vpop.f32.mrf.mxu1 }
 0x50a   :  { %8306 = vst [vmem:[#allocation17_spill] sm:$0xff] %v6943_v58  ;;  %v2156_v31 = vadd.f32 %v2155_v26, %v1987_v50  ;;  %v8312_v50 = vld [vmem:[#allocation47_spill] sm:$0xff]  ;;  %v1440_v26 = vld [vmem:[%s7914_s1 + $0x1f8] sm:$0xff] }
 0x50b   :  { %v8320_v58 = vld [vmem:[#allocation13_spill] sm:$0xff] }
 0x50c   :  { %v2324_v39 = vpop.f32.mrf.mxu2 }
 0x50d   :  { %v2325_v7 = vadd.f32 %v2324_v39, %v2156_v31 }
 0x50e   :  { %v2510_v37 = vpop.f32.mrf.mxu0 }
 0x50f   :  { %v2511_v53 = vadd.f32 %v2510_v37, %v8307_v30  ;;  %v2493_v13 = vpop.f32.mrf.mxu3  ;;  %v1378_v30 = vld [vmem:[%s7914_s1 + $0x8] sm:$0xff] }
 0x510   :  { %v6949_v38 = vadd.f32 %v2493_v13, %v2325_v7  ;;  %v3416_v13 = vld [vmem:[%s7915_s5 + $0x178] sm:$0xff]  ;;  %v1992_v7 = vadd.f32 %v1991_v34, %v1440_v26  ;;  %v8315_v26 = vld [vmem:[#allocation27_spill] sm:$0xff] }
 0x511   :  { %v2158_v0 = vpop.f32.mrf.mxu1  ;;  %2549 = vmatmul.bf16.gmra.mxu0 %v8309_v41  ;;  %2882 = vmatmul.bf16.gmra.mxu2 %v8310_v59  ;;  %v3400_v59 = vld [vmem:[%s7915_s5 + $0xf8] sm:$0xff] }
 0x512   :  { %8308 = vst [vmem:[#allocation21_spill] sm:$0xff] %v6949_v38  ;;  %v2159_v36 = vadd.f32 %v2158_v0, %v1990_v8  ;;  %3541 = vmatpush.msra.mxu2 %v3416_v13  ;;  %v3384_v8 = vld [vmem:[%s7915_s5 + $0x78] sm:$0xff]  ;;  %3521 = vmatpush.msra.mxu1 %v3400_v59 }
 0x513   :  { %3501 = vmatpush.msra.mxu0 %v3384_v8 }
 0x514   :  { %v2327_v14 = vpop.f32.mrf.mxu2  ;;  %2713 = vmatmul.bf16.gmra.mxu1 %v8311_v20  ;;  %3051 = vmatmul.bf16.gmra.mxu3 %v8312_v50 }
 0x515   :  { %v2328_v31 = vadd.f32 %v2327_v14, %v2159_v36  ;;  %v8314_v36 = vld [vmem:[#allocation16_spill] sm:$0xff] }
 0x516   :  { %v2512_v62 = vpop.f32.mrf.mxu0  ;;  %v1837_v14 = vadd.f32 %v8314_v36, %v1378_v30 }
 0x517   :  { %v2496_v39 = vpop.f32.mrf.mxu3 }
 0x518   :  { %v6967_v37 = vadd.f32 %v2496_v39, %v2328_v31  ;;  %v8316_v39 = vld [vmem:[#allocation19_spill] sm:$0xff] }
 0x519   :  { %v2160_v0 = vpop.f32.mrf.mxu1  ;;  %v2006_v8 = vadd.f32 %v8316_v39, %v1837_v14 }
 0x51a   :  { %8313 = vst [vmem:[#allocation22_spill] sm:$0xff] %v6967_v37  ;;  %v2161_v41 = vadd.f32 %v2160_v0, %v1992_v7  ;;  %v8318_v37 = vld [vmem:[#allocation54_spill] sm:$0xff]  ;;  %v8319_v0 = vld [vmem:[#allocation55_spill] sm:$0xff] }
 0x51b   :  { %v2175_v59 = vadd.f32 %v8320_v58, %v2006_v8 }
 0x51c   :  { %v2329_v20 = vpop.f32.mrf.mxu2 }
 0x51d   :  { %v2330_v50 = vadd.f32 %v2329_v20, %v2161_v41  ;;  %v8322_v41 = vld [vmem:[#allocation57_spill] sm:$0xff]  ;;  %v8323_v20 = vld [vmem:[#allocation20_spill] sm:$0xff] }
 0x51e   :  { %v2515_v34 = vpop.f32.mrf.mxu0 }
 0x51f   :  { %v2516_v31 = vadd.f32 %v2515_v34, %v8315_v26  ;;  %v2498_v13 = vpop.f32.mrf.mxu3  ;;  %v2344_v34 = vadd.f32 %v8323_v20, %v2175_v59 }
 0x520   :  { %v6978_v17 = vadd.f32 %v2498_v13, %v2330_v50 }
 0x521   :  { %2554 = vmatmul.bf16.gmra.mxu0 %v8318_v37  ;;  %v2679_v7 = vpop.f32.mrf.mxu1  ;;  %2887 = vmatmul.bf16.gmra.mxu2 %v8319_v0  ;;  %v2513_v50 = vadd.f32 %v2512_v62, %v2344_v34  ;;  %v1380_v37 = vld [vmem:[%s7914_s1 + $0x18] sm:$0xff]  ;;  %v8327_v34 = vld [vmem:[#allocation24_spill] sm:$0xff] }
 0x522   :  { %8317 = vst [vmem:[#allocation23_spill] sm:$0xff] %v6978_v17  ;;  %v2680_v38 = vadd.f32 %v2679_v7, %v2511_v53  ;;  %v8324_v7 = vld [vmem:[#allocation25_spill] sm:$0xff]  ;;  %v8325_v17 = vld [vmem:[#allocation35_spill] sm:$0xff] }
 0x523   :  { %v1842_v58 = vadd.f32 %v8324_v7, %v1380_v37 }
 0x524   :  { %2718 = vmatmul.bf16.gmra.mxu1 %v8321_v11  ;;  %v2848_v30 = vpop.f32.mrf.mxu2  ;;  %3056 = vmatmul.bf16.gmra.mxu3 %v8322_v41 }
 0x525   :  { %v2849_v36 = vadd.f32 %v2848_v30, %v2680_v38  ;;  %v8326_v30 = vld [vmem:[#allocation28_spill] sm:$0xff] }
 0x526   :  { %v2517_v26 = vpop.f32.mrf.mxu0  ;;  %v2011_v59 = vadd.f32 %v8326_v30, %v1842_v58  ;;  %v1382_v58 = vld [vmem:[%s7914_s1 + $0x28] sm:$0xff] }
 0x527   :  { %v3017_v14 = vpop.f32.mrf.mxu3 }
 0x528   :  { %v3018_v13 = vadd.f32 %v3017_v14, %v2849_v36  ;;  %v2180_v14 = vadd.f32 %v8327_v34, %v2011_v59 }
 0x529   :  { %v2681_v39 = vpop.f32.mrf.mxu1 }
 0x52a   :  { %v2682_v53 = vadd.f32 %v2681_v39, %v2513_v50  ;;  %v8328_v39 = vld [vmem:[#allocation29_spill] sm:$0xff] }
 0x52c   :  { %v2850_v8 = vpop.f32.mrf.mxu2 }
 0x52d   :  { %v2851_v11 = vadd.f32 %v2850_v8, %v2682_v53  ;;  %v2349_v53 = vadd.f32 %v8328_v39, %v2180_v14 }
 0x52e   :  { %v2520_v0 = vpop.f32.mrf.mxu0 }
 0x52f   :  { %v2521_v41 = vadd.f32 %v2520_v0, %v8325_v17  ;;  %v3019_v38 = vpop.f32.mrf.mxu3  ;;  %v3415_v17 = vld [vmem:[%s7915_s5 + $0x170] sm:$0xff] }
 0x530   :  { %v6992_v20 = vadd.f32 %v3019_v38, %v2851_v11  ;;  %3542 = vmatpush.msra.mxu2 %v3415_v17  ;;  %v3399_v0 = vld [vmem:[%s7915_s5 + $0xf0] sm:$0xff]  ;;  %v8329_v38 = vld [vmem:[#allocation33_spill] sm:$0xff] }
 0x531   :  { %2559 = vmatmul.bf16.gmra.mxu0 %v5526_v61  ;;  %v2684_v62 = vpop.f32.mrf.mxu1  ;;  %2892 = vmatmul.bf16.gmra.mxu2 %v5529_v25  ;;  %v3383_v25 = vld [vmem:[%s7915_s5 + $0x70] sm:$0xff]  ;;  %v1847_v30 = vadd.f32 %v8329_v38, %v1382_v58 }
 0x532   :  { %v2685_v36 = vadd.f32 %v2684_v62, %v2516_v31  ;;  %v2518_v31 = vadd.f32 %v2517_v26, %v2349_v53  ;;  %3502 = vmatpush.msra.mxu0 %v3383_v25  ;;  %3522 = vmatpush.msra.mxu1 %v3399_v0  ;;  %v8332_v53 = vld [vmem:[#allocation67_spill] sm:$0xff]  ;;  %v8333_v25 = vld [vmem:[#allocation36_spill] sm:$0xff]  ;;  %v8336_v0 = vld [vmem:[#allocation38_spill] sm:$0xff] }
 0x534   :  { %2723 = vmatmul.bf16.gmra.mxu1 %v5541_v21  ;;  %v2853_v50 = vpop.f32.mrf.mxu2  ;;  %3061 = vmatmul.bf16.gmra.mxu3 %v5543_v55  ;;  %v3431_v21 = vld [vmem:[%s7915_s5 + $0x1f0] sm:$0xff] }
 0x535   :  { %v2854_v37 = vadd.f32 %v2853_v50, %v2685_v36  ;;  %3562 = vmatpush.msra.mxu3 %v3431_v21  ;;  %v8330_v36 = vld [vmem:[#allocation39_spill] sm:$0xff]  ;;  %v8331_v50 = vld [vmem:[#allocation37_spill] sm:$0xff] }
 0x536   :  { %v2522_v7 = vpop.f32.mrf.mxu0 }
 0x537   :  { %v3022_v61 = vpop.f32.mrf.mxu3 }
 0x538   :  { %v7009_v55 = vadd.f32 %v3022_v61, %v2854_v37  ;;  %v2016_v37 = vadd.f32 %v8331_v50, %v1847_v30 }
 0x539   :  { %v2686_v8 = vpop.f32.mrf.mxu1 }
 0x53a   :  { %v2687_v11 = vadd.f32 %v2686_v8, %v2518_v31  ;;  %v2185_v21 = vadd.f32 %v8333_v25, %v2016_v37  ;;  %v8334_v31 = vld [vmem:[#allocation68_spill] sm:$0xff]  ;;  %v8335_v8 = vld [vmem:[#allocation69_spill] sm:$0xff] }
 0x53c   :  { %v2855_v59 = vpop.f32.mrf.mxu2  ;;  %v2354_v38 = vadd.f32 %v8336_v0, %v2185_v21 }
 0x53d   :  { %v2856_v62 = vadd.f32 %v2855_v59, %v2687_v11 }
 0x53e   :  { %v2525_v26 = vpop.f32.mrf.mxu0 }
 0x53f   :  { %v2526_v34 = vadd.f32 %v2525_v26, %v8330_v36  ;;  %v3024_v14 = vpop.f32.mrf.mxu3 }
 0x540   :  { %v7020_v17 = vadd.f32 %v3024_v14, %v2856_v62  ;;  %v2523_v62 = vadd.f32 %v2522_v7, %v2354_v38  ;;  %v8340_v38 = vld [vmem:[#allocation75_spill] sm:$0xff] }
 0x541   :  { %2564 = vmatmul.bf16.gmra.mxu0 %v5566_v33  ;;  %v2689_v39 = vpop.f32.mrf.mxu1  ;;  %2897 = vmatmul.bf16.gmra.mxu2 %v8332_v53  ;;  %v1384_v33 = vld [vmem:[%s7914_s1 + $0x38] sm:$0xff] }
 0x542   :  { %v2690_v61 = vadd.f32 %v2689_v39, %v2521_v41  ;;  %v3177_v41 = vsel %vm927_vm3, %v3018_v13, -inf  ;;  %v8337_v39 = vld [vmem:[#allocation40_spill] sm:$0xff]  ;;  %v3178_v13 = vsel %vm927_vm3, %v6992_v20, -inf }
 0x543   :  { %v1852_v53 = vadd.f32 %v8337_v39, %v1384_v33  ;;  %v8344_v39 = vld [vmem:[#allocation78_spill] sm:$0xff] }
 0x544   :  { %2728 = vmatmul.bf16.gmra.mxu1 %v8334_v31  ;;  %v2858_v58 = vpop.f32.mrf.mxu2  ;;  %3066 = vmatmul.bf16.gmra.mxu3 %v8335_v8  ;;  %v8338_v31 = vld [vmem:[#allocation49_spill] sm:$0xff] }
 0x545   :  { %v2859_v11 = vadd.f32 %v2858_v58, %v2690_v61  ;;  %v8339_v8 = vld [vmem:[#allocation41_spill] sm:$0xff] }
 0x546   :  { %v2527_v59 = vpop.f32.mrf.mxu0 }
 0x547   :  { %v3027_v30 = vpop.f32.mrf.mxu3 }
 0x548   :  { %v3028_v26 = vadd.f32 %v3027_v30, %v2859_v11  ;;  %v2021_v11 = vadd.f32 %v8339_v8, %v1852_v53 }
 0x549   :  { %v2691_v36 = vpop.f32.mrf.mxu1 }
 0x54a   :  { %v3181_v14 = vsel %vm927_vm3, %v3028_v26, -inf  ;;  %v2692_v50 = vadd.f32 %v2691_v36, %v2523_v62  ;;  %v8342_v36 = vld [vmem:[#allocation42_spill] sm:$0xff] }
 0x54b   :  { %v3182_v37 = vmax.f32 %v3177_v41, %v3181_v14  ;;  %v2190_v41 = vadd.f32 %v8342_v36, %v2021_v11  ;;  %v8343_v14 = vld [vmem:[#allocation77_spill] sm:$0xff]  ;;  %v1386_v11 = vld [vmem:[%s7914_s1 + $0x48] sm:$0xff] }
 0x54c   :  { %v2860_v61 = vpop.f32.mrf.mxu2 }
 0x54d   :  { %v2861_v25 = vadd.f32 %v2860_v61, %v2692_v50 }
 0x54e   :  { %v2530_v21 = vpop.f32.mrf.mxu0 }
 0x54f   :  { %v2531_v58 = vadd.f32 %v2530_v21, %v8338_v31  ;;  %v3029_v7 = vpop.f32.mrf.mxu3 }
 0x550   :  { %v3030_v0 = vadd.f32 %v3029_v7, %v2861_v25  ;;  %v8345_v25 = vld [vmem:[#allocation43_spill] sm:$0xff] }
 0x551   :  { %2569 = vmatmul.bf16.gmra.mxu0 %v8340_v38  ;;  %v2694_v30 = vpop.f32.mrf.mxu1  ;;  %2902 = vmatmul.bf16.gmra.mxu2 %v8341_v6  ;;  %v3414_v6 = vld [vmem:[%s7915_s5 + $0x168] sm:$0xff]  ;;  %v2359_v21 = vadd.f32 %v8345_v25, %v2190_v41  ;;  %v3179_v38 = vsel %vm927_vm3, %v7009_v55, -inf }
 0x552   :  { %v3183_v62 = vsel %vm927_vm3, %v3030_v0, -inf  ;;  %v2695_v26 = vadd.f32 %v2694_v30, %v2526_v34  ;;  %3543 = vmatpush.msra.mxu2 %v3414_v6  ;;  %v3382_v34 = vld [vmem:[%s7915_s5 + $0x68] sm:$0xff] }
 0x553   :  { %v3184_v33 = vmax.f32 %v3178_v13, %v3183_v62  ;;  %v3430_v7 = vld [vmem:[%s7915_s5 + $0x1e8] sm:$0xff]  ;;  %v2528_v8 = vadd.f32 %v2527_v59, %v2359_v21  ;;  %3503 = vmatpush.msra.mxu0 %v3382_v34  ;;  %v8346_v59 = vld [vmem:[#allocation48_spill] sm:$0xff]  ;;  %v8349_v21 = vld [vmem:[#allocation82_spill] sm:$0xff] }
 0x554   :  { %2733 = vmatmul.bf16.gmra.mxu1 %v8343_v14  ;;  %v2863_v50 = vpop.f32.mrf.mxu2  ;;  %3071 = vmatmul.bf16.gmra.mxu3 %v8344_v39  ;;  %v3398_v62 = vld [vmem:[%s7915_s5 + $0xe8] sm:$0xff]  ;;  %v8347_v14 = vld [vmem:[#allocation50_spill] sm:$0xff] }
 0x555   :  { %v3189_v53 = vmax.f32 %v3182_v37, %v3184_v33  ;;  %v2864_v61 = vadd.f32 %v2863_v50, %v2695_v26  ;;  %3563 = vmatpush.msra.mxu3 %v3430_v7  ;;  %3523 = vmatpush.msra.mxu1 %v3398_v62  ;;  %v1857_v33 = vadd.f32 %v8346_v59, %v1386_v11  ;;  %v8350_v34 = vld [vmem:[#allocation83_spill] sm:$0xff]  ;;  %v8353_v62 = vld [vmem:[#allocation86_spill] sm:$0xff] }
 0x556   :  { %v2532_v20 = vpop.f32.mrf.mxu0  ;;  %v8351_v7 = vld [vmem:[#allocation51_spill] sm:$0xff] }
 0x557   :  { %v3032_v31 = vpop.f32.mrf.mxu3  ;;  %v2026_v50 = vadd.f32 %v8347_v14, %v1857_v33 }
 0x558   :  { %v3033_v37 = vadd.f32 %v3032_v31, %v2864_v61  ;;  %v8348_v61 = vld [vmem:[#allocation58_spill] sm:$0xff] }
 0x559   :  { %v2696_v0 = vpop.f32.mrf.mxu1 }
 0x55a   :  { %v3185_v30 = vsel %vm927_vm3, %v3033_v37, -inf  ;;  %v2697_v13 = vadd.f32 %v2696_v0, %v2528_v8  ;;  %v2195_v8 = vadd.f32 %v8351_v7, %v2026_v50  ;;  %v3180_v37 = vsel %vm927_vm3, %v7020_v17, -inf  ;;  %v1388_v17 = vld [vmem:[%s7914_s1 + $0x58] sm:$0xff] }
 0x55b   :  { %v3186_v26 = vmax.f32 %v3179_v38, %v3185_v30  ;;  %v8352_v30 = vld [vmem:[#allocation85_spill] sm:$0xff] }
 0x55c   :  { %v2865_v36 = vpop.f32.mrf.mxu2 }
 0x55d   :  { %v2866_v41 = vadd.f32 %v2865_v36, %v2697_v13  ;;  %v8354_v36 = vld [vmem:[#allocation52_spill] sm:$0xff] }
 0x55e   :  { %v2535_v39 = vpop.f32.mrf.mxu0 }
 0x55f   :  { %v2536_v6 = vadd.f32 %v2535_v39, %v8348_v61  ;;  %v3034_v25 = vpop.f32.mrf.mxu3 }
 0x560   :  { %v3035_v55 = vadd.f32 %v3034_v25, %v2866_v41  ;;  %v2364_v41 = vadd.f32 %v8354_v36, %v2195_v8  ;;  %v8357_v8 = vld [vmem:[#allocation63_spill] sm:$0xff]  ;;  %v8361_v36 = vld [vmem:[#allocation94_spill] sm:$0xff] }
 0x561   :  { %2574 = vmatmul.bf16.gmra.mxu0 %v8349_v21  ;;  %v2699_v31 = vpop.f32.mrf.mxu1  ;;  %2907 = vmatmul.bf16.gmra.mxu2 %v8350_v34  ;;  %v8355_v21 = vld [vmem:[#allocation53_spill] sm:$0xff] }
 0x562   :  { %v3187_v11 = vsel %vm927_vm3, %v3035_v55, -inf  ;;  %v2700_v0 = vadd.f32 %v2699_v31, %v2531_v58  ;;  %v2533_v61 = vadd.f32 %v2532_v20, %v2364_v41  ;;  %v1862_v31 = vadd.f32 %v8355_v21, %v1388_v17  ;;  %v8358_v20 = vld [vmem:[#allocation91_spill] sm:$0xff]  ;;  %v3413_v17 = vld [vmem:[%s7915_s5 + $0x160] sm:$0xff] }
 0x563   :  { %v3188_v38 = vmax.f32 %v3180_v37, %v3187_v11  ;;  %3544 = vmatpush.msra.mxu2 %v3413_v17 }
 0x564   :  { %2738 = vmatmul.bf16.gmra.mxu1 %v8352_v30  ;;  %v2868_v13 = vpop.f32.mrf.mxu2  ;;  %3076 = vmatmul.bf16.gmra.mxu3 %v8353_v62  ;;  %v8360_v62 = vld [vmem:[#allocation60_spill] sm:$0xff] }
 0x565   :  { %v3190_v59 = vmax.f32 %v3186_v26, %v3188_v38  ;;  %v2869_v33 = vadd.f32 %v2868_v13, %v2700_v0  ;;  %v8356_v26 = vld [vmem:[#allocation59_spill] sm:$0xff]  ;;  %v8359_v13 = vld [vmem:[#allocation92_spill] sm:$0xff] }
 0x566   :  { %v2537_v14 = vpop.f32.mrf.mxu0  ;;  %v2031_v37 = vadd.f32 %v8356_v26, %v1862_v31 }
 0x567   :  { %v7075_v39 = vmax.f32 %v3189_v53, %v3190_v59  ;;  %v3037_v50 = vpop.f32.mrf.mxu3 }
 0x568   :  { %v3038_v25 = vadd.f32 %v3037_v50, %v2869_v33  ;;  %v2200_v59 = vadd.f32 %v8360_v62, %v2031_v37  ;;  %v8362_v50 = vld [vmem:[#allocation95_spill] sm:$0xff] }
 0x569   :  { %v2701_v58 = vpop.f32.mrf.mxu1  ;;  %v1390_v37 = vld [vmem:[%s7914_s1 + $0x68] sm:$0xff] }
 0x56a   :  { %v2702_v55 = vadd.f32 %v2701_v58, %v2533_v61  ;;  %v8363_v58 = vld [vmem:[#allocation61_spill] sm:$0xff] }
 0x56c   :  { %v2870_v34 = vpop.f32.mrf.mxu2 }
 0x56d   :  { %v2871_v7 = vadd.f32 %v2870_v34, %v2702_v55  ;;  %v2369_v55 = vadd.f32 %v8363_v58, %v2200_v59  ;;  %v3381_v34 = vld [vmem:[%s7915_s5 + $0x60] sm:$0xff]  ;;  %v8367_v58 = vld [vmem:[#allocation100_spill] sm:$0xff] }
 0x56e   :  { %v2540_v11 = vpop.f32.mrf.mxu0  ;;  %3504 = vmatpush.msra.mxu0 %v3381_v34 }
 0x56f   :  { %v2541_v0 = vadd.f32 %v2540_v11, %v8357_v8  ;;  %v3039_v53 = vpop.f32.mrf.mxu3 }
 0x570   :  { %v7083_v38 = vadd.f32 %v3039_v53, %v2871_v7  ;;  %v2538_v7 = vadd.f32 %v2537_v14, %v2369_v55  ;;  %v3397_v53 = vld [vmem:[%s7915_s5 + $0xe0] sm:$0xff]  ;;  %v8365_v14 = vld [vmem:[#allocation64_spill] sm:$0xff]  ;;  %v8368_v55 = vld [vmem:[#allocation65_spill] sm:$0xff] }
 0x571   :  { %2579 = vmatmul.bf16.gmra.mxu0 %v8358_v20  ;;  %v2704_v30 = vpop.f32.mrf.mxu1  ;;  %2912 = vmatmul.bf16.gmra.mxu2 %v8359_v13  ;;  %v8364_v20 = vld [vmem:[#allocation62_spill] sm:$0xff] }
 0x572   :  { %v2705_v33 = vadd.f32 %v2704_v30, %v2536_v6  ;;  %v3429_v6 = vld [vmem:[%s7915_s5 + $0x1e0] sm:$0xff]  ;;  %v1867_v30 = vadd.f32 %v8364_v20, %v1390_v37  ;;  %3524 = vmatpush.msra.mxu1 %v3397_v53  ;;  %v8370_v37 = vld [vmem:[#allocation103_spill] sm:$0xff] }
 0x573   :  { %3564 = vmatpush.msra.mxu3 %v3429_v6  ;;  %v8369_v6 = vld [vmem:[#allocation102_spill] sm:$0xff] }
 0x574   :  { %2743 = vmatmul.bf16.gmra.mxu1 %v8361_v36  ;;  %v2873_v41 = vpop.f32.mrf.mxu2  ;;  %3081 = vmatmul.bf16.gmra.mxu3 %v8362_v50  ;;  %v2036_v59 = vadd.f32 %v8365_v14, %v1867_v30  ;;  %v8366_v36 = vld [vmem:[#allocation70_spill] sm:$0xff] }
 0x575   :  { %v2874_v61 = vadd.f32 %v2873_v41, %v2705_v33 }
 0x576   :  { %v2542_v21 = vpop.f32.mrf.mxu0 }
 0x577   :  { %v3042_v31 = vpop.f32.mrf.mxu3 }
 0x578   :  { %v7100_v26 = vadd.f32 %v3042_v31, %v2874_v61  ;;  %v2205_v31 = vadd.f32 %v8368_v55, %v2036_v59  ;;  %v3198_v59 = vsel %vm927_vm3, %v3038_v25, -inf  ;;  %v8377_v25 = vld [vmem:[#allocation73_spill] sm:$0xff] }
 0x579   :  { %v2706_v11 = vpop.f32.mrf.mxu1 }
 0x57a   :  { %v2707_v8 = vadd.f32 %v2706_v11, %v2538_v7 }
 0x57c   :  { %v2875_v13 = vpop.f32.mrf.mxu2 }
 0x57d   :  { %v2876_v62 = vadd.f32 %v2875_v13, %v2707_v8  ;;  %v8371_v8 = vld [vmem:[#allocation66_spill] sm:$0xff] }
 0x57e   :  { %v2545_v33 = vpop.f32.mrf.mxu0  ;;  %v2374_v53 = vadd.f32 %v8371_v8, %v2205_v31  ;;  %v8373_v31 = vld [vmem:[#allocation72_spill] sm:$0xff]  ;;  %v8375_v8 = vld [vmem:[#allocation107_spill] sm:$0xff] }
 0x57f   :  { %v2546_v41 = vadd.f32 %v2545_v33, %v8366_v36  ;;  %v3044_v50 = vpop.f32.mrf.mxu3 }
 0x580   :  { %v7111_v61 = vadd.f32 %v3044_v50, %v2876_v62  ;;  %v2543_v13 = vadd.f32 %v2542_v21, %v2374_v53  ;;  %v8372_v50 = vld [vmem:[#allocation71_spill] sm:$0xff] }
 0x581   :  { %2584 = vmatmul.bf16.gmra.mxu0 %v5877_v35  ;;  %v2709_v17 = vpop.f32.mrf.mxu1  ;;  %2917 = vmatmul.bf16.gmra.mxu2 %v8367_v58  ;;  %v1392_v35 = vld [vmem:[%s7914_s1 + $0x78] sm:$0xff]  ;;  %v8374_v21 = vld [vmem:[#allocation79_spill] sm:$0xff] }
 0x582   :  { %v2710_v34 = vadd.f32 %v2709_v17, %v2541_v0  ;;  %v1872_v17 = vadd.f32 %v8372_v50, %v1392_v35  ;;  %v8379_v50 = vld [vmem:[#allocation110_spill] sm:$0xff] }
 0x584   :  { %2748 = vmatmul.bf16.gmra.mxu1 %v8369_v6  ;;  %v2878_v7 = vpop.f32.mrf.mxu2  ;;  %3086 = vmatmul.bf16.gmra.mxu3 %v8370_v37 }
 0x585   :  { %v2879_v11 = vadd.f32 %v2878_v7, %v2710_v34  ;;  %v2041_v34 = vadd.f32 %v8373_v31, %v1872_v17  ;;  %v8380_v31 = vld [vmem:[#allocation74_spill] sm:$0xff] }
 0x586   :  { %v2547_v20 = vpop.f32.mrf.mxu0 }
 0x587   :  { %v3047_v30 = vpop.f32.mrf.mxu3 }
 0x588   :  { %v3048_v62 = vadd.f32 %v3047_v30, %v2879_v11  ;;  %v8376_v30 = vld [vmem:[#allocation108_spill] sm:$0xff] }
 0x589   :  { %v2711_v14 = vpop.f32.mrf.mxu1 }
 0x58a   :  { %v3202_v0 = vsel %vm927_vm3, %v3048_v62, -inf  ;;  %v2712_v33 = vadd.f32 %v2711_v14, %v2543_v13  ;;  %v2210_v62 = vadd.f32 %v8377_v25, %v2041_v34  ;;  %v3199_v13 = vsel %vm927_vm3, %v7083_v38, -inf }
 0x58b   :  { %v3203_v36 = vmax.f32 %v3198_v59, %v3202_v0  ;;  %v8378_v0 = vld [vmem:[#allocation109_spill] sm:$0xff] }
 0x58c   :  { %v2880_v58 = vpop.f32.mrf.mxu2  ;;  %v2379_v34 = vadd.f32 %v8380_v31, %v2210_v62  ;;  %v3396_v62 = vld [vmem:[%s7915_s5 + $0xd8] sm:$0xff] }
 0x58d   :  { %v2881_v55 = vadd.f32 %v2880_v58, %v2712_v33  ;;  %3525 = vmatpush.msra.mxu1 %v3396_v62  ;;  %v8387_v62 = vld [vmem:[#allocation117_spill] sm:$0xff] }
 0x58e   :  { %v2550_v6 = vpop.f32.mrf.mxu0 }
 0x58f   :  { %v2551_v7 = vadd.f32 %v2550_v6, %v8374_v21  ;;  %v3049_v37 = vpop.f32.mrf.mxu3  ;;  %v3428_v21 = vld [vmem:[%s7915_s5 + $0x1d8] sm:$0xff] }
 0x590   :  { %v3050_v11 = vadd.f32 %v3049_v37, %v2881_v55  ;;  %v3412_v55 = vld [vmem:[%s7915_s5 + $0x158] sm:$0xff]  ;;  %v2548_v37 = vadd.f32 %v2547_v20, %v2379_v34  ;;  %3565 = vmatpush.msra.mxu3 %v3428_v21  ;;  %v8381_v20 = vld [vmem:[#allocation80_spill] sm:$0xff] }
 0x591   :  { %2589 = vmatmul.bf16.gmra.mxu0 %v8375_v8  ;;  %v2714_v53 = vpop.f32.mrf.mxu1  ;;  %2922 = vmatmul.bf16.gmra.mxu2 %v8376_v30  ;;  %v8385_v21 = vld [vmem:[#allocation116_spill] sm:$0xff] }
 0x592   :  { %v3204_v35 = vsel %vm927_vm3, %v3050_v11, -inf  ;;  %v2715_v14 = vadd.f32 %v2714_v53, %v2546_v41  ;;  %3545 = vmatpush.msra.mxu2 %v3412_v55  ;;  %v3380_v41 = vld [vmem:[%s7915_s5 + $0x58] sm:$0xff]  ;;  %v1394_v11 = vld [vmem:[%s7914_s1 + $0x88] sm:$0xff]  ;;  %v3200_v53 = vsel %vm927_vm3, %v7100_v26, -inf }
 0x593   :  { %v3205_v59 = vmax.f32 %v3199_v13, %v3204_v35  ;;  %3505 = vmatpush.msra.mxu0 %v3380_v41  ;;  %v1877_v35 = vadd.f32 %v8381_v20, %v1394_v11  ;;  %v8383_v55 = vld [vmem:[#allocation89_spill] sm:$0xff]  ;;  %v3201_v11 = vsel %vm927_vm3, %v7111_v61, -inf }
 0x594   :  { %2753 = vmatmul.bf16.gmra.mxu1 %v8378_v0  ;;  %v2883_v33 = vpop.f32.mrf.mxu2  ;;  %3091 = vmatmul.bf16.gmra.mxu3 %v8379_v50  ;;  %v8382_v0 = vld [vmem:[#allocation81_spill] sm:$0xff] }
 0x595   :  { %v3210_v17 = vmax.f32 %v3203_v36, %v3205_v59  ;;  %v2884_v58 = vadd.f32 %v2883_v33, %v2715_v14  ;;  %v2046_v33 = vadd.f32 %v8382_v0, %v1877_v35  ;;  %v8388_v35 = vld [vmem:[#allocation118_spill] sm:$0xff]  ;;  %v8389_v0 = vld [vmem:[#allocation87_spill] sm:$0xff] }
 0x596   :  { %v2552_v6 = vpop.f32.mrf.mxu0 }
 0x597   :  { %v3052_v38 = vpop.f32.mrf.mxu3 }
 0x598   :  { %v3053_v36 = vadd.f32 %v3052_v38, %v2884_v58  ;;  %v3192_v58 = vrot.slane %v7075_v39, 4  ;;  %v8384_v38 = vld [vmem:[#allocation115_spill] sm:$0xff] }
 0x599   :  { %v2716_v8 = vpop.f32.mrf.mxu1 }
 0x59a   :  { %v3206_v30 = vsel %vm927_vm3, %v3053_v36, -inf  ;;  %v2717_v25 = vadd.f32 %v2716_v8, %v2548_v37  ;;  %v8386_v37 = vld [vmem:[#allocation84_spill] sm:$0xff] }
 0x59b   :  { %v3207_v13 = vmax.f32 %v3200_v53, %v3206_v30  ;;  %v2215_v36 = vadd.f32 %v8386_v37, %v2046_v33  ;;  %v3193_v30 = vmax.f32 %v7075_v39, %v3192_v58  ;;  %v1396_v39 = vld [vmem:[%s7914_s1 + $0x98] sm:$0xff] }
 0x59c   :  { %v2885_v14 = vpop.f32.mrf.mxu2 }
 0x59d   :  { %v2886_v59 = vadd.f32 %v2885_v14, %v2717_v25  ;;  %v3194_v33 = vrot.slane %v3193_v30, 2 }
 0x59e   :  { %v2555_v50 = vpop.f32.mrf.mxu0 }
 0x59f   :  { %v2556_v26 = vadd.f32 %v2555_v50, %v8383_v55  ;;  %v3054_v31 = vpop.f32.mrf.mxu3  ;;  %v2384_v50 = vadd.f32 %v8389_v0, %v2215_v36 }
 0x5a0   :  { %v3055_v34 = vadd.f32 %v3054_v31, %v2886_v59 }
 0x5a1   :  { %2594 = vmatmul.bf16.gmra.mxu0 %v8384_v38  ;;  %v2719_v41 = vpop.f32.mrf.mxu1  ;;  %2927 = vmatmul.bf16.gmra.mxu2 %v8385_v21  ;;  %v2553_v61 = vadd.f32 %v2552_v6, %v2384_v50 }
 0x5a2   :  { %v3208_v8 = vsel %vm927_vm3, %v3055_v34, -inf  ;;  %v2720_v53 = vadd.f32 %v2719_v41, %v2551_v7  ;;  %v3195_v41 = vmax.f32 %v3193_v30, %v3194_v33  ;;  %v8394_v33 = vld [vmem:[#allocation127_spill] sm:$0xff] }
 0x5a3   :  { %v3209_v25 = vmax.f32 %v3201_v11, %v3208_v8 }
 0x5a4   :  { %2758 = vmatmul.bf16.gmra.mxu1 %v8387_v62  ;;  %v2888_v20 = vpop.f32.mrf.mxu2  ;;  %3096 = vmatmul.bf16.gmra.mxu3 %v8388_v35  ;;  %v3196_v6 = vrot.slane %v3195_v41, 1  ;;  %v8392_v35 = vld [vmem:[#allocation98_spill] sm:$0xff] }
 0x5a5   :  { %v3211_v14 = vmax.f32 %v3207_v13, %v3209_v25  ;;  %v2889_v59 = vadd.f32 %v2888_v20, %v2720_v53  ;;  %v8390_v13 = vld [vmem:[#allocation88_spill] sm:$0xff]  ;;  %v8391_v25 = vld [vmem:[#allocation90_spill] sm:$0xff] }
 0x5a6   :  { %v2557_v55 = vpop.f32.mrf.mxu0  ;;  %v1882_v11 = vadd.f32 %v8390_v13, %v1396_v39  ;;  %v8397_v13 = vld [vmem:[#allocation130_spill] sm:$0xff] }
 0x5a7   :  { %v3212_v31 = vmax.f32 %v3210_v17, %v3211_v14  ;;  %v3057_v38 = vpop.f32.mrf.mxu3 }
 0x5a8   :  { %v7168_v21 = vadd.f32 %v3057_v38, %v2889_v59  ;;  %v2051_v17 = vadd.f32 %v8391_v25, %v1882_v11  ;;  %v8393_v38 = vld [vmem:[#allocation126_spill] sm:$0xff] }
 0x5a9   :  { %v3213_v7 = vrot.slane %v3212_v31, 4  ;;  %v2721_v58 = vpop.f32.mrf.mxu1 }
 0x5aa   :  { %v2722_v34 = vadd.f32 %v2721_v58, %v2553_v61 }
 0x5ab   :  { %v3214_v37 = vmax.f32 %v3212_v31, %v3213_v7  ;;  %v8395_v31 = vld [vmem:[#allocation93_spill] sm:$0xff]  ;;  %v3197_v7 = vmax.f32 %v3195_v41, %v3196_v6  ;;  %v3427_v41 = vld [vmem:[%s7915_s5 + $0x1d0] sm:$0xff] }
 0x5ac   :  { %v2890_v8 = vpop.f32.mrf.mxu2  ;;  %v2220_v61 = vadd.f32 %v8395_v31, %v2051_v17  ;;  %3566 = vmatpush.msra.mxu3 %v3427_v41  ;;  %v8403_v41 = vld [vmem:[#allocation104_spill] sm:$0xff] }
 0x5ad   :  { %v3215_v36 = vrot.slane %v3214_v37, 2  ;;  %v2891_v53 = vadd.f32 %v2890_v8, %v2722_v34  ;;  %v8396_v34 = vld [vmem:[#allocation129_spill] sm:$0xff] }
 0x5ae   :  { %v2560_v62 = vpop.f32.mrf.mxu0 }
 0x5af   :  { %v3216_v20 = vmax.f32 %v3214_v37, %v3215_v36  ;;  %v2561_v14 = vadd.f32 %v2560_v62, %v8392_v35  ;;  %v3059_v59 = vpop.f32.mrf.mxu3  ;;  %v3411_v36 = vld [vmem:[%s7915_s5 + $0x150] sm:$0xff]  ;;  %v1398_v35 = vld [vmem:[%s7914_s1 + $0xa8] sm:$0xff] }
 0x5b0   :  { %v7176_v0 = vadd.f32 %v3059_v59, %v2891_v53  ;;  %v8398_v53 = vld [vmem:[#allocation96_spill] sm:$0xff]  ;;  %3546 = vmatpush.msra.mxu2 %v3411_v36  ;;  %v8402_v36 = vld [vmem:[#allocation101_spill] sm:$0xff] }
 0x5b1   :  { %v3217_v50 = vrot.slane %v3216_v20, 1  ;;  %2599 = vmatmul.bf16.gmra.mxu0 %v8393_v38  ;;  %v2724_v30 = vpop.f32.mrf.mxu1  ;;  %2932 = vmatmul.bf16.gmra.mxu2 %v8394_v33  ;;  %v2389_v25 = vadd.f32 %v8398_v53, %v2220_v61  ;;  %v3395_v38 = vld [vmem:[%s7915_s5 + $0xd0] sm:$0xff] }
 0x5b2   :  { %v2725_v39 = vadd.f32 %v2724_v30, %v2556_v26  ;;  %v3379_v26 = vld [vmem:[%s7915_s5 + $0x50] sm:$0xff]  ;;  %v8399_v30 = vld [vmem:[#allocation97_spill] sm:$0xff]  ;;  %3526 = vmatpush.msra.mxu1 %v3395_v38 }
 0x5b3   :  { %v3218_v58 = vmax.f32 %v3216_v20, %v3217_v50  ;;  %v2558_v6 = vadd.f32 %v2557_v55, %v2389_v25  ;;  %3506 = vmatpush.msra.mxu0 %v3379_v26  ;;  %v1887_v33 = vadd.f32 %v8399_v30, %v1398_v35  ;;  %v8400_v55 = vld [vmem:[#allocation99_spill] sm:$0xff] }
 0x5b4   :  { %2763 = vmatmul.bf16.gmra.mxu1 %v8396_v34  ;;  %v2893_v37 = vpop.f32.mrf.mxu2  ;;  %3101 = vmatmul.bf16.gmra.mxu3 %v8397_v13 }
 0x5b5   :  { %v7183_v11 = vsel %vm3345_vm5, %v3197_v7, %v3218_v58  ;;  %v2894_v8 = vadd.f32 %v2893_v37, %v2725_v39  ;;  %v2056_v39 = vadd.f32 %v8400_v55, %v1887_v33  ;;  %v8401_v58 = vld [vmem:[#allocation105_spill] sm:$0xff] }
 0x5b6   :  { %v2562_v62 = vpop.f32.mrf.mxu0 }
 0x5b7   :  { %v3062_v17 = vpop.f32.mrf.mxu3  ;;  %v2225_v53 = vadd.f32 %v8402_v36, %v2056_v39  ;;  %v8405_v39 = vld [vmem:[#allocation111_spill] sm:$0xff] }
 0x5b8   :  { %v7195_v20 = vadd.f32 %v3062_v17, %v2894_v8 }
 0x5b9   :  { %v2726_v59 = vpop.f32.mrf.mxu1 }
 0x5ba   :  { %v2727_v50 = vadd.f32 %v2726_v59, %v2558_v6  ;;  %v2394_v6 = vadd.f32 %v8403_v41, %v2225_v53 }
 0x5bc   :  { %v2895_v31 = vpop.f32.mrf.mxu2 }
 0x5bd   :  { %v2896_v61 = vadd.f32 %v2895_v31, %v2727_v50  ;;  %v2563_v50 = vadd.f32 %v2562_v62, %v2394_v6 }
 0x5be   :  { %v2565_v7 = vpop.f32.mrf.mxu0 }
 0x5bf   :  { %v2566_v34 = vadd.f32 %v2565_v7, %v8401_v58  ;;  %v3064_v37 = vpop.f32.mrf.mxu3  ;;  %v8406_v58 = vld [vmem:[#allocation119_spill] sm:$0xff] }
 0x5c0   :  { %v7206_v13 = vadd.f32 %v3064_v37, %v2896_v61 }
 0x5c1   :  { %2604 = vmatmul.bf16.gmra.mxu0 %v6211_v5  ;;  %v2729_v8 = vpop.f32.mrf.mxu1  ;;  %2937 = vmatmul.bf16.gmra.mxu2 %v6214_v57  ;;  %v1400_v5 = vld [vmem:[%s7914_s1 + $0xb8] sm:$0xff] }
 0x5c2   :  { %v2730_v25 = vadd.f32 %v2729_v8, %v2561_v14  ;;  %v3219_v14 = vsel %vm927_vm3, %v7168_v21, -inf  ;;  %v8408_v21 = vld [vmem:[#allocation113_spill] sm:$0xff] }
 0x5c4   :  { %2768 = vmatmul.bf16.gmra.mxu1 %v6229_v2  ;;  %v2898_v17 = vpop.f32.mrf.mxu2  ;;  %3106 = vmatmul.bf16.gmra.mxu3 %v6231_v12  ;;  %v8404_v12 = vld [vmem:[#allocation106_spill] sm:$0xff] }
 0x5c5   :  { %v2899_v26 = vadd.f32 %v2898_v17, %v2730_v25  ;;  %v1892_v31 = vadd.f32 %v8404_v12, %v1400_v5  ;;  %v8407_v25 = vld [vmem:[#allocation142_spill] sm:$0xff]  ;;  %v8410_v5 = vld [vmem:[#allocation144_spill] sm:$0xff] }
 0x5c6   :  { %v2567_v35 = vpop.f32.mrf.mxu0 }
 0x5c7   :  { %v3067_v59 = vpop.f32.mrf.mxu3  ;;  %v2061_v7 = vadd.f32 %v8405_v39, %v1892_v31  ;;  %v3426_v31 = vld [vmem:[%s7915_s5 + $0x1c8] sm:$0xff] }
 0x5c8   :  { %v3068_v38 = vadd.f32 %v3067_v59, %v2899_v26  ;;  %v3220_v26 = vsel %vm927_vm3, %v7176_v0, -inf  ;;  %3567 = vmatpush.msra.mxu3 %v3426_v31 }
 0x5c9   :  { %v2731_v57 = vpop.f32.mrf.mxu1  ;;  %v2230_v17 = vadd.f32 %v8408_v21, %v2061_v7  ;;  %v3221_v7 = vsel %vm927_vm3, %v7195_v20, -inf }
 0x5ca   :  { %v3223_v2 = vsel %vm927_vm3, %v3068_v38, -inf  ;;  %v2732_v30 = vadd.f32 %v2731_v57, %v2563_v50  ;;  %v8409_v50 = vld [vmem:[#allocation143_spill] sm:$0xff] }
 0x5cb   :  { %v3224_v33 = vmax.f32 %v3219_v14, %v3223_v2  ;;  %v8411_v2 = vld [vmem:[#allocation114_spill] sm:$0xff] }
 0x5cc   :  { %v2900_v61 = vpop.f32.mrf.mxu2 }
 0x5cd   :  { %v2901_v55 = vadd.f32 %v2900_v61, %v2732_v30  ;;  %v2399_v30 = vadd.f32 %v8411_v2, %v2230_v17  ;;  %v8413_v17 = vld [vmem:[#allocation120_spill] sm:$0xff] }
 0x5ce   :  { %v2570_v62 = vpop.f32.mrf.mxu0 }
 0x5cf   :  { %v2571_v37 = vadd.f32 %v2570_v62, %v8406_v58  ;;  %v3069_v8 = vpop.f32.mrf.mxu3  ;;  %v2568_v61 = vadd.f32 %v2567_v35, %v2399_v30  ;;  %v8412_v35 = vld [vmem:[#allocation112_spill] sm:$0xff]  ;;  %v3222_v30 = vsel %vm927_vm3, %v7206_v13, -inf  ;;  %v1404_v13 = vld [vmem:[%s7914_s1 + $0xd8] sm:$0xff] }
 0x5d0   :  { %v3070_v36 = vadd.f32 %v3069_v8, %v2901_v55  ;;  %v1402_v55 = vld [vmem:[%s7914_s1 + $0xc8] sm:$0xff] }
 0x5d1   :  { %2609 = vmatmul.bf16.gmra.mxu0 %v6268_v63  ;;  %v2734_v53 = vpop.f32.mrf.mxu1  ;;  %2942 = vmatmul.bf16.gmra.mxu2 %v8407_v25  ;;  %v3410_v63 = vld [vmem:[%s7915_s5 + $0x148] sm:$0xff] }
 0x5d2   :  { %v3225_v41 = vsel %vm927_vm3, %v3070_v36, -inf  ;;  %v2735_v6 = vadd.f32 %v2734_v53, %v2566_v34  ;;  %3547 = vmatpush.msra.mxu2 %v3410_v63  ;;  %v3378_v34 = vld [vmem:[%s7915_s5 + $0x48] sm:$0xff]  ;;  %v1897_v53 = vadd.f32 %v8412_v35, %v1402_v55  ;;  %v8417_v63 = vld [vmem:[#allocation121_spill] sm:$0xff] }
 0x5d3   :  { %v3226_v59 = vmax.f32 %v3220_v26, %v3225_v41  ;;  %3507 = vmatpush.msra.mxu0 %v3378_v34  ;;  %v3394_v8 = vld [vmem:[%s7915_s5 + $0xc8] sm:$0xff]  ;;  %v8419_v55 = vld [vmem:[#allocation153_spill] sm:$0xff] }
 0x5d4   :  { %2773 = vmatmul.bf16.gmra.mxu1 %v8409_v50  ;;  %v2903_v38 = vpop.f32.mrf.mxu2  ;;  %3111 = vmatmul.bf16.gmra.mxu3 %v8410_v5  ;;  %v2066_v26 = vadd.f32 %v8413_v17, %v1897_v53 }
 0x5d5   :  { %v3231_v57 = vmax.f32 %v3224_v33, %v3226_v59  ;;  %v2904_v14 = vadd.f32 %v2903_v38, %v2735_v6  ;;  %3527 = vmatpush.msra.mxu1 %v3394_v8  ;;  %v8414_v6 = vld [vmem:[#allocation124_spill] sm:$0xff]  ;;  %v8415_v38 = vld [vmem:[#allocation150_spill] sm:$0xff] }
 0x5d6   :  { %v2572_v12 = vpop.f32.mrf.mxu0  ;;  %v2235_v2 = vadd.f32 %v8417_v63, %v2066_v26 }
 0x5d7   :  { %v3072_v0 = vpop.f32.mrf.mxu3 }
 0x5d8   :  { %v3073_v33 = vadd.f32 %v3072_v0, %v2904_v14  ;;  %v8416_v14 = vld [vmem:[#allocation151_spill] sm:$0xff] }
 0x5d9   :  { %v2736_v39 = vpop.f32.mrf.mxu1 }
 0x5da   :  { %v3227_v62 = vsel %vm927_vm3, %v3073_v33, -inf  ;;  %v2737_v58 = vadd.f32 %v2736_v39, %v2568_v61  ;;  %v8418_v61 = vld [vmem:[#allocation152_spill] sm:$0xff] }
 0x5db   :  { %v3228_v36 = vmax.f32 %v3221_v7, %v3227_v62  ;;  %v8420_v62 = vld [vmem:[#allocation123_spill] sm:$0xff] }
 0x5dc   :  { %v2905_v25 = vpop.f32.mrf.mxu2 }
 0x5dd   :  { %v2906_v21 = vadd.f32 %v2905_v25, %v2737_v58  ;;  %v2404_v58 = vadd.f32 %v8420_v62, %v2235_v2 }
 0x5de   :  { %v2575_v41 = vpop.f32.mrf.mxu0 }
 0x5df   :  { %v2576_v59 = vadd.f32 %v2575_v41, %v8414_v6  ;;  %v3074_v50 = vpop.f32.mrf.mxu3  ;;  %v2573_v25 = vadd.f32 %v2572_v12, %v2404_v58  ;;  %v8421_v6 = vld [vmem:[#allocation122_spill] sm:$0xff]  ;;  %v8426_v58 = vld [vmem:[#allocation159_spill] sm:$0xff] }
 0x5e0   :  { %v3075_v20 = vadd.f32 %v3074_v50, %v2906_v21  ;;  %v1902_v50 = vadd.f32 %v8421_v6, %v1404_v13  ;;  %v8423_v12 = vld [vmem:[#allocation134_spill] sm:$0xff] }
 0x5e1   :  { %2614 = vmatmul.bf16.gmra.mxu0 %v8415_v38  ;;  %v2739_v5 = vpop.f32.mrf.mxu1  ;;  %2947 = vmatmul.bf16.gmra.mxu2 %v8416_v14 }
 0x5e2   :  { %v3229_v0 = vsel %vm927_vm3, %v3075_v20, -inf  ;;  %v2740_v34 = vadd.f32 %v2739_v5, %v2571_v37  ;;  %v8422_v5 = vld [vmem:[#allocation125_spill] sm:$0xff] }
 0x5e3   :  { %v3230_v31 = vmax.f32 %v3222_v30, %v3229_v0  ;;  %v2071_v14 = vadd.f32 %v8422_v5, %v1902_v50 }
 0x5e4   :  { %2778 = vmatmul.bf16.gmra.mxu1 %v8418_v61  ;;  %v2908_v33 = vpop.f32.mrf.mxu2  ;;  %3116 = vmatmul.bf16.gmra.mxu3 %v8419_v55  ;;  %v8424_v61 = vld [vmem:[#allocation128_spill] sm:$0xff] }
 0x5e5   :  { %v3232_v39 = vmax.f32 %v3228_v36, %v3230_v31  ;;  %v2909_v7 = vadd.f32 %v2908_v33, %v2740_v34  ;;  %v2240_v33 = vadd.f32 %v8424_v61, %v2071_v14 }
 0x5e6   :  { %v2577_v8 = vpop.f32.mrf.mxu0 }
 0x5e7   :  { %v3233_v35 = vmax.f32 %v3231_v57, %v3232_v39  ;;  %v3077_v53 = vpop.f32.mrf.mxu3 }
 0x5e8   :  { %v7262_v21 = vadd.f32 %v3077_v53, %v2909_v7  ;;  %v8425_v7 = vld [vmem:[#allocation158_spill] sm:$0xff] }
 0x5e9   :  { %v3234_v37 = vrot.slane %v3233_v35, 4  ;;  %v2741_v17 = vpop.f32.mrf.mxu1 }
 0x5ea   :  { %v2742_v26 = vadd.f32 %v2741_v17, %v2573_v25  ;;  %v8427_v25 = vld [vmem:[#allocation131_spill] sm:$0xff]  ;;  %v3425_v17 = vld [vmem:[%s7915_s5 + $0x1c0] sm:$0xff] }
 0x5eb   :  { %v3235_v41 = vmax.f32 %v3233_v35, %v3234_v37  ;;  %3568 = vmatpush.msra.mxu3 %v3425_v17 }
 0x5ec   :  { %v2910_v36 = vpop.f32.mrf.mxu2 }
 0x5ed   :  { %v3236_v20 = vrot.slane %v3235_v41, 2  ;;  %v2911_v38 = vadd.f32 %v2910_v36, %v2742_v26  ;;  %v3393_v36 = vld [vmem:[%s7915_s5 + $0xc0] sm:$0xff] }
 0x5ee   :  { %v2580_v57 = vpop.f32.mrf.mxu0  ;;  %3528 = vmatpush.msra.mxu1 %v3393_v36 }
 0x5ef   :  { %v3237_v63 = vmax.f32 %v3235_v41, %v3236_v20  ;;  %v2581_v2 = vadd.f32 %v2580_v57, %v8423_v12  ;;  %v3079_v30 = vpop.f32.mrf.mxu3  ;;  %v1406_v41 = vld [vmem:[%s7914_s1 + $0xe8] sm:$0xff]  ;;  %v8428_v20 = vld [vmem:[#allocation132_spill] sm:$0xff]  ;;  %v8430_v12 = vld [vmem:[#allocation137_spill] sm:$0xff] }
 0x5f0   :  { %v7270_v0 = vadd.f32 %v3079_v30, %v2911_v38  ;;  %v1907_v38 = vadd.f32 %v8428_v20, %v1406_v41 }
 0x5f1   :  { %v3238_v34 = vrot.slane %v3237_v63, 1  ;;  %2619 = vmatmul.bf16.gmra.mxu0 %v6445_v40  ;;  %v2744_v31 = vpop.f32.mrf.mxu1  ;;  %2952 = vmatmul.bf16.gmra.mxu2 %v6448_v46  ;;  %v3409_v40 = vld [vmem:[%s7915_s5 + $0x140] sm:$0xff]  ;;  %v2409_v46 = vadd.f32 %v8427_v25, %v2240_v33  ;;  %v8431_v33 = vld [vmem:[#allocation135_spill] sm:$0xff] }
 0x5f2   :  { %v2745_v55 = vadd.f32 %v2744_v31, %v2576_v59  ;;  %3548 = vmatpush.msra.mxu2 %v3409_v40  ;;  %v3377_v59 = vld [vmem:[%s7915_s5 + $0x40] sm:$0xff]  ;;  %v8434_v40 = vld [vmem:[#allocation136_spill] sm:$0xff] }
 0x5f3   :  { %v3239_v39 = vmax.f32 %v3237_v63, %v3238_v34  ;;  %3508 = vmatpush.msra.mxu0 %v3377_v59 }
 0x5f4   :  { %2783 = vmatmul.bf16.gmra.mxu1 %v8425_v7  ;;  %v2913_v62 = vpop.f32.mrf.mxu2  ;;  %3121 = vmatmul.bf16.gmra.mxu3 %v8426_v58  ;;  %v8432_v7 = vld [vmem:[#allocation165_spill] sm:$0xff]  ;;  %v8433_v58 = vld [vmem:[#allocation166_spill] sm:$0xff] }
 0x5f5   :  { %v7278_v35 = vsel %vm3347_vm6, %v7183_v11, %v3239_v39  ;;  %v2914_v53 = vadd.f32 %v2913_v62, %v2745_v55  ;;  %v2578_v11 = vadd.f32 %v2577_v8, %v2409_v46  ;;  %v8429_v8 = vld [vmem:[#allocation133_spill] sm:$0xff] }
 0x5f6   :  { %v2582_v13 = vpop.f32.mrf.mxu0  ;;  %v2076_v57 = vadd.f32 %v8429_v8, %v1907_v38  ;;  %v8437_v8 = vld [vmem:[#allocation145_spill] sm:$0xff] }
 0x5f7   :  { %v3082_v37 = vpop.f32.mrf.mxu3 }
 0x5f8   :  { %v7290_v26 = vadd.f32 %v3082_v37, %v2914_v53  ;;  %v2245_v55 = vadd.f32 %v8431_v33, %v2076_v57 }
 0x5f9   :  { %v2746_v6 = vpop.f32.mrf.mxu1 }
 0x5fa   :  { %v2747_v50 = vadd.f32 %v2746_v6, %v2578_v11  ;;  %v2414_v25 = vadd.f32 %v8434_v40, %v2245_v55  ;;  %v3241_v55 = vsel %vm927_vm3, %v7270_v0, -inf }
 0x5fc   :  { %v2915_v5 = vpop.f32.mrf.mxu2  ;;  %v2583_v59 = vadd.f32 %v2582_v13, %v2414_v25  ;;  %v8440_v25 = vld [vmem:[#allocation141_spill] sm:$0xff] }
 0x5fd   :  { %v2916_v14 = vadd.f32 %v2915_v5, %v2747_v50  ;;  %v8435_v50 = vld [vmem:[#allocation138_spill] sm:$0xff]  ;;  %v8436_v5 = vld [vmem:[#allocation139_spill] sm:$0xff] }
 0x5fe   :  { %v2585_v63 = vpop.f32.mrf.mxu0 }
 0x5ff   :  { %v2586_v30 = vadd.f32 %v2585_v63, %v8430_v12  ;;  %v3084_v34 = vpop.f32.mrf.mxu3 }
 0x600   :  { %v7301_v31 = vadd.f32 %v3084_v34, %v2916_v14  ;;  %v8438_v34 = vld [vmem:[#allocation173_spill] sm:$0xff] }
 0x601   :  { %2624 = vmatmul.bf16.gmra.mxu0 %v6505_v18  ;;  %v2749_v61 = vpop.f32.mrf.mxu1  ;;  %2957 = vmatmul.bf16.gmra.mxu2 %v6508_v52  ;;  %v1408_v18 = vld [vmem:[%s7914_s1 + $0xf8] sm:$0xff] }
 0x602   :  { %v2750_v39 = vadd.f32 %v2749_v61, %v2581_v2  ;;  %v3240_v2 = vsel %vm927_vm3, %v7262_v21, -inf  ;;  %v1912_v36 = vadd.f32 %v8435_v50, %v1408_v18  ;;  %v8439_v21 = vld [vmem:[#allocation140_spill] sm:$0xff]  ;;  %v1410_v18 = vld [vmem:[%s7914_s1 + $0x108] sm:$0xff] }
 0x604   :  { %2788 = vmatmul.bf16.gmra.mxu1 %v8432_v7  ;;  %v2918_v62 = vpop.f32.mrf.mxu2  ;;  %3126 = vmatmul.bf16.gmra.mxu3 %v8433_v58  ;;  %v2081_v14 = vadd.f32 %v8436_v5, %v1912_v36  ;;  %v8442_v5 = vld [vmem:[#allocation147_spill] sm:$0xff] }
 0x605   :  { %v2919_v53 = vadd.f32 %v2918_v62, %v2750_v39 }
 0x606   :  { %v2587_v46 = vpop.f32.mrf.mxu0  ;;  %v2250_v33 = vadd.f32 %v8439_v21, %v2081_v14  ;;  %v8445_v21 = vld [vmem:[#allocation178_spill] sm:$0xff] }
 0x607   :  { %v3087_v37 = vpop.f32.mrf.mxu3 }
 0x608   :  { %v3088_v17 = vadd.f32 %v3087_v37, %v2919_v53  ;;  %v2419_v37 = vadd.f32 %v8440_v25, %v2250_v33  ;;  %v8446_v33 = vld [vmem:[#allocation148_spill] sm:$0xff] }
 0x609   :  { %v2751_v52 = vpop.f32.mrf.mxu1  ;;  %v8448_v25 = vld [vmem:[#allocation180_spill] sm:$0xff] }
 0x60a   :  { %v3244_v11 = vsel %vm927_vm3, %v3088_v17, -inf  ;;  %v2752_v41 = vadd.f32 %v2751_v52, %v2583_v59 }
 0x60b   :  { %v3245_v6 = vmax.f32 %v3240_v2, %v3244_v11  ;;  %v3242_v2 = vsel %vm927_vm3, %v7290_v26, -inf }
 0x60c   :  { %v2920_v20 = vpop.f32.mrf.mxu2 }
 0x60d   :  { %v2921_v38 = vadd.f32 %v2920_v20, %v2752_v41 }
 0x60e   :  { %v2590_v13 = vpop.f32.mrf.mxu0 }
 0x60f   :  { %v2591_v57 = vadd.f32 %v2590_v13, %v8437_v8  ;;  %v3089_v63 = vpop.f32.mrf.mxu3  ;;  %v8443_v8 = vld [vmem:[#allocation154_spill] sm:$0xff] }
 0x610   :  { %v3090_v12 = vadd.f32 %v3089_v63, %v2921_v38 }
 0x611   :  { %2629 = vmatmul.bf16.gmra.mxu0 %v8438_v34  ;;  %v2754_v61 = vpop.f32.mrf.mxu1  ;;  %2962 = vmatmul.bf16.gmra.mxu2 %v6567_v49  ;;  %v3408_v49 = vld [vmem:[%s7915_s5 + $0x138] sm:$0xff] }
 0x612   :  { %v3246_v39 = vsel %vm927_vm3, %v3090_v12, -inf  ;;  %v2755_v7 = vadd.f32 %v2754_v61, %v2586_v30  ;;  %3549 = vmatpush.msra.mxu2 %v3408_v49  ;;  %v3376_v30 = vld [vmem:[%s7915_s5 + $0x38] sm:$0xff] }
 0x613   :  { %v3247_v62 = vmax.f32 %v3241_v55, %v3246_v39  ;;  %3509 = vmatpush.msra.mxu0 %v3376_v30  ;;  %v8444_v34 = vld [vmem:[#allocation177_spill] sm:$0xff]  ;;  %v3243_v39 = vsel %vm927_vm3, %v7301_v31, -inf }
 0x614   :  { %2793 = vmatmul.bf16.gmra.mxu1 %v6575_v16  ;;  %v2923_v58 = vpop.f32.mrf.mxu2  ;;  %3131 = vmatmul.bf16.gmra.mxu3 %v6577_v51  ;;  %v3424_v16 = vld [vmem:[%s7915_s5 + $0x1b8] sm:$0xff]  ;;  %v2588_v51 = vadd.f32 %v2587_v46, %v2419_v37  ;;  %v8441_v46 = vld [vmem:[#allocation146_spill] sm:$0xff] }
 0x615   :  { %v3252_v53 = vmax.f32 %v3245_v6, %v3247_v62  ;;  %v2924_v40 = vadd.f32 %v2923_v58, %v2755_v7  ;;  %3569 = vmatpush.msra.mxu3 %v3424_v16  ;;  %v3392_v6 = vld [vmem:[%s7915_s5 + $0xb8] sm:$0xff]  ;;  %v1917_v36 = vadd.f32 %v8441_v46, %v1410_v18  ;;  %v8450_v46 = vld [vmem:[#allocation155_spill] sm:$0xff] }
 0x616   :  { %v2592_v59 = vpop.f32.mrf.mxu0  ;;  %3529 = vmatpush.msra.mxu1 %v3392_v6  ;;  %v8449_v30 = vld [vmem:[#allocation149_spill] sm:$0xff] }
 0x617   :  { %v3092_v0 = vpop.f32.mrf.mxu3  ;;  %v2086_v14 = vadd.f32 %v8442_v5, %v1917_v36  ;;  %v1412_v31 = vld [vmem:[%s7914_s1 + $0x118] sm:$0xff]  ;;  %v8451_v5 = vld [vmem:[#allocation156_spill] sm:$0xff] }
 0x618   :  { %v3093_v17 = vadd.f32 %v3092_v0, %v2924_v40  ;;  %v8447_v40 = vld [vmem:[#allocation179_spill] sm:$0xff]  ;;  %v1922_v36 = vadd.f32 %v8450_v46, %v1412_v31 }
 0x619   :  { %v2756_v52 = vpop.f32.mrf.mxu1  ;;  %v2255_v55 = vadd.f32 %v8446_v33, %v2086_v14 }
 0x61a   :  { %v3248_v11 = vsel %vm927_vm3, %v3093_v17, -inf  ;;  %v2757_v41 = vadd.f32 %v2756_v52, %v2588_v51  ;;  %v2091_v14 = vadd.f32 %v8451_v5, %v1922_v36 }
 0x61b   :  { %v3249_v50 = vmax.f32 %v3242_v2, %v3248_v11  ;;  %v2424_v16 = vadd.f32 %v8449_v30, %v2255_v55 }
 0x61c   :  { %v2925_v20 = vpop.f32.mrf.mxu2 }
 0x61d   :  { %v2926_v38 = vadd.f32 %v2925_v20, %v2757_v41  ;;  %v2593_v52 = vadd.f32 %v2592_v59, %v2424_v16  ;;  %v8452_v59 = vld [vmem:[#allocation162_spill] sm:$0xff]  ;;  %v3391_v16 = vld [vmem:[%s7915_s5 + $0xb0] sm:$0xff] }
 0x61e   :  { %v2595_v13 = vpop.f32.mrf.mxu0  ;;  %3530 = vmatpush.msra.mxu1 %v3391_v16 }
 0x61f   :  { %v2596_v63 = vadd.f32 %v2595_v13, %v8443_v8  ;;  %v3094_v12 = vpop.f32.mrf.mxu3 }
 0x620   :  { %v3095_v26 = vadd.f32 %v3094_v12, %v2926_v38 }
 0x621   :  { %2634 = vmatmul.bf16.gmra.mxu0 %v8444_v34  ;;  %v2759_v61 = vpop.f32.mrf.mxu1  ;;  %2967 = vmatmul.bf16.gmra.mxu2 %v8445_v21  ;;  %v8453_v21 = vld [vmem:[#allocation157_spill] sm:$0xff] }
 0x622   :  { %v3250_v7 = vsel %vm927_vm3, %v3095_v26, -inf  ;;  %v2760_v62 = vadd.f32 %v2759_v61, %v2591_v57  ;;  %v2260_v33 = vadd.f32 %v8453_v21, %v2091_v14 }
 0x623   :  { %v3251_v58 = vmax.f32 %v3243_v39, %v3250_v7 }
 0x624   :  { %2798 = vmatmul.bf16.gmra.mxu1 %v8447_v40  ;;  %v2928_v49 = vpop.f32.mrf.mxu2  ;;  %3136 = vmatmul.bf16.gmra.mxu3 %v8448_v25  ;;  %v8454_v40 = vld [vmem:[#allocation160_spill] sm:$0xff] }
 0x625   :  { %v3253_v37 = vmax.f32 %v3249_v50, %v3251_v58  ;;  %v2929_v0 = vadd.f32 %v2928_v49, %v2760_v62  ;;  %v3407_v58 = vld [vmem:[%s7915_s5 + $0x130] sm:$0xff] }
 0x626   :  { %v2597_v51 = vpop.f32.mrf.mxu0  ;;  %3550 = vmatpush.msra.mxu2 %v3407_v58  ;;  %v8461_v58 = vld [vmem:[#allocation170_spill] sm:$0xff] }
 0x627   :  { %v3254_v17 = vmax.f32 %v3252_v53, %v3253_v37  ;;  %v3097_v18 = vpop.f32.mrf.mxu3 }
 0x628   :  { %v7357_v2 = vadd.f32 %v3097_v18, %v2929_v0 }
 0x629   :  { %v3255_v57 = vrot.slane %v3254_v17, 4  ;;  %v2761_v11 = vpop.f32.mrf.mxu1 }
 0x62a   :  { %v2762_v41 = vadd.f32 %v2761_v11, %v2593_v52 }
 0x62b   :  { %v3256_v6 = vmax.f32 %v3254_v17, %v3255_v57  ;;  %v8455_v17 = vld [vmem:[#allocation161_spill] sm:$0xff] }
 0x62c   :  { %v2930_v50 = vpop.f32.mrf.mxu2 }
 0x62d   :  { %v3257_v20 = vrot.slane %v3256_v6, 2  ;;  %v2931_v38 = vadd.f32 %v2930_v50, %v2762_v41  ;;  %v8457_v41 = vld [vmem:[#allocation168_spill] sm:$0xff] }
 0x62e   :  { %v2600_v53 = vpop.f32.mrf.mxu0 }
 0x62f   :  { %v3258_v13 = vmax.f32 %v3256_v6, %v3257_v20  ;;  %v2601_v8 = vadd.f32 %v2600_v53, %v8452_v59  ;;  %v3099_v12 = vpop.f32.mrf.mxu3  ;;  %v8458_v20 = vld [vmem:[#allocation164_spill] sm:$0xff] }
 0x630   :  { %v7365_v26 = vadd.f32 %v3099_v12, %v2931_v38 }
 0x631   :  { %v3259_v34 = vrot.slane %v3258_v13, 1  ;;  %2639 = vmatmul.bf16.gmra.mxu0 %v6664_v22  ;;  %v2764_v61 = vpop.f32.mrf.mxu1  ;;  %2972 = vmatmul.bf16.gmra.mxu2 %v6676_v42  ;;  %v2429_v42 = vadd.f32 %v8454_v40, %v2260_v33 }
 0x632   :  { %v2765_v55 = vadd.f32 %v2764_v61, %v2596_v63 }
 0x633   :  { %v3260_v39 = vmax.f32 %v3258_v13, %v3259_v34  ;;  %v2598_v25 = vadd.f32 %v2597_v51, %v2429_v42  ;;  %v8456_v51 = vld [vmem:[#allocation163_spill] sm:$0xff] }
 0x634   :  { %2803 = vmatmul.bf16.gmra.mxu1 %v6689_v15  ;;  %v2933_v7 = vpop.f32.mrf.mxu2  ;;  %3141 = vmatmul.bf16.gmra.mxu3 %v6691_v44  ;;  %v3375_v15 = vld [vmem:[%s7915_s5 + $0x30] sm:$0xff]  ;;  %v8459_v13 = vld [vmem:[#allocation167_spill] sm:$0xff] }
 0x635   :  { %v2934_v62 = vadd.f32 %v2933_v7, %v2765_v55  ;;  %v7376_v22 = vsel %vm3349_vm7, %v7278_v35, %v3260_v39  ;;  %v3423_v44 = vld [vmem:[%s7915_s5 + $0x1b0] sm:$0xff]  ;;  %3510 = vmatpush.msra.mxu0 %v3375_v15  ;;  %v1414_v35 = vld [vmem:[%s7914_s1 + $0x128] sm:$0xff] }
 0x636   :  { %v2602_v49 = vpop.f32.mrf.mxu0  ;;  %3570 = vmatpush.msra.mxu3 %v3423_v44  ;;  %v1927_v18 = vadd.f32 %v8455_v17, %v1414_v35  ;;  %v8462_v44 = vld [vmem:[#allocation195_spill] sm:$0xff]  ;;  %v3262_v35 = vsel %vm927_vm3, %v7365_v26, -inf  ;;  %v8464_v17 = vld [vmem:[#allocation196_spill] sm:$0xff] }
 0x637   :  { %v3102_v63 = vpop.f32.mrf.mxu3 }
 0x638   :  { %v7385_v37 = vadd.f32 %v3102_v63, %v2934_v62  ;;  %v2096_v57 = vadd.f32 %v8456_v51, %v1927_v18 }
 0x639   :  { %v2766_v0 = vpop.f32.mrf.mxu1 }
 0x63a   :  { %v2767_v30 = vadd.f32 %v2766_v0, %v2598_v25  ;;  %v2265_v38 = vadd.f32 %v8458_v20, %v2096_v57  ;;  %v8466_v57 = vld [vmem:[#allocation172_spill] sm:$0xff] }
 0x63c   :  { %v2935_v52 = vpop.f32.mrf.mxu2  ;;  %v2434_v59 = vadd.f32 %v8459_v13, %v2265_v38  ;;  %v3390_v13 = vld [vmem:[%s7915_s5 + $0xa8] sm:$0xff] }
 0x63d   :  { %v2936_v31 = vadd.f32 %v2935_v52, %v2767_v30  ;;  %v8465_v52 = vld [vmem:[#allocation197_spill] sm:$0xff]  ;;  %3531 = vmatpush.msra.mxu1 %v3390_v13 }
 0x63e   :  { %v2605_v11 = vpop.f32.mrf.mxu0  ;;  %v2603_v61 = vadd.f32 %v2602_v49, %v2434_v59 }
 0x63f   :  { %v2606_v6 = vadd.f32 %v2605_v11, %v8457_v41  ;;  %v3104_v46 = vpop.f32.mrf.mxu3 }
 0x640   :  { %v7396_v36 = vadd.f32 %v3104_v46, %v2936_v31  ;;  %v3422_v46 = vld [vmem:[%s7915_s5 + $0x1a8] sm:$0xff] }
 0x641   :  { %2644 = vmatmul.bf16.gmra.mxu0 %v6713_v28  ;;  %v2769_v50 = vpop.f32.mrf.mxu1  ;;  %2977 = vmatmul.bf16.gmra.mxu2 %v6715_v1  ;;  %v1416_v28 = vld [vmem:[%s7914_s1 + $0x138] sm:$0xff] }
 0x642   :  { %v2770_v5 = vadd.f32 %v2769_v50, %v2601_v8  ;;  %v3261_v8 = vsel %vm927_vm3, %v7357_v2, -inf  ;;  %v8463_v2 = vld [vmem:[#allocation171_spill] sm:$0xff]  ;;  %3571 = vmatpush.msra.mxu3 %v3422_v46 }
 0x643   :  { %v1418_v46 = vld [vmem:[%s7914_s1 + $0x148] sm:$0xff] }
 0x644   :  { %2808 = vmatmul.bf16.gmra.mxu1 %v6725_v43  ;;  %v2938_v14 = vpop.f32.mrf.mxu2  ;;  %3146 = vmatmul.bf16.gmra.mxu3 %v6727_v23  ;;  %v8460_v23 = vld [vmem:[#allocation169_spill] sm:$0xff] }
 0x645   :  { %v2939_v53 = vadd.f32 %v2938_v14, %v2770_v5  ;;  %v1932_v39 = vadd.f32 %v8460_v23, %v1416_v28  ;;  %v3263_v5 = vsel %vm927_vm3, %v7385_v37, -inf  ;;  %v3264_v37 = vsel %vm927_vm3, %v7396_v36, -inf  ;;  %v8468_v23 = vld [vmem:[#allocation202_spill] sm:$0xff] }
 0x646   :  { %v2607_v12 = vpop.f32.mrf.mxu0 }
 0x647   :  { %v3107_v34 = vpop.f32.mrf.mxu3  ;;  %v2101_v40 = vadd.f32 %v8461_v58, %v1932_v39 }
 0x648   :  { %v3108_v21 = vadd.f32 %v3107_v34, %v2939_v53 }
 0x649   :  { %v2771_v1 = vpop.f32.mrf.mxu1  ;;  %v2270_v25 = vadd.f32 %v8463_v2, %v2101_v40 }
 0x64a   :  { %v3265_v43 = vsel %vm927_vm3, %v3108_v21, -inf  ;;  %v2772_v33 = vadd.f32 %v2771_v1, %v2603_v61 }
 0x64b   :  { %v3266_v55 = vmax.f32 %v3261_v8, %v3265_v43  ;;  %v2439_v11 = vadd.f32 %v8466_v57, %v2270_v25 }
 0x64c   :  { %v2940_v7 = vpop.f32.mrf.mxu2 }
 0x64d   :  { %v2941_v62 = vadd.f32 %v2940_v7, %v2772_v33  ;;  %v2608_v50 = vadd.f32 %v2607_v12, %v2439_v11  ;;  %v8467_v12 = vld [vmem:[#allocation184_spill] sm:$0xff]  ;;  %v8469_v7 = vld [vmem:[#allocation203_spill] sm:$0xff] }
 0x64e   :  { %v7412_v42 = vpop.f32.mrf.mxu0 }
 0x64f   :  { %v3109_v49 = vpop.f32.mrf.mxu3 }
 0x650   :  { %v3110_v63 = vadd.f32 %v3109_v49, %v2941_v62 }
 0x651   :  { %2649 = vmatmul.bf16.gmra.mxu0 %v6756_v10  ;;  %v2774_v15 = vpop.f32.mrf.mxu1  ;;  %2982 = vmatmul.bf16.gmra.mxu2 %v8462_v44  ;;  %v3406_v10 = vld [vmem:[%s7915_s5 + $0x128] sm:$0xff] }
 0x652   :  { %v3267_v0 = vsel %vm927_vm3, %v3110_v63, -inf  ;;  %v2775_v30 = vadd.f32 %v2774_v15, %v2606_v6  ;;  %3551 = vmatpush.msra.mxu2 %v3406_v10  ;;  %v3374_v6 = vld [vmem:[%s7915_s5 + $0x28] sm:$0xff]  ;;  %v8473_v10 = vld [vmem:[#allocation186_spill] sm:$0xff] }
 0x653   :  { %v3268_v16 = vmax.f32 %v3262_v35, %v3267_v0  ;;  %3511 = vmatpush.msra.mxu0 %v3374_v6  ;;  %v8470_v15 = vld [vmem:[#allocation183_spill] sm:$0xff]  ;;  %v8471_v35 = vld [vmem:[#allocation185_spill] sm:$0xff] }
 0x654   :  { %2813 = vmatmul.bf16.gmra.mxu1 %v8464_v17  ;;  %v2943_v18 = vpop.f32.mrf.mxu2  ;;  %3151 = vmatmul.bf16.gmra.mxu3 %v8465_v52  ;;  %v8472_v17 = vld [vmem:[#allocation189_spill] sm:$0xff] }
 0x655   :  { %v3273_v31 = vmax.f32 %v3266_v55, %v3268_v16  ;;  %v2944_v51 = vadd.f32 %v2943_v18, %v2775_v30 }
 0x656   :  { %v7426_v41 = vpop.f32.mrf.mxu0 }
 0x657   :  { %v3112_v26 = vpop.f32.mrf.mxu3 }
 0x658   :  { %v3113_v20 = vadd.f32 %v3112_v26, %v2944_v51 }
 0x659   :  { %v2776_v38 = vpop.f32.mrf.mxu1 }
 0x65a   :  { %v3269_v14 = vsel %vm927_vm3, %v3113_v20, -inf  ;;  %v2777_v53 = vadd.f32 %v2776_v38, %v2608_v50  ;;  %v8474_v20 = vld [vmem:[#allocation187_spill] sm:$0xff] }
 0x65b   :  { %v3270_v59 = vmax.f32 %v3263_v5, %v3269_v14  ;;  %v3421_v14 = vld [vmem:[%s7915_s5 + $0x1a0] sm:$0xff] }
 0x65c   :  { %v2945_v34 = vpop.f32.mrf.mxu2  ;;  %3572 = vmatpush.msra.mxu3 %v3421_v14 }
 0x65d   :  { %v2946_v61 = vadd.f32 %v2945_v34, %v2777_v53  ;;  %v8475_v53 = vld [vmem:[#allocation175_spill] sm:$0xff] }
 0x65e   :  { %v2615_v21 = vpop.f32.mrf.mxu0  ;;  %v1937_v13 = vadd.f32 %v8475_v53, %v1418_v46 }
 0x65f   :  { %v2616_v28 = vadd.f32 %v2615_v21, %v8467_v12  ;;  %v3114_v1 = vpop.f32.mrf.mxu3  ;;  %v8476_v21 = vld [vmem:[#allocation176_spill] sm:$0xff] }
 0x660   :  { %v3115_v8 = vadd.f32 %v3114_v1, %v2946_v61  ;;  %v2106_v12 = vadd.f32 %v8476_v21, %v1937_v13  ;;  %v3389_v1 = vld [vmem:[%s7915_s5 + $0xa0] sm:$0xff] }
 0x661   :  { %2654 = vmatmul.bf16.gmra.mxu0 %v6787_v19  ;;  %v2779_v43 = vpop.f32.mrf.mxu1  ;;  %2987 = vmatmul.bf16.gmra.mxu2 %v6789_v60  ;;  %v1420_v19 = vld [vmem:[%s7914_s1 + $0x158] sm:$0xff]  ;;  %v8487_v13 = vld [vmem:[#allocation198_spill] sm:$0xff] }
 0x662   :  { %v3271_v33 = vsel %vm927_vm3, %v3115_v8, -inf  ;;  %v1942_v44 = vadd.f32 %v8470_v15, %v1420_v19  ;;  %v8477_v8 = vld [vmem:[#allocation188_spill] sm:$0xff]  ;;  %3532 = vmatpush.msra.mxu1 %v3389_v1  ;;  %v8481_v15 = vld [vmem:[#allocation193_spill] sm:$0xff] }
 0x663   :  { %v3272_v55 = vmax.f32 %v3264_v37, %v3271_v33  ;;  %v8478_v33 = vld [vmem:[#allocation174_spill] sm:$0xff] }
 0x664   :  { %2818 = vmatmul.bf16.gmra.mxu1 %v8468_v23  ;;  %v7447_v39 = vpop.f32.mrf.mxu2  ;;  %3156 = vmatmul.bf16.gmra.mxu3 %v8469_v7  ;;  %v2111_v0 = vadd.f32 %v8471_v35, %v1942_v44 }
 0x665   :  { %v3274_v62 = vmax.f32 %v3270_v59, %v3272_v55  ;;  %v2611_v55 = vadd.f32 %v7412_v42, %v8478_v33  ;;  %v8483_v42 = vld [vmem:[#allocation182_spill] sm:$0xff] }
 0x666   :  { %v2617_v58 = vpop.f32.mrf.mxu0  ;;  %v2280_v57 = vadd.f32 %v8473_v10, %v2111_v0  ;;  %v8482_v0 = vld [vmem:[#allocation3_spill] sm:$0xff] }
 0x667   :  { %v3275_v40 = vmax.f32 %v3273_v31, %v3274_v62  ;;  %v7450_v49 = vpop.f32.mrf.mxu3  ;;  %v8479_v62 = vld [vmem:[#allocation181_spill] sm:$0xff] }
 0x668   :  { %v2449_v38 = vadd.f32 %v8474_v20, %v2280_v57 }
 0x669   :  { %v3276_v60 = vrot.slane %v3275_v40, 4  ;;  %v7455_v36 = vpop.f32.mrf.mxu1 }
 0x66a   :  { %v2618_v59 = vadd.f32 %v2617_v58, %v2449_v38  ;;  %v2275_v58 = vadd.f32 %v8479_v62, %v2106_v12  ;;  %v8491_v62 = vld [vmem:[#allocation4_spill] sm:$0xff] }
 0x66b   :  { %v3277_v63 = vmax.f32 %v3275_v40, %v3276_v60  ;;  %v8480_v40 = vld [vmem:[#allocation190_spill] sm:$0xff]  ;;  %v2780_v60 = vadd.f32 %v2779_v43, %v2611_v55 }
 0x66c   :  { %v7458_v2 = vpop.f32.mrf.mxu2 }
 0x66d   :  { %v3278_v25 = vrot.slane %v3277_v63, 2 }
 0x66e   :  { %v2620_v30 = vpop.f32.mrf.mxu0 }
 0x66f   :  { %v3279_v16 = vmax.f32 %v3277_v63, %v3278_v25  ;;  %v2621_v18 = vadd.f32 %v2620_v30, %v8472_v17  ;;  %v7462_v52 = vpop.f32.mrf.mxu3  ;;  %v8484_v17 = vld [vmem:[#allocation191_spill] sm:$0xff] }
 0x671   :  { %v3280_v31 = vrot.slane %v3279_v16, 1  ;;  %2659 = vmatmul.bf16.gmra.mxu0 %v6824_v54  ;;  %v2784_v51 = vpop.f32.mrf.mxu1  ;;  %2992 = vmatmul.bf16.gmra.mxu2 %v6826_v3  ;;  %v3405_v54 = vld [vmem:[%s7915_s5 + $0x120] sm:$0xff] }
 0x672   :  { %v2785_v11 = vadd.f32 %v2784_v51, %v2616_v28  ;;  %3552 = vmatpush.msra.mxu2 %v3405_v54  ;;  %v2949_v51 = vadd.f32 %v7447_v39, %v2780_v60  ;;  %v3404_v60 = vld [vmem:[%s7915_s5 + $0x118] sm:$0xff] }
 0x673   :  { %v3281_v26 = vmax.f32 %v3279_v16, %v3280_v31  ;;  %v2444_v16 = vadd.f32 %v8483_v42, %v2275_v58 }
 0x674   :  { %2823 = vmatmul.bf16.gmra.mxu1 %v6834_v47  ;;  %v2953_v6 = vpop.f32.mrf.mxu2  ;;  %3161 = vmatmul.bf16.gmra.mxu3 %v6836_v9  ;;  %v3373_v9 = vld [vmem:[%s7915_s5 + $0x20] sm:$0xff]  ;;  %v3118_v46 = vadd.f32 %v7450_v49, %v2949_v51 }
 0x675   :  { %v2954_v50 = vadd.f32 %v2953_v6, %v2785_v11  ;;  %v7476_v3 = vsel %vm3351_vm8, %v7376_v22, %v3281_v26  ;;  %3512 = vmatpush.msra.mxu0 %v3373_v9  ;;  %v1422_v22 = vld [vmem:[%s7914_s1 + $0x168] sm:$0xff]  ;;  %v2613_v43 = vadd.f32 %v7426_v41, %v2444_v16  ;;  %v8485_v26 = vld [vmem:[#allocation192_spill] sm:$0xff]  ;;  %v1424_v41 = vld [vmem:[%s7914_s1 + $0x178] sm:$0xff]  ;;  %3553 = vmatpush.msra.mxu2 %v3404_v60 }
 0x676   :  { %v2622_v5 = vpop.f32.mrf.mxu0  ;;  %v1947_v37 = vadd.f32 %v8477_v8, %v1422_v22  ;;  %v8486_v49 = vld [vmem:[#allocation194_spill] sm:$0xff] }
 0x677   :  { %v3122_v47 = vpop.f32.mrf.mxu3  ;;  %v1952_v14 = vadd.f32 %v8486_v49, %v1424_v41  ;;  %v8489_v8 = vld [vmem:[#allocation2_spill] sm:$0xff] }
 0x678   :  { %v7486_v34 = vadd.f32 %v3122_v47, %v2954_v50  ;;  %v2116_v19 = vadd.f32 %v8480_v40, %v1947_v37 }
 0x679   :  { %v2786_v61 = vpop.f32.mrf.mxu1 }
 0x67a   :  { %v2787_v28 = vadd.f32 %v2786_v61, %v2618_v59  ;;  %v2285_v31 = vadd.f32 %v8484_v17, %v2116_v19  ;;  %v8488_v61 = vld [vmem:[#allocation204_spill] sm:$0xff]  ;;  %v1426_v17 = vld [vmem:[%s7914_s1 + $0x188] sm:$0xff]  ;;  %v3284_v51 = vsel %vm927_vm3, %v7486_v34, -inf }
 0x67c   :  { %v2955_v23 = vpop.f32.mrf.mxu2  ;;  %v2454_v6 = vadd.f32 %v8485_v26, %v2285_v31  ;;  %v8494_v26 = vld [vmem:[#allocation200_spill] sm:$0xff] }
 0x67d   :  { %v2956_v7 = vadd.f32 %v2955_v23, %v2787_v28 }
 0x67e   :  { %v2625_v63 = vpop.f32.mrf.mxu0  ;;  %v2623_v20 = vadd.f32 %v2622_v5, %v2454_v6  ;;  %v2121_v5 = vadd.f32 %v8487_v13, %v1952_v14  ;;  %v1957_v6 = vadd.f32 %v8494_v26, %v1426_v17  ;;  %v3371_v26 = vld [vmem:[%s7915_s5 + $0x10] sm:$0xff] }
 0x67f   :  { %v2626_v44 = vadd.f32 %v2625_v63, %v8481_v15  ;;  %v3124_v25 = vpop.f32.mrf.mxu3  ;;  %v8493_v63 = vld [vmem:[#allocation201_spill] sm:$0xff] }
 0x680   :  { %v7501_v35 = vadd.f32 %v3124_v25, %v2956_v7 }
 0x681   :  { %2664 = vmatmul.bf16.gmra.mxu0 %v8482_v0  ;;  %v2789_v30 = vpop.f32.mrf.mxu1  ;;  %2997 = vmatmul.bf16.gmra.mxu2 %v6854_v48  ;;  %v2782_v48 = vadd.f32 %v7455_v36, %v2613_v43 }
 0x682   :  { %v2790_v10 = vadd.f32 %v2789_v30, %v2621_v18  ;;  %v3420_v30 = vld [vmem:[%s7915_s5 + $0x198] sm:$0xff] }
 0x683   :  { %3573 = vmatpush.msra.mxu3 %v3420_v30 }
 0x684   :  { %2828 = vmatmul.bf16.gmra.mxu1 %v6862_v56  ;;  %v2958_v57 = vpop.f32.mrf.mxu2  ;;  %3166 = vmatmul.bf16.gmra.mxu3 %v6865_v45  ;;  %v3282_v56 = vsel %vm927_vm3, %v3118_v46, -inf  ;;  %v2951_v45 = vadd.f32 %v7458_v2, %v2782_v48  ;;  %v8490_v2 = vld [vmem:[#allocation199_spill] sm:$0xff] }
 0x685   :  { %v2959_v11 = vadd.f32 %v2958_v57, %v2790_v10  ;;  %v2290_v37 = vadd.f32 %v8490_v2, %v2121_v5  ;;  %v3388_v57 = vld [vmem:[%s7915_s5 + $0x98] sm:$0xff]  ;;  %v8498_v5 = vld [vmem:[#allocation207_spill] sm:$0xff] }
 0x686   :  { %v2627_v50 = vpop.f32.mrf.mxu0  ;;  %v3120_v59 = vadd.f32 %v7462_v52, %v2951_v45  ;;  %v8492_v52 = vld [vmem:[#allocation5_spill] sm:$0xff]  ;;  %3533 = vmatpush.msra.mxu1 %v3388_v57  ;;  %v8497_v45 = vld [vmem:[#allocation206_spill] sm:$0xff] }
 0x687   :  { %v3127_v54 = vpop.f32.mrf.mxu3  ;;  %v2459_v15 = vadd.f32 %v8493_v63, %v2290_v37 }
 0x688   :  { %v3128_v38 = vadd.f32 %v3127_v54, %v2959_v11  ;;  %v3283_v33 = vsel %vm927_vm3, %v3120_v59, -inf }
 0x689   :  { %v2791_v39 = vpop.f32.mrf.mxu1  ;;  %v2628_v42 = vadd.f32 %v2627_v50, %v2459_v15  ;;  %v8495_v50 = vld [vmem:[#allocation205_spill] sm:$0xff] }
 0x68a   :  { %v3286_v18 = vsel %vm927_vm3, %v3128_v38, -inf  ;;  %v2792_v47 = vadd.f32 %v2791_v39, %v2623_v20  ;;  %v2126_v54 = vadd.f32 %v8495_v50, %v1957_v6  ;;  %v8496_v38 = vld [vmem:[#allocation209_spill] sm:$0xff]  ;;  %v3419_v6 = vld [vmem:[%s7915_s5 + $0x190] sm:$0xff] }
 0x68b   :  { %v3287_v9 = vmax.f32 %v3282_v56, %v3286_v18  ;;  %3574 = vmatpush.msra.mxu3 %v3419_v6 }
 0x68c   :  { %v2960_v36 = vpop.f32.mrf.mxu2  ;;  %v2295_v18 = vadd.f32 %v8497_v45, %v2126_v54 }
 0x68d   :  { %v2961_v53 = vadd.f32 %v2960_v36, %v2792_v47  ;;  %v3285_v47 = vsel %vm927_vm3, %v7501_v35, -inf }
 0x68e   :  { %v2630_v22 = vpop.f32.mrf.mxu0  ;;  %v2464_v59 = vadd.f32 %v8498_v5, %v2295_v18 }
 0x68f   :  { %v2631_v21 = vadd.f32 %v2630_v22, %v8488_v61  ;;  %v3129_v12 = vpop.f32.mrf.mxu3 }
 0x690   :  { %v3130_v28 = vadd.f32 %v3129_v12, %v2961_v53 }
 0x691   :  { %v2794_v1 = vpop.f32.mrf.mxu1  ;;  %3002 = vmatmul.bf16.gmra.mxu2 %v8489_v8  ;;  %v1428_v8 = vld [vmem:[%s7914_s1 + $0x198] sm:$0xff] }
 0x692   :  { %v3288_v55 = vsel %vm927_vm3, %v3130_v28, -inf  ;;  %v2795_v23 = vadd.f32 %v2794_v1, %v2626_v44  ;;  %v3372_v44 = vld [vmem:[%s7915_s5 + $0x18] sm:$0xff] }
 0x693   :  { %v3289_v7 = vmax.f32 %v3283_v33, %v3288_v55  ;;  %3513 = vmatpush.msra.mxu0 %v3372_v44  ;;  %v8501_v44 = vld [vmem:[#allocation211_spill] sm:$0xff] }
 0x694   :  { %2833 = vmatmul.bf16.gmra.mxu1 %v8491_v62  ;;  %v2963_v58 = vpop.f32.mrf.mxu2  ;;  %3171 = vmatmul.bf16.gmra.mxu3 %v8492_v52 }
 0x695   :  { %v3294_v40 = vmax.f32 %v3287_v9, %v3289_v7  ;;  %v2964_v19 = vadd.f32 %v2963_v58, %v2795_v23  ;;  %v8500_v58 = vld [vmem:[#allocation210_spill] sm:$0xff]  ;;  %3514 = vmatpush.msra.mxu0 %v3371_v26 }
 0x696   :  { %v2632_v25 = vpop.f32.mrf.mxu0 }
 0x697   :  { %v3132_v0 = vpop.f32.mrf.mxu3  ;;  %v2633_v28 = vadd.f32 %v2632_v25, %v2464_v59 }
 0x698   :  { %v3133_v16 = vadd.f32 %v3132_v0, %v2964_v19 }
 0x699   :  { %v2796_v31 = vpop.f32.mrf.mxu1 }
 0x69a   :  { %v3290_v10 = vsel %vm927_vm3, %v3133_v16, -inf  ;;  %v2797_v43 = vadd.f32 %v2796_v31, %v2628_v42 }
 0x69b   :  { %v3291_v11 = vmax.f32 %v3284_v51, %v3290_v10  ;;  %v3403_v51 = vld [vmem:[%s7915_s5 + $0x110] sm:$0xff] }
 0x69c   :  { %v2965_v46 = vpop.f32.mrf.mxu2  ;;  %3554 = vmatpush.msra.mxu2 %v3403_v51 }
 0x69d   :  { %v2966_v48 = vadd.f32 %v2965_v46, %v2797_v43  ;;  %v8502_v43 = vld [vmem:[#allocation212_spill] sm:$0xff] }
 0x69e   :  { %v2635_v20 = vpop.f32.mrf.mxu0 }
 0x69f   :  { %v2636_v41 = vadd.f32 %v2635_v20, %v8496_v38  ;;  %v3134_v39 = vpop.f32.mrf.mxu3  ;;  %v3387_v20 = vld [vmem:[%s7915_s5 + $0x90] sm:$0xff] }
 0x6a0   :  { %v3135_v34 = vadd.f32 %v3134_v39, %v2966_v48  ;;  %3534 = vmatpush.msra.mxu1 %v3387_v20 }
 0x6a1   :  { %v2799_v56 = vpop.f32.mrf.mxu1 }
 0x6a2   :  { %v3292_v9 = vsel %vm927_vm3, %v3135_v34, -inf  ;;  %v2800_v49 = vadd.f32 %v2799_v56, %v2631_v21  ;;  %v8499_v21 = vld [vmem:[#allocation208_spill] sm:$0xff] }
 0x6a3   :  { %v3293_v14 = vmax.f32 %v3285_v47, %v3292_v9  ;;  %v1962_v55 = vadd.f32 %v8499_v21, %v1428_v8  ;;  %v8505_v21 = vld [vmem:[#allocation6_spill] sm:$0xff] }
 0x6a4   :  { %v2968_v36 = vpop.f32.mrf.mxu2 }
 0x6a5   :  { %v3295_v53 = vmax.f32 %v3291_v11, %v3293_v14  ;;  %v2969_v13 = vadd.f32 %v2968_v36, %v2800_v49  ;;  %v2131_v52 = vadd.f32 %v8500_v58, %v1962_v55 }
 0x6a6   :  { %v2637_v22 = vpop.f32.mrf.mxu0 }
 0x6a7   :  { %v3296_v61 = vmax.f32 %v3294_v40, %v3295_v53  ;;  %v3137_v12 = vpop.f32.mrf.mxu3  ;;  %v2300_v30 = vadd.f32 %v8501_v44, %v2131_v52  ;;  %v8506_v52 = vld [vmem:[#allocation7_spill] sm:$0xff] }
 0x6a8   :  { %v3138_v1 = vadd.f32 %v3137_v12, %v2969_v13  ;;  %v8503_v13 = vld [vmem:[#allocation213_spill] sm:$0xff] }
 0x6a9   :  { %v3297_v2 = vrot.slane %v3296_v61, 4  ;;  %v2801_v35 = vpop.f32.mrf.mxu1 }
 0x6aa   :  { %v2802_v37 = vadd.f32 %v2801_v35, %v2633_v28 }
 0x6ab   :  { %v3298_v33 = vmax.f32 %v3296_v61, %v3297_v2  ;;  %v8504_v2 = vld [vmem:[#allocation214_spill] sm:$0xff] }
 0x6ac   :  { %v2970_v23 = vpop.f32.mrf.mxu2 }
 0x6ad   :  { %v3299_v7 = vrot.slane %v3298_v33, 2  ;;  %v2971_v62 = vadd.f32 %v2970_v23, %v2802_v37 }
 0x6ae   :  { %v2640_v19 = vpop.f32.mrf.mxu0 }
 0x6af   :  { %v3300_v40 = vmax.f32 %v3298_v33, %v3299_v7  ;;  %v2641_v60 = vadd.f32 %v2640_v19, %v6849_v29  ;;  %v3139_v63 = vpop.f32.mrf.mxu3  ;;  %v2469_v29 = vadd.f32 %v8502_v43, %v2300_v30  ;;  %v3402_v30 = vld [vmem:[%s7915_s5 + $0x108] sm:$0xff] }
 0x6b0   :  { %v3140_v15 = vadd.f32 %v3139_v63, %v2971_v62  ;;  %3555 = vmatpush.msra.mxu2 %v3402_v30 }
 0x6b1   :  { %v3301_v25 = vrot.slane %v3300_v40, 1  ;;  %v2804_v0 = vpop.f32.mrf.mxu1  ;;  %v2638_v46 = vadd.f32 %v2637_v22, %v2469_v29 }
 0x6b2   :  { %v2805_v42 = vadd.f32 %v2804_v0, %v2636_v41 }
 0x6b3   :  { %v3302_v16 = vmax.f32 %v3300_v40, %v3301_v25  ;;  %v3304_v40 = vsel %vm927_vm3, %v3140_v15, -inf  ;;  %v3418_v15 = vld [vmem:[%s7915_s5 + $0x188] sm:$0xff] }
 0x6b4   :  { %v2973_v17 = vpop.f32.mrf.mxu2  ;;  %3575 = vmatpush.msra.mxu3 %v3418_v15 }
 0x6b5   :  { %v2974_v31 = vadd.f32 %v2973_v17, %v2805_v42  ;;  %v7568_v10 = vsel %vm3353_vm9, %v7476_v3, %v3302_v16  ;;  %v1430_v3 = vld [vmem:[%s7914_s1 + $0x1a8] sm:$0xff] }
 0x6b6   :  { %v2642_v57 = vpop.f32.mrf.mxu0  ;;  %v1967_v38 = vadd.f32 %v6847_v27, %v1430_v3  ;;  %v8507_v42 = vld [vmem:[#allocation215_spill] sm:$0xff] }
 0x6b7   :  { %v3142_v11 = vpop.f32.mrf.mxu3 }
 0x6b8   :  { %v3143_v48 = vadd.f32 %v3142_v11, %v2974_v31  ;;  %v2136_v34 = vadd.f32 %v6851_v24, %v1967_v38  ;;  %v1432_v24 = vld [vmem:[%s7914_s1 + $0x1b8] sm:$0xff]  ;;  %v3370_v31 = vld [vmem:[%s7915_s5 + $0x8] sm:$0xff] }
 0x6b9   :  { %v2806_v50 = vpop.f32.mrf.mxu1  ;;  %v1972_v35 = vadd.f32 %v8504_v2, %v1432_v24  ;;  %3515 = vmatpush.msra.mxu0 %v3370_v31 }
 0x6ba   :  { %v2807_v54 = vadd.f32 %v2806_v50, %v2638_v46  ;;  %v2305_v49 = vadd.f32 %v6867_v32, %v2136_v34  ;;  %v3305_v11 = vsel %vm927_vm3, %v3143_v48, -inf  ;;  %v3386_v46 = vld [vmem:[%s7915_s5 + $0x88] sm:$0xff] }
 0x6bb   :  { %v2141_v55 = vadd.f32 %v8505_v21, %v1972_v35  ;;  %3535 = vmatpush.msra.mxu1 %v3386_v46  ;;  %v3496_v46 = vld [vmem:[%s7915_s5 + $0x3f8] sm:$0xff] }
 0x6bc   :  { %v2975_v41 = vpop.f32.mrf.mxu2  ;;  %v2474_v5 = vadd.f32 %v8503_v13, %v2305_v49 }
 0x6bd   :  { %v2976_v39 = vadd.f32 %v2975_v41, %v2807_v54  ;;  %v2310_v19 = vadd.f32 %v8506_v52, %v2141_v55  ;;  %v8510_v52 = vld [vmem:[#allocation9_spill] sm:$0xff] }
 0x6be   :  { %v2645_v56 = vpop.f32.mrf.mxu0  ;;  %v2643_v22 = vadd.f32 %v2642_v57, %v2474_v5 }
 0x6bf   :  { %v2646_v45 = vadd.f32 %v2645_v56, %v6876_v4  ;;  %v3144_v18 = vpop.f32.mrf.mxu3  ;;  %v3303_v4 = vsel %vm927_vm3, %v3138_v1, -inf  ;;  %v2479_v16 = vadd.f32 %v8507_v42, %v2310_v19 }
 0x6c0   :  { %v3145_v47 = vadd.f32 %v3144_v18, %v2976_v39 }
 0x6c1   :  { %v2809_v9 = vpop.f32.mrf.mxu1 }
 0x6c2   :  { %v2810_v14 = vadd.f32 %v2809_v9, %v2641_v60  ;;  %v3306_v39 = vsel %vm927_vm3, %v3145_v47, -inf }
 0x6c4   :  { %v2978_v36 = vpop.f32.mrf.mxu2 }
 0x6c5   :  { %v2979_v53 = vadd.f32 %v2978_v36, %v2810_v14 }
 0x6c6   :  { %v2647_v59 = vpop.f32.mrf.mxu0 }
 0x6c7   :  { %v3147_v27 = vpop.f32.mrf.mxu3  ;;  %v2648_v51 = vadd.f32 %v2647_v59, %v2479_v16  ;;  %v8513_v16 = vld [vmem:[#allocation12_spill] sm:$0xff] }
 0x6c8   :  { %v3148_v61 = vadd.f32 %v3147_v27, %v2979_v53 }
 0x6c9   :  { %v2811_v12 = vpop.f32.mrf.mxu1 }
 0x6ca   :  { %v3307_v28 = vsel %vm927_vm3, %v3148_v61, -inf  ;;  %v2812_v8 = vadd.f32 %v2811_v12, %v2643_v22  ;;  %v1434_v12 = vld [vmem:[%s7914_s1 + $0x1c8] sm:$0xff] }
 0x6cb   :  { %v3308_v32 = vmax.f32 %v3303_v4, %v3307_v28  ;;  %v3401_v28 = vld [vmem:[%s7915_s5 + $0x100] sm:$0xff] }
 0x6cc   :  { %v2980_v37 = vpop.f32.mrf.mxu2  ;;  %3556 = vmatpush.msra.mxu2 %v3401_v28  ;;  %v3462_v28 = vld [vmem:[%s7915_s5 + $0x2e8] sm:$0xff] }
 0x6cd   :  { %v2981_v33 = vadd.f32 %v2980_v37, %v2812_v8  ;;  %v3369_v8 = vld [vmem:[%s7915_s5] sm:$0xff] }
 0x6ce   :  { %v7595_v23 = vpop.f32.mrf.mxu0  ;;  %3516 = vmatpush.msra.mxu0 %v3369_v8  ;;  %v3476_v8 = vld [vmem:[%s7915_s5 + $0x358] sm:$0xff] }
 0x6cf   :  { %v3149_v7 = vpop.f32.mrf.mxu3 }
 0x6d0   :  { %v3150_v62 = vadd.f32 %v3149_v7, %v2981_v33  ;;  %v8508_v33 = vld [vmem:[#allocation8_spill] sm:$0xff]  ;;  %v8509_v7 = vld [vmem:[#allocation10_spill] sm:$0xff] }
 0x6d1   :  { %v2814_v58 = vpop.f32.mrf.mxu1  ;;  %v1977_v21 = vadd.f32 %v8508_v33, %v1434_v12  ;;  %v3445_v12 = vld [vmem:[%s7915_s5 + $0x260] sm:$0xff] }
 0x6d2   :  { %v3309_v1 = vsel %vm927_vm3, %v3150_v62, -inf  ;;  %v2815_v60 = vadd.f32 %v2814_v58, %v2646_v45  ;;  %v3385_v58 = vld [vmem:[%s7915_s5 + $0x80] sm:$0xff] }
 0x6d3   :  { %v3310_v63 = vmax.f32 %v3304_v40, %v3309_v1  ;;  %v2146_v62 = vadd.f32 %v8509_v7, %v1977_v21  ;;  %3536 = vmatpush.msra.mxu1 %v3385_v58  ;;  %v3480_v40 = vld [vmem:[%s7915_s5 + $0x378] sm:$0xff]  ;;  %v8511_v1 = vld [vmem:[#allocation11_spill] sm:$0xff]  ;;  %v3461_v7 = vld [vmem:[%s7915_s5 + $0x2e0] sm:$0xff] }
 0x6d4   :  { %v2983_v25 = vpop.f32.mrf.mxu2  ;;  %3621 = vmatpush.msrb.mxu2 %v3480_v40  ;;  %v3444_v21 = vld [vmem:[%s7915_s5 + $0x258] sm:$0xff]  ;;  %v3443_v40 = vld [vmem:[%s7915_s5 + $0x250] sm:$0xff] }
 0x6d5   :  { %v3315_v0 = vmax.f32 %v3308_v32, %v3310_v63  ;;  %v2984_v44 = vadd.f32 %v2983_v25, %v2815_v60  ;;  %v3417_v32 = vld [vmem:[%s7915_s5 + $0x180] sm:$0xff]  ;;  %v2315_v60 = vadd.f32 %v8511_v1, %v2146_v62  ;;  %v3475_v62 = vld [vmem:[%s7915_s5 + $0x350] sm:$0xff]  ;;  %v3460_v1 = vld [vmem:[%s7915_s5 + $0x2d8] sm:$0xff] }
 0x6d6   :  { %v2652_v29 = vpop.f32.mrf.mxu0  ;;  %3576 = vmatpush.msra.mxu3 %v3417_v32 }
 0x6d7   :  { %v3152_v17 = vpop.f32.mrf.mxu3 }
 0x6d8   :  { %v3153_v43 = vadd.f32 %v3152_v17, %v2984_v44  ;;  %v2484_v17 = vadd.f32 %v8513_v16, %v2315_v60  ;;  %3641 = vmatpush.msrb.mxu3 %v3496_v46  ;;  %v3474_v60 = vld [vmem:[%s7915_s5 + $0x348] sm:$0xff] }
 0x6d9   :  { %v2816_v57 = vpop.f32.mrf.mxu1 }
 0x6da   :  { %v3311_v26 = vsel %vm927_vm3, %v3153_v43, -inf  ;;  %v2817_v6 = vadd.f32 %v2816_v57, %v2648_v51  ;;  %v2653_v15 = vadd.f32 %v2652_v29, %v2484_v17  ;;  %v8514_v29 = vld [vmem:[#allocation21_spill] sm:$0xff] }
 0x6db   :  { %v3312_v3 = vmax.f32 %v3305_v11, %v3311_v26  ;;  %v3448_v26 = vld [vmem:[%s7915_s5 + $0x278] sm:$0xff] }
 0x6dc   :  { %v2985_v50 = vpop.f32.mrf.mxu2  ;;  %3581 = vmatpush.msrb.mxu0 %v3448_v26  ;;  %v8517_v26 = vld [vmem:[#allocation15_spill] sm:$0xff] }
 0x6dd   :  { %v2986_v54 = vadd.f32 %v2985_v50, %v2817_v6  ;;  %v3479_v6 = vld [vmem:[%s7915_s5 + $0x370] sm:$0xff] }
 0x6de   :  { %v7617_v56 = vpop.f32.mrf.mxu0  ;;  %3622 = vmatpush.msrb.mxu2 %v3479_v6 }
 0x6df   :  { %v3154_v20 = vpop.f32.mrf.mxu3 }
 0x6e0   :  { %v3155_v38 = vadd.f32 %v3154_v20, %v2986_v54  ;;  %v3447_v20 = vld [vmem:[%s7915_s5 + $0x270] sm:$0xff] }
 0x6e1   :  { %v2819_v41 = vpop.f32.mrf.mxu1  ;;  %3582 = vmatpush.msrb.mxu0 %v3447_v20 }
 0x6e2   :  { %v3313_v34 = vsel %vm927_vm3, %v3155_v38, -inf  ;;  %v3464_v38 = vld [vmem:[%s7915_s5 + $0x2f8] sm:$0xff] }
 0x6e3   :  { %v3314_v48 = vmax.f32 %v3306_v39, %v3313_v34  ;;  %3601 = vmatpush.msrb.mxu1 %v3464_v38  ;;  %v3495_v34 = vld [vmem:[%s7915_s5 + $0x3f0] sm:$0xff]  ;;  %v3488_v38 = vld [vmem:[%s7915_s5 + $0x3b8] sm:$0xff] }
 0x6e4   :  { %v2988_v45 = vpop.f32.mrf.mxu2  ;;  %3642 = vmatpush.msrb.mxu3 %v3495_v34  ;;  %v3439_v34 = vld [vmem:[%s7915_s5 + $0x230] sm:$0xff] }
 0x6e5   :  { %v3316_v18 = vmax.f32 %v3312_v3, %v3314_v48 }
 0x6e6   :  { %v7619_v59 = vpop.f32.mrf.mxu0 }
 0x6e7   :  { %v3317_v9 = vmax.f32 %v3315_v0, %v3316_v18  ;;  %v3157_v49 = vpop.f32.mrf.mxu3  ;;  %v8512_v0 = vld [vmem:[#allocation17_spill] sm:$0xff]  ;;  %v2658_v6 = vadd.f32 %v7619_v59, %v8517_v26  ;;  %v3471_v59 = vld [vmem:[%s7915_s5 + $0x330] sm:$0xff]  ;;  %v3449_v26 = vld [vmem:[%s7915_s5 + $0x280] sm:$0xff] }
 0x6e9   :  { %v3318_v14 = vrot.slane %v3317_v9, 4  ;;  %v2821_v36 = vpop.f32.mrf.mxu1 }
 0x6ea   :  { %v2822_v11 = vadd.f32 %v2821_v36, %v2653_v15  ;;  %v3477_v36 = vld [vmem:[%s7915_s5 + $0x360] sm:$0xff]  ;;  %v3490_v15 = vld [vmem:[%s7915_s5 + $0x3c8] sm:$0xff] }
 0x6eb   :  { %v3319_v53 = vmax.f32 %v3317_v9, %v3318_v14  ;;  %v3463_v14 = vld [vmem:[%s7915_s5 + $0x2f0] sm:$0xff] }
 0x6ec   :  { %v2990_v13 = vpop.f32.mrf.mxu2  ;;  %3602 = vmatpush.msrb.mxu1 %v3463_v14  ;;  %v3438_v14 = vld [vmem:[%s7915_s5 + $0x228] sm:$0xff] }
 0x6ed   :  { %v3320_v5 = vrot.slane %v3319_v53, 2 }
 0x6ee   :  { %v2660_v35 = vpop.f32.mrf.mxu0  ;;  %3603 = vmatpush.msrb.mxu1 %v3462_v28  ;;  %v3360_v28 = vld [vmem:[%s7917_s3] sm:$0xff] }
 0x6ef   :  { %v3321_v27 = vmax.f32 %v3319_v53, %v3320_v5  ;;  %v7621_v22 = vpop.f32.mrf.mxu3  ;;  %v2661_v44 = vadd.f32 %v2660_v35, %v8512_v0  ;;  %v3494_v5 = vld [vmem:[%s7915_s5 + $0x3e8] sm:$0xff]  ;;  %v3491_v0 = vld [vmem:[%s7915_s5 + $0x3d0] sm:$0xff]  ;;  %3557 = vmatmul.f32.vlgmr.msra.gmra.mxu2 %v3360_v28 }
 0x6f0   :  { %3643 = vmatpush.msrb.mxu3 %v3494_v5  ;;  %3604 = vmatpush.msrb.mxu1 %v3461_v7  ;;  %v3486_v5 = vld [vmem:[%s7915_s5 + $0x3a8] sm:$0xff] }
 0x6f1   :  { %v3322_v47 = vrot.slane %v3321_v27, 1  ;;  %v7623_v61 = vpop.f32.mrf.mxu1 }
 0x6f2   :  { %3605 = vmatpush.msrb.mxu1 %v3460_v1 }
 0x6f3   :  { %v3323_v24 = vmax.f32 %v3321_v27, %v3322_v47  ;;  %v8515_v27 = vld [vmem:[#allocation14_spill] sm:$0xff] }
 0x6f4   :  { %v7628_v4 = vpop.f32.mrf.mxu2  ;;  %v2656_v47 = vadd.f32 %v7617_v56, %v8515_v27  ;;  %v3493_v56 = vld [vmem:[%s7915_s5 + $0x3e0] sm:$0xff] }
 0x6f5   :  { %v7640_v2 = vsel %vm3355_vm10, %v7568_v10, %v3323_v24  ;;  %v2651_v10 = vadd.f32 %v7595_v23, %v8510_v52  ;;  %3644 = vmatpush.msrb.mxu3 %v3493_v56  ;;  %v3468_v56 = vld [vmem:[%s7915_s5 + $0x318] sm:$0xff] }
 0x6f6   :  { %v2662_v30 = vpop.f32.mrf.mxu0  ;;  %v2825_v33 = vadd.f32 %v7623_v61, %v2656_v47  ;;  %v8516_v61 = vld [vmem:[#allocation22_spill] sm:$0xff] }
 0x6f7   :  { %v7642_v37 = vpop.f32.mrf.mxu3  ;;  %v2820_v63 = vadd.f32 %v2819_v41, %v2651_v10  ;;  %v2663_v50 = vadd.f32 %v2662_v30, %v8514_v29  ;;  %v3478_v41 = vld [vmem:[%s7915_s5 + $0x368] sm:$0xff]  ;;  %v3459_v30 = vld [vmem:[%s7915_s5 + $0x2d0] sm:$0xff]  ;;  %v3457_v29 = vld [vmem:[%s7915_s5 + $0x2c0] sm:$0xff] }
 0x6f8   :  { %3623 = vmatpush.msrb.mxu2 %v3478_v41  ;;  %v2994_v16 = vadd.f32 %v7628_v4, %v2825_v33  ;;  %3606 = vmatpush.msrb.mxu1 %v3459_v30  ;;  %v3458_v4 = vld [vmem:[%s7915_s5 + $0x2c8] sm:$0xff]  ;;  %v3485_v33 = vld [vmem:[%s7915_s5 + $0x3a0] sm:$0xff] }
 0x6f9   :  { %v7645_v55 = vpop.f32.mrf.mxu1  ;;  %v2989_v23 = vadd.f32 %v2988_v45, %v2820_v63  ;;  %v2991_v45 = vadd.f32 %v2990_v13, %v2822_v11  ;;  %v3489_v11 = vld [vmem:[%s7915_s5 + $0x3c0] sm:$0xff] }
 0x6fa   :  { %3624 = vmatpush.msrb.mxu2 %v3477_v36  ;;  %3607 = vmatpush.msrb.mxu1 %v3458_v4  ;;  %v3163_v41 = vadd.f32 %v7642_v37, %v2994_v16  ;;  %v3487_v37 = vld [vmem:[%s7915_s5 + $0x3b0] sm:$0xff] }
 0x6fb   :  { %v3158_v57 = vadd.f32 %v3157_v49, %v2989_v23  ;;  %v3446_v49 = vld [vmem:[%s7915_s5 + $0x268] sm:$0xff]  ;;  %v3160_v35 = vadd.f32 %v7621_v22, %v2991_v45  ;;  %v3492_v22 = vld [vmem:[%s7915_s5 + $0x3d8] sm:$0xff]  ;;  %v3455_v36 = vld [vmem:[%s7915_s5 + $0x2b0] sm:$0xff] }
 0x6fc   :  { %v7653_v19 = vpop.f32.mrf.mxu2  ;;  %3583 = vmatpush.msrb.mxu0 %v3446_v49  ;;  %3625 = vmatpush.msrb.mxu2 %v3476_v8  ;;  %v3326_v27 = vsel %vm927_vm3, %v3163_v41, -inf  ;;  %v3437_v8 = vld [vmem:[%s7915_s5 + $0x220] sm:$0xff]  ;;  %v3451_v16 = vld [vmem:[%s7915_s5 + $0x290] sm:$0xff] }
 0x6fd   :  { %v7686_v48 = vsel %vm927_vm3, %v3158_v57, -inf  ;;  %3645 = vmatpush.msrb.mxu3 %v3492_v22  ;;  %v3472_v57 = vld [vmem:[%s7915_s5 + $0x338] sm:$0xff]  ;;  %3608 = vmatpush.msrb.mxu1 %v3457_v29 }
 0x6fe   :  { %v2665_v53 = vpop.f32.mrf.mxu0  ;;  %3584 = vmatpush.msrb.mxu0 %v3445_v12  ;;  %3626 = vmatpush.msrb.mxu2 %v3475_v62  ;;  %v3361_v62 = vld [vmem:[%s7917_s3 + $0x8] sm:$0xff] }
 0x6ff   :  { %v7659_v25 = vpop.f32.mrf.mxu3  ;;  %v2666_v52 = vadd.f32 %v2665_v53, %v8516_v61  ;;  %3646 = vmatpush.msrb.mxu3 %v3491_v0  ;;  %v3467_v61 = vld [vmem:[%s7915_s5 + $0x310] sm:$0xff] }
 0x700   :  { %3585 = vmatpush.msrb.mxu0 %v3444_v21  ;;  %3627 = vmatpush.msrb.mxu2 %v3474_v60  ;;  %v3436_v21 = vld [vmem:[%s7915_s5 + $0x218] sm:$0xff]  ;;  %v3483_v0 = vld [vmem:[%s7915_s5 + $0x390] sm:$0xff] }
 0x701   :  { %v2829_v42 = vpop.f32.mrf.mxu1  ;;  %3647 = vmatpush.msrb.mxu3 %v3490_v15  ;;  %v3452_v60 = vld [vmem:[%s7915_s5 + $0x298] sm:$0xff]  ;;  %v3364_v15 = vld [vmem:[%s7917_s3 + $0x20] sm:$0xff] }
 0x702   :  { %v2830_v31 = vadd.f32 %v2829_v42, %v2661_v44  ;;  %3586 = vmatpush.msrb.mxu0 %v3443_v40  ;;  %v3442_v44 = vld [vmem:[%s7915_s5 + $0x248] sm:$0xff]  ;;  %v3325_v42 = vsel %vm927_vm3, %v3160_v35, -inf  ;;  %v3359_v40 = vld [vmem:[%s7918_s2] sm:$0xff]  ;;  %3577 = vmatmul.f32.vlgmr.msra.gmra.mxu3 %v3361_v62 }
 0x703   :  { %3648 = vmatpush.msrb.mxu3 %v3489_v11  ;;  %3926 = vmatmul.msk.f32.vlgmr.msra.gmra.mxu1 %vm3367_vm11, %v3359_v40  ;;  %v3365_v11 = vld [vmem:[%s7917_s3 + $0x28] sm:$0xff] }
 0x704   :  { %v2998_v51 = vpop.f32.mrf.mxu2  ;;  %3587 = vmatpush.msrb.mxu0 %v3442_v44  ;;  %v3434_v44 = vld [vmem:[%s7915_s5 + $0x208] sm:$0xff] }
 0x705   :  { %v2999_v43 = vadd.f32 %v2998_v51, %v2830_v31  ;;  %v3473_v31 = vld [vmem:[%s7915_s5 + $0x340] sm:$0xff]  ;;  %3649 = vmatpush.msrb.mxu3 %v3488_v38 }
 0x706   :  { %v3441_v51 = vld [vmem:[%s7915_s5 + $0x240] sm:$0xff]  ;;  %3628 = vmatpush.msrb.mxu2 %v3473_v31  ;;  %v3482_v31 = vld [vmem:[%s7915_s5 + $0x388] sm:$0xff] }
 0x707   :  { %v3167_v3 = vpop.f32.mrf.mxu3  ;;  %3588 = vmatpush.msrb.mxu0 %v3441_v51  ;;  %3650 = vmatpush.msrb.mxu3 %v3487_v37  ;;  %v3433_v51 = vld [vmem:[%s7915_s5 + $0x200] sm:$0xff] }
 0x708   :  { %v3168_v54 = vadd.f32 %v3167_v3, %v2999_v43  ;;  %v3440_v3 = vld [vmem:[%s7915_s5 + $0x238] sm:$0xff]  ;;  %3629 = vmatpush.msrb.mxu2 %v3472_v57  ;;  %v3481_v57 = vld [vmem:[%s7915_s5 + $0x380] sm:$0xff] }
 0x709   :  { %v2831_v39 = vpop.f32.mrf.mxu1  ;;  %3589 = vmatpush.msrb.mxu0 %v3440_v3  ;;  %3651 = vmatpush.msrb.mxu3 %v3486_v5 }
 0x70a   :  { %v7689_v18 = vsel %vm927_vm3, %v3168_v54, -inf  ;;  %v2832_v9 = vadd.f32 %v2831_v39, %v2663_v50  ;;  %v2667_v50 = vpop.f32.mrf.mxu0  ;;  %v2827_v39 = vadd.f32 %v7645_v55, %v2658_v6  ;;  %v8518_v55 = vld [vmem:[#allocation23_spill] sm:$0xff]  ;;  %3630 = vmatpush.msrb.mxu2 %v3471_v59 }
 0x70b   :  { %v3329_v13 = vmax.f32 %v7686_v48, %v7689_v18  ;;  %v3456_v48 = vld [vmem:[%s7915_s5 + $0x2b8] sm:$0xff]  ;;  %v3470_v18 = vld [vmem:[%s7915_s5 + $0x328] sm:$0xff]  ;;  %3590 = vmatpush.msrb.mxu0 %v3439_v34  ;;  %3652 = vmatpush.msrb.mxu3 %v3485_v33 }
 0x70c   :  { %v3000_v24 = vpop.f32.mrf.mxu2  ;;  %3609 = vmatpush.msrb.mxu1 %v3456_v48  ;;  %v2996_v47 = vadd.f32 %v7653_v19, %v2827_v39  ;;  %3631 = vmatpush.msrb.mxu2 %v3470_v18  ;;  %v3454_v19 = vld [vmem:[%s7915_s5 + $0x2a8] sm:$0xff]  ;;  %v4308_v39 = vld [vmem:[%s7916_s6] ss:$0 sm:$0xff] }
 0x70d   :  { %v3001_v32 = vadd.f32 %v3000_v24, %v2832_v9  ;;  %v2668_v9 = vadd.f32 %v2667_v50, %v8518_v55  ;;  %3591 = vmatpush.msrb.mxu0 %v3438_v14 }
 0x70e   :  { %3610 = vmatpush.msrb.mxu1 %v3455_v36  ;;  %v3165_v22 = vadd.f32 %v7659_v25, %v2996_v47  ;;  %v3435_v25 = vld [vmem:[%s7915_s5 + $0x210] sm:$0xff] }
 0x70f   :  { %v3169_v58 = vpop.f32.mrf.mxu3  ;;  %3592 = vmatpush.msrb.mxu0 %v3437_v8 }
 0x710   :  { %v3170_v10 = vadd.f32 %v3169_v58, %v3001_v32  ;;  %v3453_v58 = vld [vmem:[%s7915_s5 + $0x2a0] sm:$0xff]  ;;  %3611 = vmatpush.msrb.mxu1 %v3454_v19  ;;  %v3327_v30 = vsel %vm927_vm3, %v3165_v22, -inf }
 0x711   :  { %v2834_v63 = vpop.f32.mrf.mxu1  ;;  %3593 = vmatpush.msrb.mxu0 %v3436_v21 }
 0x712   :  { %v3330_v17 = vsel %vm927_vm3, %v3170_v10, -inf  ;;  %v2835_v23 = vadd.f32 %v2834_v63, %v2666_v52  ;;  %v3484_v52 = vld [vmem:[%s7915_s5 + $0x398] sm:$0xff]  ;;  %3612 = vmatpush.msrb.mxu1 %v3453_v58  ;;  %v3466_v63 = vld [vmem:[%s7915_s5 + $0x308] sm:$0xff] }
 0x713   :  { %v3331_v43 = vmax.f32 %v3325_v42, %v3330_v17  ;;  %3653 = vmatpush.msrb.mxu3 %v3484_v52  ;;  %3594 = vmatpush.msrb.mxu0 %v3435_v25  ;;  %v3465_v17 = vld [vmem:[%s7915_s5 + $0x300] sm:$0xff] }
 0x714   :  { %v3003_v46 = vpop.f32.mrf.mxu2  ;;  %3613 = vmatpush.msrb.mxu1 %v3452_v60 }
 0x715   :  { %v7781_v54 = vmax.f32 %v3329_v13, %v3331_v43  ;;  %v3004_v20 = vadd.f32 %v3003_v46, %v2835_v23  ;;  %v3469_v13 = vld [vmem:[%s7915_s5 + $0x320] sm:$0xff]  ;;  %3654 = vmatpush.msrb.mxu3 %v3483_v0  ;;  %3595 = vmatpush.msrb.mxu0 %v3434_v44  ;;  %v3450_v43 = vld [vmem:[%s7915_s5 + $0x288] sm:$0xff]  ;;  %v3363_v46 = vld [vmem:[%s7917_s3 + $0x18] sm:$0xff] }
 0x716   :  { %3632 = vmatpush.msrb.mxu2 %v3469_v13  ;;  %3614 = vmatpush.msrb.mxu1 %v3451_v16 }
 0x717   :  { %v3172_v45 = vpop.f32.mrf.mxu3  ;;  %3655 = vmatpush.msrb.mxu3 %v3482_v31  ;;  %3596 = vmatpush.msrb.mxu0 %v3433_v51 }
 0x718   :  { %v3173_v49 = vadd.f32 %v3172_v45, %v3004_v20  ;;  %3633 = vmatpush.msrb.mxu2 %v3468_v56  ;;  %3615 = vmatpush.msrb.mxu1 %v3450_v43 }
 0x719   :  { %v2836_v53 = vpop.f32.mrf.mxu1  ;;  %3656 = vmatpush.msrb.mxu3 %v3481_v57 }
 0x71a   :  { %v3332_v24 = vsel %vm927_vm3, %v3173_v49, -inf  ;;  %v2837_v12 = vadd.f32 %v2836_v53, %v2668_v9  ;;  %3634 = vmatpush.msrb.mxu2 %v3467_v61  ;;  %3657 = vmatmul.f32.vlgmr.msrb.gmra.mxu3 %v3365_v11 }
 0x71b   :  { %v3333_v32 = vmax.f32 %v3326_v27, %v3332_v24  ;;  %3616 = vmatpush.msrb.mxu1 %v3449_v26 }
 0x71c   :  { %v3005_v35 = vpop.f32.mrf.mxu2  ;;  %3635 = vmatpush.msrb.mxu2 %v3466_v63  ;;  %3617 = vmatmul.f32.vlgmr.msrb.gmra.mxu1 %v3363_v46 }
 0x71d   :  { %v3006_v7 = vadd.f32 %v3005_v35, %v2837_v12 }
 0x71e   :  { %3636 = vmatpush.msrb.mxu2 %v3465_v17 }
 0x71f   :  { %v3174_v10 = vpop.f32.mrf.mxu3  ;;  %3637 = vmatmul.f32.vlgmr.msrb.gmra.mxu2 %v3364_v15 }
 0x720   :  { %v3175_v1 = vadd.f32 %v3174_v10, %v3006_v7 }
 0x722   :  { %v3334_v42 = vsel %vm927_vm3, %v3175_v1, -inf }
 0x723   :  { %v3335_v23 = vmax.f32 %v3327_v30, %v3334_v42 }
 0x725   :  { %v3337_v4 = vmax.f32 %v3333_v32, %v3335_v23 }
 0x727   :  { %v3338_v6 = vmax.f32 %v7781_v54, %v3337_v4  ;;  %v3362_v54 = vld [vmem:[%s7917_s3 + $0x10] sm:$0xff] }
 0x729   :  { %v3339_v3 = vrot.slane %v3338_v6, 4 }
 0x72b   :  { %v3340_v29 = vmax.f32 %v3338_v6, %v3339_v3 }
 0x72d   :  { %v3341_v50 = vrot.slane %v3340_v29, 2 }
 0x72f   :  { %v3342_v20 = vmax.f32 %v3340_v29, %v3341_v50 }
 0x731   :  { %v3343_v59 = vrot.slane %v3342_v20, 1 }
 0x733   :  { %v3344_v38 = vmax.f32 %v3342_v20, %v3343_v59 }
 0x735   :  { %v3358_v41 = vsel %vm3357_vm12, %v7640_v2, %v3344_v38 }
 0x736   :  { %3925 = vmatmul.msk.f32.vlgmr.msra.gmra.mxu0 %vm927_vm3, %v3358_v41 }
 0x73e   :  { %3597 = vmatmul.f32.vlgmr.msrb.gmra.mxu0 %v3362_v54 }
 0x772   :  { %v3558_v45 = vpop.f32.mrf.mxu2 }
 0x780   :  { %v3538_v34 = vpop.f32.mrf.mxu1 }
 0x785   :  { %v3578_v37 = vpop.f32.mrf.mxu3 }
 0x799   :  { %v3618_v14 = vpop.f32.mrf.mxu1 }
 0x79d   :  { %v3658_v5 = vpop.f32.mrf.mxu3 }
 0x7a2   :  { %v3638_v53 = vpop.f32.mrf.mxu2 }
 0x7b3   :  { %v3518_v48 = vpop.f32.mrf.mxu0 }
 0x7b4   :  { %v3519_v18 = vadd.f32 %v4308_v39, %v3518_v48 }
 0x7b6   :  { %v3539_v55 = vadd.f32 %v3538_v34, %v3519_v18 }
 0x7b8   :  { %v3559_v9 = vadd.f32 %v3558_v45, %v3539_v55 }
 0x7ba   :  { %v3579_v49 = vadd.f32 %v3578_v37, %v3559_v9 }
 0x7bb   :  { %v3598_v2 = vpop.f32.mrf.mxu0 }
 0x7bc   :  { %v3599_v36 = vadd.f32 %v3598_v2, %v3579_v49 }
 0x7be   :  { %v3619_v13 = vadd.f32 %v3618_v14, %v3599_v36 }
 0x7c0   :  { %v3639_v27 = vadd.f32 %v3638_v53, %v3619_v13 }
 0x7c2   :  { %v3659_v47 = vadd.f32 %v3658_v5, %v3639_v27 }
 0x7c4   :  { %vm3661_vm13 = vcmp.ge.f32.partialorder %v3659_v47, 0.0  ;;  %v3662_v24 = vmul.f32 0.01, %v3659_v47 }
 0x7c6   :  { %v3663_v12 = vsel %vm3661_vm13, %v3659_v47, %v3662_v24 }
 0x7c7   :  { %3664 = vst [vmem:[%s7919_s7] sm:$0xff] %v3663_v12 }

</bundles_post_ra>
